<compile_context>
chip_gen: v7x
topology: tpu7x:2x2x1
jax: 0.10.0
libtpu: 0.0.40
codegen_flags: <defaults>
</compile_context>

<pallas_src>
import functools
import math

import jax
import jax.numpy as jnp
import numpy as np
from jax.experimental import pallas as pl
from jax.experimental.pallas import tpu as pltpu


def _round_up(x: int, m: int) -> int:
    return (x + m - 1) // m * m


def _vmem_limit_bytes() -> int:
    """Generation-aware VMEM limit: ~100 MiB on v5e/v6e (128 MiB physical VMEM),
    ~48 MiB on v7x (64 MiB physical)."""
    try:
        cap = int(pltpu.get_tpu_info().vmem_capacity_bytes)
    except Exception:
        cap = 64 * 1024 * 1024  # conservative (v7x-sized) fallback
    return int(min(max(cap - 16 * 1024 * 1024, 32 * 1024 * 1024),
                   100 * 1024 * 1024))


def _graph_conv_kernel(blk_ref, cnt_ref, a_ref, xk_ref, xi_ref,
                       w_rel_ref, w_x_ref, b_ref, gamma_ref, beta_ref,
                       o_ref, acc_ref, *, f_out_true: int, eps: float):
    """Grid = (node-row tiles [parallel], nonzero A-block steps [arbitrary])."""
    i = pl.program_id(0)
    k = pl.program_id(1)

    @pl.when(k == 0)
    def _init():
        acc_ref[...] = jnp.zeros_like(acc_ref)

    # Neighbor aggregation: acc += A[i, blk[i,k]] @ x[blk[i,k]].
    # A and xk are bf16 -> full-rate bf16 MXU matmul with f32 accumulation.
    # Grid steps past this row tile's nonzero-block count repeat the previous
    # block index in the index_map (so no DMA is re-issued) and the accumulate
    # is gated off here.
    @pl.when(k < cnt_ref[i])
    def _aggregate():
        acc_ref[...] += jnp.dot(a_ref[...], xk_ref[...],
                                preferred_element_type=jnp.float32)

    @pl.when(k == pl.num_programs(1) - 1)
    def _epilogue():
        agg = acc_ref[...]                             # [TM, Fin_pad]  f32
        xi = xi_ref[...]                               # [TM, Fin_pad]  f32
        # GraphConv + residual Linear with the two x-projections fused:
        #   y = agg @ W_rel + x @ (W_root + W_res) + (b_rel + b_res)
        # TODO(synk): optional — fuse the two dots by contracting [agg | xi]
        # against a pre-stacked [W_rel; W_x] (one 2*Fin-deep MXU pass).
        y = (jnp.dot(agg, w_rel_ref[...], preferred_element_type=jnp.float32)
             + jnp.dot(xi, w_x_ref[...], preferred_element_type=jnp.float32)
             + b_ref[...])

        f_out_pad = y.shape[-1]
        inv_f = 1.0 / float(f_out_true)
        if f_out_pad != f_out_true:
            # LayerNorm statistics over the true (unpadded) feature width only.
            col = jax.lax.broadcasted_iota(jnp.int32, y.shape, 1)
            mask = col < f_out_true
            y = jnp.where(mask, y, 0.0)
            mean = jnp.sum(y, axis=-1, keepdims=True) * inv_f
            cent = jnp.where(mask, y - mean, 0.0)
        else:
            mean = jnp.sum(y, axis=-1, keepdims=True) * inv_f
            cent = y - mean
        var = jnp.sum(cent * cent, axis=-1, keepdims=True) * inv_f
        yn = cent * jax.lax.rsqrt(var + eps)
        yn = yn * gamma_ref[...] + beta_ref[...]
        # ReLU; Dropout(p=0.0) is identity.
        o_ref[...] = jnp.maximum(yn, 0.0).astype(o_ref.dtype)


def graph_conv_layer_v2(x, edge_index, params, *, tile_m=256, tile_k=256,
                        eps=1e-5):
    """x: [N, Fin] float32; edge_index: [2, E] int32 (row 0 = src, row 1 = dst)."""
    n, f_in = x.shape
    f_out = params["w_rel"].shape[1]

    n_pad = _round_up(n, math.lcm(tile_m, tile_k))
    f_in_pad = _round_up(f_in, 128)
    f_out_pad = _round_up(f_out, 128)
    num_i = n_pad // tile_m
    num_k_total = n_pad // tile_k

    # ---- plain-JAX / host glue: padding, weight fusion, adjacency, schedule ----
    x_p = jnp.pad(x.astype(jnp.float32),
                  ((0, n_pad - n), (0, f_in_pad - f_in)))
    x_bf = x_p.astype(jnp.bfloat16)        # bf16 operand for the aggregation matmul

    def pad_w(w):
        return jnp.pad(w, ((0, f_in_pad - f_in), (0, f_out_pad - f_out)))

    def pad_v(v):
        return jnp.pad(v, ((0, 0), (0, f_out_pad - f_out)))

    w_rel = pad_w(params["w_rel"])
    w_x = pad_w(params["w_root"] + params["w_res"])       # fused x-projection
    b = pad_v(params["b_rel"] + params["b_res"])          # fused bias
    gamma = pad_v(params["gamma"])
    beta = pad_v(params["beta"])

    # Dense adjacency A[dst, src] = edge multiplicity (aggr='add'), built directly
    # in bf16 (exact while per-pair multiplicity <= 256).
    # TODO(synk): for graphs where the dense N^2 adjacency itself is infeasible,
    # switch to a CSR / segment-sum gather driven entirely by scalar prefetch.
    src, dst = edge_index[0], edge_index[1]
    adj = (jnp.zeros((n_pad, n_pad), jnp.bfloat16)
           .at[dst, src].add(1.0))

    # Block-sparse reduction schedule: per row tile, the list of k-blocks that
    # actually contain edges (computed on the host from edge_index).  Padded
    # entries repeat the last valid block so the DMA is skipped; the kernel
    # gates the accumulate on cnt.
    src_np = np.asarray(jax.device_get(src))
    dst_np = np.asarray(jax.device_get(dst))
    present = np.zeros((num_i, num_k_total), dtype=bool)
    present[dst_np // tile_m, src_np // tile_k] = True
    cnt_np = present.sum(axis=1).astype(np.int32)
    max_k = max(int(cnt_np.max()), 1)
    blk_np = np.zeros((num_i, max_k), dtype=np.int32)
    for ii in range(num_i):
        nz = np.nonzero(present[ii])[0]
        if nz.size:
            blk_np[ii, :nz.size] = nz
            blk_np[ii, nz.size:] = nz[-1]
    blk = jnp.asarray(blk_np)
    cnt = jnp.asarray(cnt_np)

    kernel = functools.partial(_graph_conv_kernel, f_out_true=f_out, eps=eps)

    def _build(single_buffer_constants: bool):
        pmode = pl.Buffered(1) if single_buffer_constants else None

        def cspec(shape):
            return pl.BlockSpec(shape, lambda i, k, blk_r, cnt_r: (0, 0),
                                pipeline_mode=pmode)

        grid_spec = pltpu.PrefetchScalarGridSpec(
            num_scalar_prefetch=2,
            grid=(num_i, max_k),
            in_specs=[
                # A tile (bf16), column-block chosen by the prefetched schedule.
                pl.BlockSpec((tile_m, tile_k),
                             lambda i, k, blk_r, cnt_r: (i, blk_r[i, k])),
                # x rows for the source block (bf16 aggregation operand).
                pl.BlockSpec((tile_k, f_in_pad),
                             lambda i, k, blk_r, cnt_r: (blk_r[i, k], 0)),
                # x rows for this destination tile (f32, used in the epilogue).
                pl.BlockSpec((tile_m, f_in_pad),
                             lambda i, k, blk_r, cnt_r: (i, 0)),
                cspec((f_in_pad, f_out_pad)),   # W_rel           (resident)
                cspec((f_in_pad, f_out_pad)),   # W_root + W_res  (resident)
                cspec((1, f_out_pad)),          # b_rel + b_res   (resident)
                cspec((1, f_out_pad)),          # gamma           (resident)
                cspec((1, f_out_pad)),          # beta            (resident)
            ],
            out_specs=pl.BlockSpec((tile_m, f_out_pad),
                                   lambda i, k, blk_r, cnt_r: (i, 0)),
            scratch_shapes=[pltpu.VMEM((tile_m, f_in_pad), jnp.float32)],
        )
        return pl.pallas_call(
            kernel,
            out_shape=jax.ShapeDtypeStruct((n_pad, f_out_pad), jnp.float32),
            grid_spec=grid_spec,
            compiler_params=pltpu.CompilerParams(
                dimension_semantics=("parallel", "arbitrary"),
                vmem_limit_bytes=_vmem_limit_bytes()),
        )

    args = (blk, cnt, adj, x_bf, x_p, w_rel, w_x, b, gamma, beta)
    try:
        out = _build(True)(*args)
    except Exception:
        # Fallback: default double-buffering if single-buffered resident blocks
        # are not supported by this JAX version.
        out = _build(False)(*args)

    return out[:n, :f_out]


def init_params(key, f_in, f_out):
    ks = jax.random.split(key, 5)
    scale = 1.0 / jnp.sqrt(f_in)
    return {
        # stored as [Fin, Fout] so the kernel does x @ W directly
        "w_rel":  jax.random.uniform(ks[0], (f_in, f_out), jnp.float32, -scale, scale),
        "b_rel":  jax.random.uniform(ks[1], (1, f_out),    jnp.float32, -scale, scale),
        "w_root": jax.random.uniform(ks[2], (f_in, f_out), jnp.float32, -scale, scale),
        "w_res":  jax.random.uniform(ks[3], (f_in, f_out), jnp.float32, -scale, scale),
        "b_res":  jax.random.uniform(ks[4], (1, f_out),    jnp.float32, -scale, scale),
        "gamma":  jnp.ones((1, f_out), jnp.float32),
        "beta":   jnp.zeros((1, f_out), jnp.float32),
    }


def _reference(x, edge_index, params, eps=1e-5):
    n = x.shape[0]
    src, dst = edge_index[0], edge_index[1]
    adj = jnp.zeros((n, n), jnp.float32).at[dst, src].add(1.0)
    hp = jax.lax.Precision.HIGHEST
    agg = jnp.dot(adj, x, precision=hp)
    y = (jnp.dot(agg, params["w_rel"], precision=hp) + params["b_rel"]
         + jnp.dot(x, params["w_root"], precision=hp)
         + jnp.dot(x, params["w_res"], precision=hp) + params["b_res"])
    mean = jnp.mean(y, axis=-1, keepdims=True)
    var = jnp.mean((y - mean) ** 2, axis=-1, keepdims=True)
    y = (y - mean) * jax.lax.rsqrt(var + eps)
    y = y * params["gamma"] + params["beta"]
    return jnp.maximum(y, 0.0)


if __name__ == "__main__":
    key = jax.random.PRNGKey(0)
    k_x, k_src, k_off, k_p = jax.random.split(key, 4)

    # Small but non-trivial: exercises feature padding (48->128, 32->128),
    # node padding (520->768), a 3x3 grid of 256-wide tiles (so the row axis
    # has >1 tile for megacore), the masked LayerNorm, and — via the banded
    # random graph — the scalar-prefetched block-sparse reduction (per-row-tile
    # nonzero-block counts of 2/3/2, so padded k-steps are really gated off).
    N, F_IN, F_OUT, E = 520, 48, 32, 2000
    x = jax.random.normal(k_x, (N, F_IN), jnp.float32)
    src = jax.random.randint(k_src, (E,), 0, N, jnp.int32)
    off = jax.random.randint(k_off, (E,), -32, 33, jnp.int32)
    dst = jnp.clip(src + off, 0, N - 1).astype(jnp.int32)
    edge_index = jnp.stack([src, dst])

    params = init_params(k_p, F_IN, F_OUT)

    out = graph_conv_layer_v2(x, edge_index, params)
    jax.block_until_ready(out)
    assert out.shape == (N, F_OUT)

    ref = _reference(x, edge_index, params)
    err = float(jnp.max(jnp.abs(out - ref)))
    # bf16 aggregation operand (x) introduces ~2^-9 relative rounding on the
    # neighbor sum; all accumulation and the epilogue stay in f32.
    assert err < 1e-2, f"max abs error vs reference = {err}"

    print("KERNEL_OK")
</pallas_src>

<mosaic_0001>
module attributes {stable_mosaic.version = 11 : i64} {
  func.func @_graph_conv_kernel(%arg0: i32, %arg1: i32, %arg2: memref<3x3xi32, #tpu.memory_space<smem>>, %arg3: memref<3xi32, #tpu.memory_space<smem>>, %arg4: memref<256x256xbf16, #tpu.memory_space<vmem>>, %arg5: memref<256x128xbf16, #tpu.memory_space<vmem>>, %arg6: memref<256x128xf32, #tpu.memory_space<vmem>>, %arg7: memref<128x128xf32, #tpu.memory_space<vmem>>, %arg8: memref<128x128xf32, #tpu.memory_space<vmem>>, %arg9: memref<1x128xf32, #tpu.memory_space<vmem>>, %arg10: memref<1x128xf32, #tpu.memory_space<vmem>>, %arg11: memref<1x128xf32, #tpu.memory_space<vmem>>, %arg12: memref<256x128xf32, #tpu.memory_space<vmem>>, %arg13: memref<256x128xf32, #tpu.memory_space<vmem>>) attributes {dimension_semantics = [#tpu.dimension_semantics<parallel>, #tpu.dimension_semantics<arbitrary>], iteration_bounds = array<i64: 3, 3>, scalar_prefetch = 2 : i64, scratch_operands = 1 : i64, tpu.core_type = #tpu.core_type<tc>, window_params = [{transform_indices = @transform_0, window_bounds = array<i64: 256, 256>}, {transform_indices = @transform_1, window_bounds = array<i64: 256, 128>}, {transform_indices = @transform_2, window_bounds = array<i64: 256, 128>}, {pipeline_mode = #tpu.pipeline_mode<synchronous>, transform_indices = @transform_3, window_bounds = array<i64: 128, 128>}, {pipeline_mode = #tpu.pipeline_mode<synchronous>, transform_indices = @transform_4, window_bounds = array<i64: 128, 128>}, {pipeline_mode = #tpu.pipeline_mode<synchronous>, transform_indices = @transform_5, window_bounds = array<i64: 1, 128>}, {pipeline_mode = #tpu.pipeline_mode<synchronous>, transform_indices = @transform_6, window_bounds = array<i64: 1, 128>}, {pipeline_mode = #tpu.pipeline_mode<synchronous>, transform_indices = @transform_7, window_bounds = array<i64: 1, 128>}, {transform_indices = @transform_8, window_bounds = array<i64: 256, 128>}]} {
    %c0_i32 = arith.constant 0 : i32
    %0 = arith.cmpi eq, %arg1, %c0_i32 : i32
    %1 = arith.extui %0 : i1 to i32
    %c0_i32_0 = arith.constant 0 : i32
    %2 = arith.cmpi ne, %1, %c0_i32_0 : i32
    scf.if %2 {
      %cst = arith.constant 0.000000e+00 : f32
      %11 = vector.broadcast %cst : f32 to vector<256x128xf32>
      %c0 = arith.constant 0 : index
      %c0_3 = arith.constant 0 : index
      %12 = vector.load %arg13[%c0, %c0_3] : memref<256x128xf32, #tpu.memory_space<vmem>>, vector<256x128xf32>
      tpu.vector_store %arg13[%c0, %c0_3], %11 {strides = array<i32>} : memref<256x128xf32, #tpu.memory_space<vmem>>, vector<256x128xf32>,
    } else {
    }
    %3 = arith.index_cast %arg0 : i32 to index
    %4 = memref.load %arg3[%3] : memref<3xi32, #tpu.memory_space<smem>>
    %5 = arith.cmpi slt, %arg1, %4 : i32
    %6 = arith.extui %5 : i1 to i32
    %c0_i32_1 = arith.constant 0 : i32
    %7 = arith.cmpi ne, %6, %c0_i32_1 : i32
    scf.if %7 {
      %c0 = arith.constant 0 : index
      %c0_3 = arith.constant 0 : index
      %11 = vector.load %arg13[%c0, %c0_3] : memref<256x128xf32, #tpu.memory_space<vmem>>, vector<256x128xf32>
      %c0_4 = arith.constant 0 : index
      %c0_5 = arith.constant 0 : index
      %12 = vector.load %arg4[%c0_4, %c0_5] : memref<256x256xbf16, #tpu.memory_space<vmem>>, vector<256x256xbf16>
      %c0_6 = arith.constant 0 : index
      %c0_7 = arith.constant 0 : index
      %13 = vector.load %arg5[%c0_6, %c0_7] : memref<256x128xbf16, #tpu.memory_space<vmem>>, vector<256x128xbf16>
      %cst = arith.constant dense<0.000000e+00> : vector<256x128xf32>
      %14 = tpu.matmul %12, %13, %cst {dimension_numbers = #tpu.dot_dimension_numbers<[1], [0], [0], [1], [0, 0, 1, 1], [], []>} : vector<256x256xbf16>, vector<256x128xbf16>, vector<256x128xf32> -> vector<256x128xf32>
      %15 = arith.addf %11, %14 : vector<256x128xf32>
      %c0_8 = arith.constant 0 : index
      %c0_9 = arith.constant 0 : index
      %16 = vector.load %arg13[%c0_8, %c0_9] : memref<256x128xf32, #tpu.memory_space<vmem>>, vector<256x128xf32>
      tpu.vector_store %arg13[%c0_8, %c0_9], %15 {strides = array<i32>} : memref<256x128xf32, #tpu.memory_space<vmem>>, vector<256x128xf32>,
    } else {
    }
    %c2_i32 = arith.constant 2 : i32
    %8 = arith.cmpi eq, %arg1, %c2_i32 : i32
    %9 = arith.extui %8 : i1 to i32
    %c0_i32_2 = arith.constant 0 : i32
    %10 = arith.cmpi ne, %9, %c0_i32_2 : i32
    scf.if %10 {
      %c0 = arith.constant 0 : index
      %c0_3 = arith.constant 0 : index
      %11 = vector.load %arg13[%c0, %c0_3] : memref<256x128xf32, #tpu.memory_space<vmem>>, vector<256x128xf32>
      %c0_4 = arith.constant 0 : index
      %c0_5 = arith.constant 0 : index
      %12 = vector.load %arg6[%c0_4, %c0_5] : memref<256x128xf32, #tpu.memory_space<vmem>>, vector<256x128xf32>
      %c0_6 = arith.constant 0 : index
      %c0_7 = arith.constant 0 : index
      %13 = vector.load %arg7[%c0_6, %c0_7] : memref<128x128xf32, #tpu.memory_space<vmem>>, vector<128x128xf32>
      %cst = arith.constant dense<0.000000e+00> : vector<256x128xf32>
      %14 = tpu.matmul %11, %13, %cst {dimension_numbers = #tpu.dot_dimension_numbers<[1], [0], [0], [1], [0, 0, 1, 1], [], []>} : vector<256x128xf32>, vector<128x128xf32>, vector<256x128xf32> -> vector<256x128xf32>
      %c0_8 = arith.constant 0 : index
      %c0_9 = arith.constant 0 : index
      %15 = vector.load %arg8[%c0_8, %c0_9] : memref<128x128xf32, #tpu.memory_space<vmem>>, vector<128x128xf32>
      %cst_10 = arith.constant dense<0.000000e+00> : vector<256x128xf32>
      %16 = tpu.matmul %12, %15, %cst_10 {dimension_numbers = #tpu.dot_dimension_numbers<[1], [0], [0], [1], [0, 0, 1, 1], [], []>} : vector<256x128xf32>, vector<128x128xf32>, vector<256x128xf32> -> vector<256x128xf32>
      %17 = arith.addf %14, %16 : vector<256x128xf32>
      %c0_11 = arith.constant 0 : index
      %c0_12 = arith.constant 0 : index
      %18 = vector.load %arg9[%c0_11, %c0_12] : memref<1x128xf32, #tpu.memory_space<vmem>>, vector<1x128xf32>
      %19 = vector.broadcast %18 : vector<1x128xf32> to vector<256x128xf32>
      %20 = arith.addf %17, %19 : vector<256x128xf32>
      %21 = tpu.iota {dimensions = array<i32: 1>} : vector<256x128xi32>
      %c32_i32 = arith.constant 32 : i32
      %22 = vector.broadcast %c32_i32 : i32 to vector<256x128xi32>
      %23 = arith.cmpi slt, %21, %22 : vector<256x128xi32>
      %cst_13 = arith.constant 0.000000e+00 : f32
      %24 = vector.broadcast %cst_13 : f32 to vector<256x128xf32>
      %25 = arith.select %23, %20, %24 : vector<256x128xi1>, vector<256x128xf32>
      %cst_14 = arith.constant dense<0.000000e+00> : vector<256xf32>
      %26 = vector.multi_reduction <add>, %25, %cst_14 [1] : vector<256x128xf32> to vector<256xf32>
      %27 = vector.shape_cast %26 : vector<256xf32> to vector<256x1xf32>
      %cst_15 = arith.constant 3.125000e-02 : f32
      %28 = vector.broadcast %cst_15 : f32 to vector<256x1xf32>
      %29 = arith.mulf %27, %28 : vector<256x1xf32>
      %30 = vector.broadcast %29 : vector<256x1xf32> to vector<256x128xf32>
      %31 = arith.subf %25, %30 : vector<256x128xf32>
      %cst_16 = arith.constant 0.000000e+00 : f32
      %32 = vector.broadcast %cst_16 : f32 to vector<256x128xf32>
      %33 = arith.select %23, %31, %32 : vector<256x128xi1>, vector<256x128xf32>
      %34 = arith.mulf %33, %33 : vector<256x128xf32>
      %cst_17 = arith.constant dense<0.000000e+00> : vector<256xf32>
      %35 = vector.multi_reduction <add>, %34, %cst_17 [1] : vector<256x128xf32> to vector<256xf32>
      %36 = vector.shape_cast %35 : vector<256xf32> to vector<256x1xf32>
      %cst_18 = arith.constant 3.125000e-02 : f32
      %37 = vector.broadcast %cst_18 : f32 to vector<256x1xf32>
      %38 = arith.mulf %36, %37 : vector<256x1xf32>
      %cst_19 = arith.constant 9.99999974E-6 : f32
      %39 = vector.broadcast %cst_19 : f32 to vector<256x1xf32>
      %40 = arith.addf %38, %39 : vector<256x1xf32>
      %41 = math.rsqrt %40 : vector<256x1xf32>
      %42 = vector.broadcast %41 : vector<256x1xf32> to vector<256x128xf32>
      %43 = arith.mulf %33, %42 : vector<256x128xf32>
      %c0_20 = arith.constant 0 : index
      %c0_21 = arith.constant 0 : index
      %44 = vector.load %arg10[%c0_20, %c0_21] : memref<1x128xf32, #tpu.memory_space<vmem>>, vector<1x128xf32>
      %45 = vector.broadcast %44 : vector<1x128xf32> to vector<256x128xf32>
      %46 = arith.mulf %43, %45 : vector<256x128xf32>
      %c0_22 = arith.constant 0 : index
      %c0_23 = arith.constant 0 : index
      %47 = vector.load %arg11[%c0_22, %c0_23] : memref<1x128xf32, #tpu.memory_space<vmem>>, vector<1x128xf32>
      %48 = vector.broadcast %47 : vector<1x128xf32> to vector<256x128xf32>
      %49 = arith.addf %46, %48 : vector<256x128xf32>
      %cst_24 = arith.constant 0.000000e+00 : f32
      %50 = vector.broadcast %cst_24 : f32 to vector<256x128xf32>
      %51 = arith.maximumf %49, %50 : vector<256x128xf32>
      %c0_25 = arith.constant 0 : index
      %c0_26 = arith.constant 0 : index
      %52 = vector.load %arg12[%c0_25, %c0_26] : memref<256x128xf32, #tpu.memory_space<vmem>>, vector<256x128xf32>
      tpu.vector_store %arg12[%c0_25, %c0_26], %51 {strides = array<i32>} : memref<256x128xf32, #tpu.memory_space<vmem>>, vector<256x128xf32>,
    } else {
    }
    return
  }
  func.func @transform_0(%arg0: i32, %arg1: i32, %arg2: memref<3x3xi32, #tpu.memory_space<smem>>, %arg3: memref<3xi32, #tpu.memory_space<smem>>) -> (i32, i32) {
    %0 = arith.index_cast %arg0 : i32 to index
    %1 = arith.index_cast %arg1 : i32 to index
    %2 = memref.load %arg2[%0, %1] : memref<3x3xi32, #tpu.memory_space<smem>>
    %c0_i32 = arith.constant 0 : i32
    return %arg0, %2 : i32, i32
  }
  func.func @transform_1(%arg0: i32, %arg1: i32, %arg2: memref<3x3xi32, #tpu.memory_space<smem>>, %arg3: memref<3xi32, #tpu.memory_space<smem>>) -> (i32, i32) {
    %0 = arith.index_cast %arg0 : i32 to index
    %1 = arith.index_cast %arg1 : i32 to index
    %2 = memref.load %arg2[%0, %1] : memref<3x3xi32, #tpu.memory_space<smem>>
    %c0_i32 = arith.constant 0 : i32
    %c0_i32_0 = arith.constant 0 : i32
    return %2, %c0_i32 : i32, i32
  }
  func.func @transform_2(%arg0: i32, %arg1: i32, %arg2: memref<3x3xi32, #tpu.memory_space<smem>>, %arg3: memref<3xi32, #tpu.memory_space<smem>>) -> (i32, i32) {
    %c0_i32 = arith.constant 0 : i32
    %c0_i32_0 = arith.constant 0 : i32
    return %arg0, %c0_i32 : i32, i32
  }
  func.func @transform_3(%arg0: i32, %arg1: i32, %arg2: memref<3x3xi32, #tpu.memory_space<smem>>, %arg3: memref<3xi32, #tpu.memory_space<smem>>) -> (i32, i32) {
    %c0_i32 = arith.constant 0 : i32
    %c0_i32_0 = arith.constant 0 : i32
    %c0_i32_1 = arith.constant 0 : i32
    return %c0_i32, %c0_i32_0 : i32, i32
  }
  func.func @transform_4(%arg0: i32, %arg1: i32, %arg2: memref<3x3xi32, #tpu.memory_space<smem>>, %arg3: memref<3xi32, #tpu.memory_space<smem>>) -> (i32, i32) {
    %c0_i32 = arith.constant 0 : i32
    %c0_i32_0 = arith.constant 0 : i32
    %c0_i32_1 = arith.constant 0 : i32
    return %c0_i32, %c0_i32_0 : i32, i32
  }
  func.func @transform_5(%arg0: i32, %arg1: i32, %arg2: memref<3x3xi32, #tpu.memory_space<smem>>, %arg3: memref<3xi32, #tpu.memory_space<smem>>) -> (i32, i32) {
    %c0_i32 = arith.constant 0 : i32
    %c0_i32_0 = arith.constant 0 : i32
    %c0_i32_1 = arith.constant 0 : i32
    return %c0_i32, %c0_i32_0 : i32, i32
  }
  func.func @transform_6(%arg0: i32, %arg1: i32, %arg2: memref<3x3xi32, #tpu.memory_space<smem>>, %arg3: memref<3xi32, #tpu.memory_space<smem>>) -> (i32, i32) {
    %c0_i32 = arith.constant 0 : i32
    %c0_i32_0 = arith.constant 0 : i32
    %c0_i32_1 = arith.constant 0 : i32
    return %c0_i32, %c0_i32_0 : i32, i32
  }
  func.func @transform_7(%arg0: i32, %arg1: i32, %arg2: memref<3x3xi32, #tpu.memory_space<smem>>, %arg3: memref<3xi32, #tpu.memory_space<smem>>) -> (i32, i32) {
    %c0_i32 = arith.constant 0 : i32
    %c0_i32_0 = arith.constant 0 : i32
    %c0_i32_1 = arith.constant 0 : i32
    return %c0_i32, %c0_i32_0 : i32, i32
  }
  func.func @transform_8(%arg0: i32, %arg1: i32, %arg2: memref<3x3xi32, #tpu.memory_space<smem>>, %arg3: memref<3xi32, #tpu.memory_space<smem>>) -> (i32, i32) {
    %c0_i32 = arith.constant 0 : i32
    %c0_i32_0 = arith.constant 0 : i32
    return %arg0, %c0_i32 : i32, i32
  }
}

module attributes {stable_mosaic.version = 11 : i64} {
  func.func @_graph_conv_kernel(%arg0: i32, %arg1: i32, %arg2: memref<3x3xi32, #tpu.memory_space<smem>>, %arg3: memref<3xi32, #tpu.memory_space<smem>>, %arg4: memref<256x256xbf16, #tpu.memory_space<vmem>>, %arg5: memref<256x128xbf16, #tpu.memory_space<vmem>>, %arg6: memref<256x128xf32, #tpu.memory_space<vmem>>, %arg7: memref<128x128xf32, #tpu.memory_space<vmem>>, %arg8: memref<128x128xf32, #tpu.memory_space<vmem>>, %arg9: memref<1x128xf32, #tpu.memory_space<vmem>>, %arg10: memref<1x128xf32, #tpu.memory_space<vmem>>, %arg11: memref<1x128xf32, #tpu.memory_space<vmem>>, %arg12: memref<256x128xf32, #tpu.memory_space<vmem>>, %arg13: memref<256x128xf32, #tpu.memory_space<vmem>>) attributes {dimension_semantics = [#tpu.dimension_semantics<parallel>, #tpu.dimension_semantics<arbitrary>], iteration_bounds = array<i64: 3, 3>, scalar_prefetch = 2 : i64, scratch_operands = 1 : i64, tpu.core_type = #tpu.core_type<tc>, window_params = [{transform_indices = @transform_0, window_bounds = array<i64: 256, 256>}, {transform_indices = @transform_1, window_bounds = array<i64: 256, 128>}, {transform_indices = @transform_2, window_bounds = array<i64: 256, 128>}, {pipeline_mode = #tpu.pipeline_mode<synchronous>, transform_indices = @transform_3, window_bounds = array<i64: 128, 128>}, {pipeline_mode = #tpu.pipeline_mode<synchronous>, transform_indices = @transform_4, window_bounds = array<i64: 128, 128>}, {pipeline_mode = #tpu.pipeline_mode<synchronous>, transform_indices = @transform_5, window_bounds = array<i64: 1, 128>}, {pipeline_mode = #tpu.pipeline_mode<synchronous>, transform_indices = @transform_6, window_bounds = array<i64: 1, 128>}, {pipeline_mode = #tpu.pipeline_mode<synchronous>, transform_indices = @transform_7, window_bounds = array<i64: 1, 128>}, {transform_indices = @transform_8, window_bounds = array<i64: 256, 128>}]} {
    %c0_i32 = arith.constant 0 : i32
    %0 = arith.cmpi eq, %arg1, %c0_i32 : i32
    %1 = arith.extui %0 : i1 to i32
    %c0_i32_0 = arith.constant 0 : i32
    %2 = arith.cmpi ne, %1, %c0_i32_0 : i32
    scf.if %2 {
      %cst = arith.constant 0.000000e+00 : f32
      %11 = vector.broadcast %cst : f32 to vector<256x128xf32>
      %c0 = arith.constant 0 : index
      %c0_3 = arith.constant 0 : index
      %12 = vector.load %arg13[%c0, %c0_3] : memref<256x128xf32, #tpu.memory_space<vmem>>, vector<256x128xf32>
      tpu.vector_store %arg13[%c0, %c0_3], %11 {strides = array<i32>} : memref<256x128xf32, #tpu.memory_space<vmem>>, vector<256x128xf32>,
    } else {
    }
    %3 = arith.index_cast %arg0 : i32 to index
    %4 = memref.load %arg3[%3] : memref<3xi32, #tpu.memory_space<smem>>
    %5 = arith.cmpi slt, %arg1, %4 : i32
    %6 = arith.extui %5 : i1 to i32
    %c0_i32_1 = arith.constant 0 : i32
    %7 = arith.cmpi ne, %6, %c0_i32_1 : i32
    scf.if %7 {
      %c0 = arith.constant 0 : index
      %c0_3 = arith.constant 0 : index
      %11 = vector.load %arg13[%c0, %c0_3] : memref<256x128xf32, #tpu.memory_space<vmem>>, vector<256x128xf32>
      %c0_4 = arith.constant 0 : index
      %c0_5 = arith.constant 0 : index
      %12 = vector.load %arg4[%c0_4, %c0_5] : memref<256x256xbf16, #tpu.memory_space<vmem>>, vector<256x256xbf16>
      %c0_6 = arith.constant 0 : index
      %c0_7 = arith.constant 0 : index
      %13 = vector.load %arg5[%c0_6, %c0_7] : memref<256x128xbf16, #tpu.memory_space<vmem>>, vector<256x128xbf16>
      %cst = arith.constant dense<0.000000e+00> : vector<256x128xf32>
      %14 = tpu.matmul %12, %13, %cst {dimension_numbers = #tpu.dot_dimension_numbers<[1], [0], [0], [1], [0, 0, 1, 1], [], []>} : vector<256x256xbf16>, vector<256x128xbf16>, vector<256x128xf32> -> vector<256x128xf32>
      %15 = arith.addf %11, %14 : vector<256x128xf32>
      %c0_8 = arith.constant 0 : index
      %c0_9 = arith.constant 0 : index
      %16 = vector.load %arg13[%c0_8, %c0_9] : memref<256x128xf32, #tpu.memory_space<vmem>>, vector<256x128xf32>
      tpu.vector_store %arg13[%c0_8, %c0_9], %15 {strides = array<i32>} : memref<256x128xf32, #tpu.memory_space<vmem>>, vector<256x128xf32>,
    } else {
    }
    %c2_i32 = arith.constant 2 : i32
    %8 = arith.cmpi eq, %arg1, %c2_i32 : i32
    %9 = arith.extui %8 : i1 to i32
    %c0_i32_2 = arith.constant 0 : i32
    %10 = arith.cmpi ne, %9, %c0_i32_2 : i32
    scf.if %10 {
      %c0 = arith.constant 0 : index
      %c0_3 = arith.constant 0 : index
      %11 = vector.load %arg13[%c0, %c0_3] : memref<256x128xf32, #tpu.memory_space<vmem>>, vector<256x128xf32>
      %c0_4 = arith.constant 0 : index
      %c0_5 = arith.constant 0 : index
      %12 = vector.load %arg6[%c0_4, %c0_5] : memref<256x128xf32, #tpu.memory_space<vmem>>, vector<256x128xf32>
      %c0_6 = arith.constant 0 : index
      %c0_7 = arith.constant 0 : index
      %13 = vector.load %arg7[%c0_6, %c0_7] : memref<128x128xf32, #tpu.memory_space<vmem>>, vector<128x128xf32>
      %cst = arith.constant dense<0.000000e+00> : vector<256x128xf32>
      %14 = tpu.matmul %11, %13, %cst {dimension_numbers = #tpu.dot_dimension_numbers<[1], [0], [0], [1], [0, 0, 1, 1], [], []>} : vector<256x128xf32>, vector<128x128xf32>, vector<256x128xf32> -> vector<256x128xf32>
      %c0_8 = arith.constant 0 : index
      %c0_9 = arith.constant 0 : index
      %15 = vector.load %arg8[%c0_8, %c0_9] : memref<128x128xf32, #tpu.memory_space<vmem>>, vector<128x128xf32>
      %cst_10 = arith.constant dense<0.000000e+00> : vector<256x128xf32>
      %16 = tpu.matmul %12, %15, %cst_10 {dimension_numbers = #tpu.dot_dimension_numbers<[1], [0], [0], [1], [0, 0, 1, 1], [], []>} : vector<256x128xf32>, vector<128x128xf32>, vector<256x128xf32> -> vector<256x128xf32>
      %17 = arith.addf %14, %16 : vector<256x128xf32>
      %c0_11 = arith.constant 0 : index
      %c0_12 = arith.constant 0 : index
      %18 = vector.load %arg9[%c0_11, %c0_12] : memref<1x128xf32, #tpu.memory_space<vmem>>, vector<1x128xf32>
      %19 = vector.broadcast %18 : vector<1x128xf32> to vector<256x128xf32>
      %20 = arith.addf %17, %19 : vector<256x128xf32>
      %21 = tpu.iota {dimensions = array<i32: 1>} : vector<256x128xi32>
      %c32_i32 = arith.constant 32 : i32
      %22 = vector.broadcast %c32_i32 : i32 to vector<256x128xi32>
      %23 = arith.cmpi slt, %21, %22 : vector<256x128xi32>
      %cst_13 = arith.constant 0.000000e+00 : f32
      %24 = vector.broadcast %cst_13 : f32 to vector<256x128xf32>
      %25 = arith.select %23, %20, %24 : vector<256x128xi1>, vector<256x128xf32>
      %cst_14 = arith.constant dense<0.000000e+00> : vector<256xf32>
      %26 = vector.multi_reduction <add>, %25, %cst_14 [1] : vector<256x128xf32> to vector<256xf32>
      %27 = vector.shape_cast %26 : vector<256xf32> to vector<256x1xf32>
      %cst_15 = arith.constant 3.125000e-02 : f32
      %28 = vector.broadcast %cst_15 : f32 to vector<256x1xf32>
      %29 = arith.mulf %27, %28 : vector<256x1xf32>
      %30 = vector.broadcast %29 : vector<256x1xf32> to vector<256x128xf32>
      %31 = arith.subf %25, %30 : vector<256x128xf32>
      %cst_16 = arith.constant 0.000000e+00 : f32
      %32 = vector.broadcast %cst_16 : f32 to vector<256x128xf32>
      %33 = arith.select %23, %31, %32 : vector<256x128xi1>, vector<256x128xf32>
      %34 = arith.mulf %33, %33 : vector<256x128xf32>
      %cst_17 = arith.constant dense<0.000000e+00> : vector<256xf32>
      %35 = vector.multi_reduction <add>, %34, %cst_17 [1] : vector<256x128xf32> to vector<256xf32>
      %36 = vector.shape_cast %35 : vector<256xf32> to vector<256x1xf32>
      %cst_18 = arith.constant 3.125000e-02 : f32
      %37 = vector.broadcast %cst_18 : f32 to vector<256x1xf32>
      %38 = arith.mulf %36, %37 : vector<256x1xf32>
      %cst_19 = arith.constant 9.99999974E-6 : f32
      %39 = vector.broadcast %cst_19 : f32 to vector<256x1xf32>
      %40 = arith.addf %38, %39 : vector<256x1xf32>
      %41 = math.rsqrt %40 : vector<256x1xf32>
      %42 = vector.broadcast %41 : vector<256x1xf32> to vector<256x128xf32>
      %43 = arith.mulf %33, %42 : vector<256x128xf32>
      %c0_20 = arith.constant 0 : index
      %c0_21 = arith.constant 0 : index
      %44 = vector.load %arg10[%c0_20, %c0_21] : memref<1x128xf32, #tpu.memory_space<vmem>>, vector<1x128xf32>
      %45 = vector.broadcast %44 : vector<1x128xf32> to vector<256x128xf32>
      %46 = arith.mulf %43, %45 : vector<256x128xf32>
      %c0_22 = arith.constant 0 : index
      %c0_23 = arith.constant 0 : index
      %47 = vector.load %arg11[%c0_22, %c0_23] : memref<1x128xf32, #tpu.memory_space<vmem>>, vector<1x128xf32>
      %48 = vector.broadcast %47 : vector<1x128xf32> to vector<256x128xf32>
      %49 = arith.addf %46, %48 : vector<256x128xf32>
      %cst_24 = arith.constant 0.000000e+00 : f32
      %50 = vector.broadcast %cst_24 : f32 to vector<256x128xf32>
      %51 = arith.maximumf %49, %50 : vector<256x128xf32>
      %c0_25 = arith.constant 0 : index
      %c0_26 = arith.constant 0 : index
      %52 = vector.load %arg12[%c0_25, %c0_26] : memref<256x128xf32, #tpu.memory_space<vmem>>, vector<256x128xf32>
      tpu.vector_store %arg12[%c0_25, %c0_26], %51 {strides = array<i32>} : memref<256x128xf32, #tpu.memory_space<vmem>>, vector<256x128xf32>,
    } else {
    }
    return
  }
  func.func @transform_0(%arg0: i32, %arg1: i32, %arg2: memref<3x3xi32, #tpu.memory_space<smem>>, %arg3: memref<3xi32, #tpu.memory_space<smem>>) -> (i32, i32) {
    %0 = arith.index_cast %arg0 : i32 to index
    %1 = arith.index_cast %arg1 : i32 to index
    %2 = memref.load %arg2[%0, %1] : memref<3x3xi32, #tpu.memory_space<smem>>
    %c0_i32 = arith.constant 0 : i32
    return %arg0, %2 : i32, i32
  }
  func.func @transform_1(%arg0: i32, %arg1: i32, %arg2: memref<3x3xi32, #tpu.memory_space<smem>>, %arg3: memref<3xi32, #tpu.memory_space<smem>>) -> (i32, i32) {
    %0 = arith.index_cast %arg0 : i32 to index
    %1 = arith.index_cast %arg1 : i32 to index
    %2 = memref.load %arg2[%0, %1] : memref<3x3xi32, #tpu.memory_space<smem>>
    %c0_i32 = arith.constant 0 : i32
    %c0_i32_0 = arith.constant 0 : i32
    return %2, %c0_i32 : i32, i32
  }
  func.func @transform_2(%arg0: i32, %arg1: i32, %arg2: memref<3x3xi32, #tpu.memory_space<smem>>, %arg3: memref<3xi32, #tpu.memory_space<smem>>) -> (i32, i32) {
    %c0_i32 = arith.constant 0 : i32
    %c0_i32_0 = arith.constant 0 : i32
    return %arg0, %c0_i32 : i32, i32
  }
  func.func @transform_3(%arg0: i32, %arg1: i32, %arg2: memref<3x3xi32, #tpu.memory_space<smem>>, %arg3: memref<3xi32, #tpu.memory_space<smem>>) -> (i32, i32) {
    %c0_i32 = arith.constant 0 : i32
    %c0_i32_0 = arith.constant 0 : i32
    %c0_i32_1 = arith.constant 0 : i32
    return %c0_i32, %c0_i32_0 : i32, i32
  }
  func.func @transform_4(%arg0: i32, %arg1: i32, %arg2: memref<3x3xi32, #tpu.memory_space<smem>>, %arg3: memref<3xi32, #tpu.memory_space<smem>>) -> (i32, i32) {
    %c0_i32 = arith.constant 0 : i32
    %c0_i32_0 = arith.constant 0 : i32
    %c0_i32_1 = arith.constant 0 : i32
    return %c0_i32, %c0_i32_0 : i32, i32
  }
  func.func @transform_5(%arg0: i32, %arg1: i32, %arg2: memref<3x3xi32, #tpu.memory_space<smem>>, %arg3: memref<3xi32, #tpu.memory_space<smem>>) -> (i32, i32) {
    %c0_i32 = arith.constant 0 : i32
    %c0_i32_0 = arith.constant 0 : i32
    %c0_i32_1 = arith.constant 0 : i32
    return %c0_i32, %c0_i32_0 : i32, i32
  }
  func.func @transform_6(%arg0: i32, %arg1: i32, %arg2: memref<3x3xi32, #tpu.memory_space<smem>>, %arg3: memref<3xi32, #tpu.memory_space<smem>>) -> (i32, i32) {
    %c0_i32 = arith.constant 0 : i32
    %c0_i32_0 = arith.constant 0 : i32
    %c0_i32_1 = arith.constant 0 : i32
    return %c0_i32, %c0_i32_0 : i32, i32
  }
  func.func @transform_7(%arg0: i32, %arg1: i32, %arg2: memref<3x3xi32, #tpu.memory_space<smem>>, %arg3: memref<3xi32, #tpu.memory_space<smem>>) -> (i32, i32) {
    %c0_i32 = arith.constant 0 : i32
    %c0_i32_0 = arith.constant 0 : i32
    %c0_i32_1 = arith.constant 0 : i32
    return %c0_i32, %c0_i32_0 : i32, i32
  }
  func.func @transform_8(%arg0: i32, %arg1: i32, %arg2: memref<3x3xi32, #tpu.memory_space<smem>>, %arg3: memref<3xi32, #tpu.memory_space<smem>>) -> (i32, i32) {
    %c0_i32 = arith.constant 0 : i32
    %c0_i32_0 = arith.constant 0 : i32
    return %arg0, %c0_i32 : i32, i32
  }
}

</mosaic_0001>

<bundles_post_ra>
// kernel: tpu_custom_call.1
= control target key start
LH: loop header
LB: loop body
LE: loop exit
PB: predicated region body
PF: predicated region fallthrough
CT: control target
= control target key end

     0   :  { %s5193_s0 = inlined_call_operand.hbm [shape: s32[3,3], index: 0, kind: input, shape index: {}]   ;;  %s5194_s2 = inlined_call_operand.hbm [shape: bf16[768,768], index: 2, kind: input, shape index: {}]   ;;  %s5195_s3 = inlined_call_operand.hbm [shape: bf16[768,128], index: 3, kind: input, shape index: {}]   ;;  %s5196_s4 = inlined_call_operand.hbm [shape: f32[768,128], index: 4, kind: input, shape index: {}]   ;;  %s5197_s5 = inlined_call_operand.hbm [shape: f32[128,128], index: 5, kind: input, shape index: {}]   ;;  %s5198_s6 = inlined_call_operand.hbm [shape: f32[128,128], index: 6, kind: input, shape index: {}]   ;;  %s5199_s7 = inlined_call_operand.hbm [shape: f32[1,128], index: 7, kind: input, shape index: {}]   ;;  %s5200_s8 = inlined_call_operand.hbm [shape: f32[1,128], index: 8, kind: input, shape index: {}]   ;;  %s5201_s9 = inlined_call_operand.hbm [shape: f32[1,128], index: 9, kind: input, shape index: {}]   ;;  %s5202_s10 = inlined_call_operand.hbm [shape: f32[768,128], index: 10, kind: output, shape index: {}]   ;;  %s5203_s1 = inlined_call_operand.hbm [shape: s32[3], index: 1, kind: input, shape index: {}]  }
   0x1   :  { %5235 = sst [smem:[#allocation47_spill]] %s5194_s2  ;;  %s3435_s15 = scalar_lea.hbm %s5193_s0, 64 }
   0x2   :  { %5236 = sst [smem:[#allocation48_spill]] %s5195_s3  ;;  %p3436_p0 = scmp.ne.s32.totalorder %s5193_s0, %s3435_s15 }
   0x3   :  { %5237 = sst [smem:[#allocation49_spill]] %s5196_s4  ;;  %p3439_p1 = scmp.lt.u32.totalorder %s3435_s15, %s5193_s0 }
   0x4   :  { %5238 = sst [smem:[#allocation50_spill]] %s5197_s5 }
   0x5   :  { %5239 = sst [smem:[#allocation51_spill]] %s5198_s6  ;;  %p3441_p2 = pnand %p3439_p1, %p3436_p0 }
   0x6   :  { %5240 = sst [smem:[#allocation52_spill]] %s5199_s7 }
   0x7   :  { %5241 = sst [smem:[#allocation53_spill]] %s5200_s8 }
   0x8   :  { %5242 = sst [smem:[#allocation54_spill]] %s5201_s9 }
   0x9   :  { %5243 = sst [smem:[#allocation55_spill]] %s5202_s10 }
   0xa   :  { %3444 = shalt.err (!%p3441_p2)  }
   0xb   :  { %s3855_s20 = smov [#allocation4]   ;;  %s3445_s25 = scalar_lea.hbm %s5203_s1, 16 }
   0xc   :  { %16 = dma.hbm_to_smem %s5193_s0, 64, %s3855_s20, [#allocation3] }
   0xd   :  { %p3446_p3 = scmp.ne.s32.totalorder %s5203_s1, %s3445_s25  ;;  %p3449_p4 = scmp.lt.u32.totalorder %s3445_s25, %s5203_s1 }
   0xf   :  { %p3451_p5 = pnand %p3449_p4, %p3446_p3 }
  0x11   :  { %3454 = shalt.err (!%p3451_p5)  }
  0x12   :  { %s3856_s30 = smov [#allocation5]  }
  0x13   :  { %18 = dma.hbm_to_smem %s5203_s1, 16, %s3856_s30, [#allocation3] }
  0x14   :  { %3769 = dma.done.wait [#allocation3], 80 }
  0x15   :  { %3770 = vsyncadd [#allocation3], 4294967216 }
  0x16   :  { %20 = sfence }
  0x17   :  { %21 = vsyncpa [#allocation7], 0 }
  0x18   :  { %23 = vsyncpa [#allocation7 + $0x1], 0 }
  0x19   :  { %24 = vsyncpa [#allocation10], 0 }
  0x1a   :  { %26 = vsyncpa [#allocation10 + $0x1], 0 }
  0x1b   :  { %27 = vsyncpa [#allocation13], 0 }
  0x1c   :  { %28 = vsyncpa [#allocation16], 0 }
  0x1d   :  { %29 = vsyncpa [#allocation19], 0 }
  0x1e   :  { %30 = vsyncpa [#allocation8], 0 }
  0x1f   :  { %32 = vsyncpa [#allocation8 + $0x1], 0  ;;  %s3953_s0 = smov 0   ;;  %s3955_s13 = smov 0  }
  0x20   :  { %s3957_s14 = smov 0   ;;  %s3959_s15 = smov 0  }
  0x21   :  { %s3961_s1 = smov 0   ;;  %s3963_s16 = smov 0  }
  0x22   :  { %s3965_s17 = smov 0   ;;  %s3967_s18 = smov 0  }
  0x23   :  { %s3969_s19 = smov 0   ;;  %s3971_s20 = smov 0  }
  0x24   :  { %s3973_s21 = smov 0   ;;  %s3975_s22 = smov 0  }
  0x25   :  { %s3977_s23 = smov 0   ;;  %s3979_s24 = smov 0  }
  0x26 LB: > { %5244 = sst [smem:[#allocation33_spill]] %s3801_s0  ;;  %s4024_s25 = sadd.s32 4294967295, %s3853_s24   ;;  %s3853_s24 = sphi %s3979_s24, %s38_s24   ;;  %s3849_s23 = sphi %s3977_s23, %s5341_s23   ;;  %s3845_s22 = sphi %s3975_s22, %s5332_s22   ;;  %s3841_s21 = sphi %s3973_s21, %s5340_s21   ;;  %s3837_s20 = sphi %s3971_s20, %s5331_s20   ;;  %s3833_s19 = sphi %s3969_s19, %s5339_s19   ;;  %s3829_s18 = sphi %s3967_s18, %s5338_s18   ;;  %s3825_s17 = sphi %s3965_s17, %s5337_s17   ;;  %s3821_s16 = sphi %s3963_s16, %s5336_s16   ;;  %s3817_s1 = sphi %s3961_s1, %s5335_s1   ;;  %s3813_s15 = sphi %s3959_s15, %s5329_s15   ;;  %s3809_s14 = sphi %s3957_s14, %s5334_s14   ;;  %s3805_s13 = sphi %s3955_s13, %s5328_s13   ;;  %s3801_s0 = sphi %s3953_s0, %s5327_s0  }
  0x27   : > { %5245 = sst [smem:[#allocation34_spill]] %s3805_s13  ;;  %p2529_p6 = scmp.ge.s32.totalorder %s3853_s24, 1 }
  0x28   : > { %5246 = sst [smem:[#allocation35_spill]] %s3809_s14  ;;  %p5207_p7 = scmp.eq.s32.totalorder %s4024_s25, 0 }
  0x29   : > { %5247 = sst [smem:[#allocation36_spill]] %s3817_s1  ;;  %p298_p8 = scmp.lt.s32.totalorder %s3853_s24, 10 }
  0x2a   : > { %5248 = sst [smem:[#allocation37_spill]] %s3825_s17  ;;  %s3857_s27 = smov [#allocation12]  }
  0x2b   : > { %5249 = sst [smem:[#allocation38_spill]] %s3837_s20  ;;  %p4029_p9 = pnand %p2529_p6, %p298_p8 }
  0x2c   : > { %5250 = sst [smem:[#allocation39_spill]] %s3841_s21  ;;  %s310_s28 = sshll.u32 %s3857_s27, 4  ;;  %s311_s28 = int_to_ptr.vmem [resolvable:$true] %s310_s28 }
  0x2d   : > { %5251 = sst [smem:[#allocation40_spill]] %s3845_s22  ;;  %p3134_p10 = pneg %p4029_p9 }
  0x2e   : > { %5252 = sst [smem:[#allocation41_spill]] %s4024_s25  ;;  %s3858_s30 = smov [#allocation15]  }
  0x2f   : > { %s5253_s26 = scalar_select %p4029_p9, 1, 0 }
  0x30   : > { %p4037_p11 = pnand %p3134_p10, %p5207_p7  ;;  %s337_s11 = sshll.u32 %s3858_s30, 4  ;;  %s4041_s11 = int_to_ptr.vmem [resolvable:$true] %s337_s11 }
  0x31   : > { %5254 = sst [smem:[#allocation42_spill]] %s5253_s26  ;;  %s5256_s5 = sld [smem:[#allocation50_spill]] }
  0x32   : > { %s5255_s29 = scalar_select %p4037_p11, 1, 0 }
  0x33   : > { %p4051_p13 = pneg %p4037_p11 }
  0x37   : > { %s3455_s21 = scalar_lea.hbm %s5256_s5, 2048 }
  0x38   : > { %p3456_p12 = scmp.ne.s32.totalorder %s5256_s5, %s3455_s21  ;;  %p3462_p2 = scmp.lt.u32.totalorder %s3455_s21, %s5256_s5 }
  0x3a   : > { %p3458_p0 = pnand %p4051_p13, %p3456_p12 }
  0x3c   : > { %p3459_p1 = pneg %p3458_p0 }
  0x3e   : > { %p3464_p3 = pnand %p3462_p2, %p3459_p1 }
  0x40   : > { %3467 = shalt.err (!%p3464_p3)
}
  0x41   : > { %s3468_s10 = scalar_lea.vmem %s311_s28, 2048  ;;  %p3476_p8 = scmp.lt.s32.totalorder %s311_s28, %s311_s28 }
  0x42   : > { %p3469_p4 = scmp.ne.s32.totalorder %s311_s28, %s3468_s10  ;;  %p3477_p10 = scmp.lt.s32.totalorder %s3468_s10, %s3468_s10 }
  0x44   : > { %p3471_p5 = pnand %p3469_p4, %p4051_p13  ;;  %p3478_p7 = por %p3477_p10, %p3476_p8 }
  0x46   : > { %p3472_p6 = pneg %p3471_p5 }
  0x48   : > { %p3479_p9 = pnand %p3478_p7, %p3472_p6 }
  0x4a   : > { %3482 = shalt.err (!%p3479_p9)
}
  0x4b   : > { %s5214_s4 = smov 128   ;;  %s5216_s20 = smov 8  }
  0x4c   : > { %3137 = dma.hbm_to_vmem [thread:$0]  (!%p4037_p11), %s5256_s5, 2048, %s311_s28, [#allocation13], %s5214_s4, %s5214_s4, %s5216_s20  }
  0x4d   : > { %s5258_s7 = sld [smem:[#allocation52_spill]] }
  0x53   : > { %s3483_s2 = scalar_lea.hbm %s5258_s7, 16 }
  0x54   : > { %p3484_p7 = scmp.ne.s32.totalorder %s5258_s7, %s3483_s2  ;;  %p3490_p0 = scmp.lt.u32.totalorder %s3483_s2, %s5258_s7 }
  0x56   : > { %p3486_p9 = pnand %p3484_p7, %p4051_p13 }
  0x58   : > { %p3487_p12 = pneg %p3486_p9 }
  0x5a   : > { %p3492_p1 = pnand %p3490_p0, %p3487_p12 }
  0x5c   : > { %3495 = shalt.err (!%p3492_p1)
}
  0x5d   : > { %s3496_s28 = scalar_lea.vmem %s4041_s11, 16  ;;  %s3503_s0 = scalar_lea.vmem %s4041_s11, 32 }
  0x5e   : > { %p3497_p2 = scmp.ne.s32.totalorder %s4041_s11, %s3496_s28  ;;  %p3504_p5 = scmp.lt.s32.totalorder %s4041_s11, %s4041_s11 }
  0x5f   : > { %p3505_p6 = scmp.lt.s32.totalorder %s3503_s0, %s3496_s28 }
  0x60   : > { %p3499_p3 = pnand %p3497_p2, %p4051_p13 }
  0x61   : > { %p3506_p8 = por %p3505_p6, %p3504_p5 }
  0x62   : > { %p3500_p4 = pneg %p3499_p3 }
  0x64   : > { %p3507_p10 = pnand %p3506_p8, %p3500_p4 }
  0x66   : > { %3510 = shalt.err (!%p3507_p10)
}
  0x67   : > { %3143 = dma.hbm_to_vmem [thread:$0]  (!%p4037_p11), %s5258_s7, 16, %s4041_s11, [#allocation16]  }
  0x68   : > { %s47_s14 = sadd.s32 1, %s3845_s22  ;;  %s50_s21 = sadd.s32 1, %s3849_s23 }
  0x69   : > { %p48_p7 = scmp.ge.s32.totalorder %s47_s14, 3  ;;  %s54_s26 = sshra.s32 %s3845_s22, 7 }
  0x6a   : > { %s56_s12 = sadd.s32 %s3849_s23, %s54_s26  ;;  %s59_s30 = sand.u32 127, %s3845_s22 }
  0x6b   : > { %s5343_s14 = smov (%p48_p7, %s47_s14), 0  ;;  %s5345_s21 = smov (!%p48_p7, %s50_s21), %s3849_s23 }
  0x6c   : > { %5259 = sst [smem:[#allocation43_spill]] %s5343_s14  ;;  %s2525_s10 = sshll.u32 %s56_s12, 7 }
  0x6d   : > { %s62_s28 = sshra.s32 %s5343_s14, 7  ;;  %p52_p9 = scmp.ge.s32.totalorder %s5345_s21, 3 }
  0x6e   : > { %s4103_s11 = sadd.s32 %s2525_s10, %s59_s30  ;;  %s67_s2 = sand.u32 127, %s5343_s14 }
  0x6f   : > { %s4106_s0 = sld [smem:[#allocation4 + %s4103_s11]]  ;;  %s5347_s21 = smov (%p52_p9, %s5345_s21), 0 }
  0x70   : > { %5260 = sst [smem:[#allocation44_spill]] %s5347_s21  ;;  %p5227_p12 = scmp.eq.s32.totalorder %s3853_s24, 0 }
  0x71   : > { %s105_s13 = sld [smem:[#allocation4 + %s4103_s11]]  ;;  %s64_s26 = sadd.s32 %s62_s28, %s5347_s21 }
  0x72   : > { %s117_s12 = sadd.s32 1, %s3821_s16  ;;  %s2526_s4 = sshll.u32 %s64_s26, 7 }
  0x73   : > { %p124_p0 = scmp.ne.s32.totalorder %s3821_s16, %s3817_s1  ;;  %s68_s30 = sadd.s32 %s2526_s4, %s67_s2 }
  0x74   : > { %p130_p1 = scmp.ne.s32.totalorder %s3817_s1, %s3813_s15  ;;  %s4119_s10 = sld [smem:[#allocation4 + %s68_s30]] }
  0x75   : > { %s113_s20 = sld [smem:[#allocation4 + %s68_s30]]  ;;  %p4123_p2 = por %p124_p0, %p5227_p12 }
  0x76   : > { %p5262_p3 = scmp.eq.s32.totalorder %s4024_s25, 0  ;;  %p5226_p5 = scmp.lt.s32.totalorder %s3853_s24, 9 }
  0x77   : > { %s404_s4 = sand.u32 1, %s3821_s16   ;;  %s3861_s1 = smov [#allocation14]  }
  0x78   : > { %p4129_p4 = por %p130_p1, %p5262_p3  ;;  %s2542_s2 = sshll.u32 %s404_s4, 7 }
  0x79   : > { %p4140_p6 = pnand %p5226_p5, %p4123_p2  ;;  %s406_s7 = scalar_lea.vmem [#allocation9], %s2542_s2 }
  0x7a   : > { %s5263_s28 = scalar_select %p4129_p4, 1, 0 }
  0x7b   : > { %s5265_s26 = scalar_select %p4140_p6, 1, 0 }
  0x7c   : > { %5264 = sst [smem:[#allocation45_spill]] %s5263_s28  ;;  %s114_s30 = ssub.s32 %s105_s13, %s113_s20 }
  0x7d   : > { %s421_s14 = sshll.u32 %s406_s7, 4  ;;  %p115_p8 = scmp.eq.s32.totalorder %s114_s30, 0  ;;  %s4144_s14 = int_to_ptr.vmem [resolvable:$true] %s421_s14 }
  0x7e   : > { %s3115_s22 = scalar_select %p4123_p2, [#allocation4], [#allocation22] }
  0x7f   : > { %s4149_s28 = scalar_select %p115_p8, %s3821_s16, %s117_s12  }
  0x80   : > { %s3116_s15 = scalar_select %p4123_p2, %s4103_s11, 0 }
  0x81   : > { %5266 = sst [smem:[#allocation46_spill]] %s4149_s28  ;;  %s5349_s22 = smov (!%p5226_p5, %s3115_s22), [#allocation24] }
  0x82   : > { %s5351_s15 = smov (!%p5226_p5, %s3116_s15), 0  ;;  %s323_s20 = sshll.u32 %s3861_s1, 4  ;;  %s324_s20 = int_to_ptr.vmem [resolvable:$true] %s323_s20 }
  0x83   : > { %s4158_s4 = sld [smem:[%s5349_s22 + %s5351_s15]]  ;;  %s3862_s7 = smov [#allocation17]  }
  0x84   : > { %s348_s13 = sshll.u32 %s3862_s7, 4  ;;  %s5267_s6 = sld [smem:[#allocation51_spill]]  ;;  %s349_s13 = int_to_ptr.vmem [resolvable:$true] %s348_s13 }
  0x8a   : > { %s3511_s25 = scalar_lea.hbm %s5267_s6, 2048 }
  0x8b   : > { %p3512_p10 = scmp.ne.s32.totalorder %s5267_s6, %s3511_s25  ;;  %p3518_p0 = scmp.lt.u32.totalorder %s3511_s25, %s5267_s6 }
  0x8d   : > { %p3514_p7 = pnand %p3512_p10, %p4051_p13 }
  0x8f   : > { %p3515_p9 = pneg %p3514_p7 }
  0x91   : > { %p3520_p1 = pnand %p3518_p0, %p3515_p9 }
  0x93   : > { %3523 = shalt.err (!%p3520_p1)
}
  0x94   : > { %s3524_s1 = scalar_lea.vmem %s324_s20, 2048  ;;  %p3532_p5 = scmp.lt.s32.totalorder %s324_s20, %s324_s20 }
  0x95   : > { %p3525_p2 = scmp.ne.s32.totalorder %s324_s20, %s3524_s1  ;;  %p3533_p12 = scmp.lt.s32.totalorder %s3524_s1, %s3524_s1 }
  0x97   : > { %p3527_p3 = pnand %p3525_p2, %p4051_p13  ;;  %p3534_p4 = por %p3533_p12, %p3532_p5 }
  0x99   : > { %p3528_p8 = pneg %p3527_p3 }
  0x9b   : > { %p3535_p6 = pnand %p3534_p4, %p3528_p8 }
  0x9d   : > { %3538 = shalt.err (!%p3535_p6)
}
  0x9e   : > { %s5268_s17 = smov 8   ;;  %s5269_s22 = smov 128  }
  0x9f   : > { %3140 = dma.hbm_to_vmem [thread:$0]  (!%p4037_p11), %s5267_s6, 2048, %s324_s20, [#allocation13], %s5269_s22, %s5269_s22, %s5268_s17  }
  0xa0   : > { %s5270_s8 = sld [smem:[#allocation53_spill]] }
  0xa6   : > { %s3539_s2 = scalar_lea.hbm %s5270_s8, 16 }
  0xa7   : > { %p3540_p12 = scmp.ne.s32.totalorder %s5270_s8, %s3539_s2  ;;  %p3546_p6 = scmp.lt.u32.totalorder %s3539_s2, %s5270_s8 }
  0xa9   : > { %p3542_p4 = pnand %p3540_p12, %p4051_p13 }
  0xab   : > { %p3543_p5 = pneg %p3542_p4 }
  0xad   : > { %p3548_p10 = pnand %p3546_p6, %p3543_p5 }
  0xaf   : > { %3551 = shalt.err (!%p3548_p10)
}
  0xb0   : > { %s3552_s28 = scalar_lea.vmem %s349_s13, 16  ;;  %s3559_s20 = scalar_lea.vmem %s349_s13, 32 }
  0xb1   : > { %p3553_p7 = scmp.ne.s32.totalorder %s349_s13, %s3552_s28  ;;  %p3560_p1 = scmp.lt.s32.totalorder %s349_s13, %s349_s13 }
  0xb2   : > { %p3561_p2 = scmp.lt.s32.totalorder %s3559_s20, %s3552_s28 }
  0xb3   : > { %p3555_p9 = pnand %p3553_p7, %p4051_p13 }
  0xb4   : > { %p3562_p3 = por %p3561_p2, %p3560_p1 }
  0xb5   : > { %p3556_p0 = pneg %p3555_p9 }
  0xb7   : > { %p3563_p8 = pnand %p3562_p3, %p3556_p0 }
  0xb9   : > { %3566 = shalt.err (!%p3563_p8)
}
  0xba   : > { %3146 = dma.hbm_to_vmem [thread:$0]  (!%p4037_p11), %s5270_s8, 16, %s349_s13, [#allocation16]  }
  0xbb   : > { %s2618_s7 = sshll.u32 %s4158_s4, 11  ;;  %s3863_s2 = smov [#allocation18]  }
  0xbc   : > { %s359_s30 = sshll.u32 %s3863_s2, 4  ;;  %s5271_s3 = sld [smem:[#allocation48_spill]]  ;;  %s4205_s30 = int_to_ptr.vmem [resolvable:$true] %s359_s30 }
  0xbd   : > { %s5272_s28 = sand.u32 1, %s3853_s24   ;;  %p5273_p4 = scmp.ne.s32.totalorder %s5265_s26, 0 }
  0xbe   : > { %s4209_s20 = scalar_lea.sflag [#allocation10], %s5272_s28 }
  0xbf   : > { %p3569_p5 = pneg %p5273_p4 }
  0xc2   : > { %s4203_s1 = scalar_lea.hbm %s5271_s3, %s2618_s7  ;;  %s3572_s15 = scalar_lea.hbm %s5271_s3, 6144 }
  0xc3   : > { %s3567_s25 = scalar_lea.hbm %s4203_s1, 2048  ;;  %p3573_p7 = scmp.lt.u32.totalorder %s4203_s1, %s5271_s3 }
  0xc4   : > { %p3568_p12 = scmp.ne.s32.totalorder %s4203_s1, %s3567_s25  ;;  %p3574_p9 = scmp.lt.u32.totalorder %s3572_s15, %s3567_s25 }
  0xc5   : > { %p3576_p1 = scmp.lt.u32.totalorder %s3567_s25, %s4203_s1 }
  0xc6   : > { %p3570_p6 = pnand %p3569_p5, %p3568_p12  ;;  %p3575_p0 = por %p3574_p9, %p3573_p7 }
  0xc8   : > { %p3571_p10 = pneg %p3570_p6  ;;  %p3577_p2 = por %p3576_p1, %p3575_p0 }
  0xca   : > { %p3578_p3 = pnand %p3577_p2, %p3571_p10 }
  0xcc   : > { %3581 = shalt.err (!%p3578_p3)
}
  0xcd   : > { %s3582_s12 = scalar_lea.vmem %s4144_s14, 2048  ;;  %s3864_s5 = smov [#allocation9]  }
  0xce   : > { %p3583_p8 = scmp.ne.s32.totalorder %s4144_s14, %s3582_s12  ;;  %s3587_s28 = sshll.u32 %s3864_s5, 4  ;;  %s3588_s28 = int_to_ptr.vmem [resolvable:$false] %s3587_s28 }
  0xcf   : > { %s3589_s4 = scalar_lea.vmem %s3588_s28, 4096  ;;  %p3590_p11 = scmp.lt.s32.totalorder %s4144_s14, %s3588_s28 }
  0xd0   : > { %p3585_p12 = pnand %p3583_p8, %p3569_p5  ;;  %p3591_p7 = scmp.lt.s32.totalorder %s3589_s4, %s3582_s12 }
  0xd2   : > { %p3586_p6 = pneg %p3585_p12  ;;  %p3592_p9 = por %p3591_p7, %p3590_p11 }
  0xd4   : > { %p3593_p0 = pnand %p3592_p9, %p3586_p6 }
  0xd6   : > { %3596 = shalt.err (!%p3593_p0)
}
  0xd7   : > { %s3865_s25 = smov 64   ;;  %s3866_s13 = smov 4  }
  0xd8   : > { %3160 = dma.hbm_to_vmem [thread:$0]  (!%p5273_p4), %s4203_s1, 2048, %s4144_s14, %s4209_s20, %s3865_s25, %s3865_s25, %s3866_s13  }
  0xd9   : > { %s5274_s9 = sld [smem:[#allocation54_spill]] }
  0xdf   : > { %s3597_s2 = scalar_lea.hbm %s5274_s9, 16 }
  0xe0   : > { %p3598_p5 = scmp.ne.s32.totalorder %s5274_s9, %s3597_s2  ;;  %p3604_p1 = scmp.lt.u32.totalorder %s3597_s2, %s5274_s9 }
  0xe2   : > { %p3600_p11 = pnand %p3598_p5, %p4051_p13 }
  0xe4   : > { %p3601_p10 = pneg %p3600_p11 }
  0xe6   : > { %p3606_p2 = pnand %p3604_p1, %p3601_p10 }
  0xe8   : > { %3609 = shalt.err (!%p3606_p2)
}
  0xe9   : > { %s3610_s14 = scalar_lea.vmem %s4205_s30, 16  ;;  %s3617_s3 = scalar_lea.vmem %s4205_s30, 32 }
  0xea   : > { %p3611_p4 = scmp.ne.s32.totalorder %s4205_s30, %s3610_s14  ;;  %p3618_p12 = scmp.lt.s32.totalorder %s4205_s30, %s4205_s30 }
  0xeb   : > { %p3619_p6 = scmp.lt.s32.totalorder %s3617_s3, %s3610_s14 }
  0xec   : > { %p3613_p3 = pnand %p3611_p4, %p4051_p13 }
  0xed   : > { %p3620_p7 = por %p3619_p6, %p3618_p12 }
  0xee   : > { %p3614_p8 = pneg %p3613_p3 }
  0xf0   : > { %p3621_p9 = pnand %p3620_p7, %p3614_p8 }
  0xf2   : > { %3624 = shalt.err (!%p3621_p9)
}
  0xf3   : > { %p5275_p0 = scmp.ne.s32.totalorder %s5255_s29, 0  ;;  %s5276_s27 = sld [smem:[#allocation37_spill]] }
  0xf4   : > { %s5277_s4 = sld [smem:[#allocation41_spill]]  ;;  %s4263_s29 = ssub.s32 %s3849_s23, %s5347_s21 }
  0xf5   : > { %3149 = dma.hbm_to_vmem [thread:$0]  (!%p5275_p0), %s5274_s9, 16, %s4205_s30, [#allocation19]  }
  0xf6   : > { %s71_s25 = ssub.s32 %s4106_s0, %s4119_s10  ;;  %s75_s15 = sadd.s32 1, %s3833_s19 }
  0xf7   : > { %s72_s13 = sor.u32 %s71_s25, %s4263_s29  ;;  %p82_p5 = scmp.ne.s32.totalorder %s3833_s19, %s3829_s18 }
  0xf8   : > { %p73_p13 = scmp.eq.s32.totalorder %s72_s13, 0  ;;  %s370_s7 = sand.u32 1, %s3833_s19  }
  0xf9   : > { %p88_p11 = scmp.ne.s32.totalorder %s3829_s18, %s5276_s27  ;;  %p5278_p10 = scmp.eq.s32.totalorder %s3853_s24, 0 }
  0xfa   : > { %s4275_s2 = scalar_select %p73_p13, %s3833_s19, %s75_s15  }
  0xfb   : > { %p84_p1 = por %p5278_p10, %p82_p5  ;;  %p5279_p2 = scmp.eq.s32.totalorder %s5277_s4, 0 }
  0xfc   : > { %s5280_s30 = sld [smem:[#allocation35_spill]]  ;;  %s2536_s0 = sshll.u32 %s370_s7, 8 }
  0xfd   : > { %p4281_p4 = por %p5279_p2, %p88_p11  ;;  %s5282_s10 = sld [smem:[#allocation34_spill]] }
  0xfe   : > { %s3101_s12 = smul.u32 192, %s3849_s23  ;;  %s5283_s14 = sld [smem:[#allocation33_spill]] }
  0xff   : > { %s5281_s5 = scalar_select %p4281_p4, 1, 0 }
 0x100   : > { %s3112_s28 = scalar_select %p84_p1, [#allocation4], [#allocation21] }
 0x101   : > { %s5353_s11 = smov (!%p84_p1, %s4103_s11), 0  ;;  %p5284_p3 = scmp.lt.s32.totalorder %s3853_s24, 9 }
 0x102   : > { %s374_s3 = scalar_lea.vmem [#allocation6], %s2536_s0  ;;  %s2524_s25 = sadd.s32 4294967294, %s3853_s24  }
 0x103   : > { %s5355_s28 = smov (!%p5284_p3, %s3112_s28), [#allocation23]  ;;  %p5285_p8 = pmov %p5284_p3 }
 0x104   : > { %s392_s26 = sshll.u32 %s374_s3, 4  ;;  %p5286_p12 = pmov %p5284_p3  ;;  %s4297_s26 = int_to_ptr.vmem [resolvable:$true] %s392_s26 }
 0x105   : > { %s5357_s11 = smov (!%p5285_p8, %s5353_s11), 0  ;;  %s143_s15 = sadd.s32 1, %s5280_s30 }
 0x106   : > { %p4293_p6 = pnand %p5286_p12, %p84_p1  ;;  %s382_s27 = sld [smem:[%s5355_s28 + %s5357_s11]] }
 0x107   : > { %p5232_p9 = scmp.ne.s32.totalorder %s5280_s30, %s5282_s10  ;;  %s5288_s9 = sld [smem:[#allocation47_spill]] }
 0x108   : > { %p5289_p13 = pmov %p5278_p10  ;;  %s4320_s28 = scalar_lea.sflag [#allocation7], %s370_s7 }
 0x109   : > { %p3627_p10 = pneg %p4293_p6 }
 0x10a   : > { %p4316_p5 = por %p5232_p9, %p5289_p13 }
 0x10c   : > { %s2539_s13 = sshll.u32 %s382_s27, 1 }
 0x10d   : > { %s389_s6 = sadd.s32 %s3101_s12, %s2539_s13  ;;  %s3630_s27 = scalar_lea.hbm %s5288_s9, 36864 }
 0x10e   : > { %s2541_s8 = sshll.u32 %s389_s6, 6 }
 0x10f   : > { %s4309_s21 = scalar_lea.hbm %s5288_s9, %s2541_s8 }
 0x110   : > { %s3625_s12 = scalar_lea.hbm %s4309_s21, 4096  ;;  %p3631_p3 = scmp.lt.u32.totalorder %s4309_s21, %s5288_s9 }
 0x111   : > { %p3626_p11 = scmp.ne.s32.totalorder %s4309_s21, %s3625_s12  ;;  %p3632_p8 = scmp.lt.u32.totalorder %s3630_s27, %s3625_s12 }
 0x112   : > { %p3634_p13 = scmp.lt.u32.totalorder %s3625_s12, %s4309_s21 }
 0x113   : > { %p3628_p1 = pnand %p3627_p10, %p3626_p11  ;;  %p3633_p12 = por %p3632_p8, %p3631_p3 }
 0x115   : > { %p3629_p2 = pneg %p3628_p1  ;;  %p3635_p9 = por %p3634_p13, %p3633_p12 }
 0x117   : > { %p3636_p0 = pnand %p3635_p9, %p3629_p2 }
 0x119   : > { %3639 = shalt.err (!%p3636_p0)
}
 0x11a   : > { %s3640_s7 = scalar_lea.vmem %s4297_s26, 4096  ;;  %s3867_s3 = smov [#allocation6]  }
 0x11b   : > { %p3641_p11 = scmp.ne.s32.totalorder %s4297_s26, %s3640_s7  ;;  %s3645_s6 = sshll.u32 %s3867_s3, 4  ;;  %s3646_s6 = int_to_ptr.vmem [resolvable:$false] %s3645_s6 }
 0x11c   : > { %s3647_s8 = scalar_lea.vmem %s3646_s6, 8192  ;;  %p3648_p4 = scmp.lt.s32.totalorder %s4297_s26, %s3646_s6 }
 0x11d   : > { %p3643_p1 = pnand %p3641_p11, %p3627_p10  ;;  %p3649_p3 = scmp.lt.s32.totalorder %s3647_s8, %s3640_s7 }
 0x11f   : > { %p3644_p7 = pneg %p3643_p1  ;;  %p3650_p8 = por %p3649_p3, %p3648_p4 }
 0x121   : > { %p3651_p12 = pnand %p3650_p8, %p3644_p7 }
 0x123   : > { %3654 = shalt.err (!%p3651_p12)
}
 0x124   : > { %s3868_s12 = smov 384   ;;  %p5291_p4 = scmp.eq.s32.totalorder %s4263_s29, 0 }
 0x125   : > { %3155 = dma.hbm_to_vmem [thread:$0]  (!%p4293_p6), %s4309_s21, 4096, %s4297_s26, %s4320_s28, %s3868_s12, %s5269_s22, %s5268_s17  }
 0x126   : > { %s4355_s1 = scalar_select %p5291_p4, %s5280_s30, %s143_s15  }
 0x127   : > { %p5292_p7 = scmp.eq.s32.totalorder %s5277_s4, 0  ;;  %p5293_p9 = scmp.ne.s32.totalorder %s5282_s10, %s5283_s14 }
 0x128   : > { %p285_p10 = scmp.eq.s32.totalorder %s5277_s4, 8  ;;  %p291_p2 = scmp.eq.s32.totalorder %s2524_s25, 8 }
 0x129   : > { %p4362_p0 = por %p5293_p9, %p5292_p7  ;;  %s433_s13 = sand.u32 1, %s5280_s30  }
 0x12a   : > { %p5295_p13 = scmp.ne.s32.totalorder %s5280_s30, %s5282_s10  ;;  %s2546_s21 = sshll.u32 %s433_s13, 8 }
 0x12b   : > { %p5297_p6 = pmov %p5293_p9  ;;  %s2619_s26 = sshll.u32 %s3849_s23, 12 }
 0x12c   : > { %p4373_p11 = por %p285_p10, %p5295_p13  ;;  %s435_s15 = scalar_lea.vmem [#allocation11], %s2546_s21 }
 0x12d   : > { %p4380_p1 = por %p291_p2, %p5297_p6  ;;  %s442_s28 = sshll.u32 %s435_s15, 4  ;;  %s4390_s28 = int_to_ptr.vmem [resolvable:$true] %s442_s28 }
 0x12e   : > { %s5296_s0 = scalar_select %p4373_p11, 1, 0 }
 0x12f   : > { %s5298_s29 = scalar_select %p4380_p1, 1, 0 }
 0x130   : > { %s5299_s4 = sld [smem:[#allocation49_spill]]  ;;  %p5300_p3 = scmp.lt.s32.totalorder %s3853_s24, 9 }
 0x132   : > { %p4396_p8 = pnand %p5300_p3, %p4316_p5 }
 0x134   : > { %p3657_p4 = pneg %p4396_p8 }
 0x136   : > { %s4388_s6 = scalar_lea.hbm %s5299_s4, %s2619_s26  ;;  %s3660_s8 = scalar_lea.hbm %s5299_s4, 12288 }
 0x137   : > { %s3655_s10 = scalar_lea.hbm %s4388_s6, 4096  ;;  %p3661_p5 = scmp.lt.u32.totalorder %s4388_s6, %s5299_s4 }
 0x138   : > { %p3656_p12 = scmp.ne.s32.totalorder %s4388_s6, %s3655_s10  ;;  %p3662_p10 = scmp.lt.u32.totalorder %s3660_s8, %s3655_s10 }
 0x139   : > { %p3664_p13 = scmp.lt.u32.totalorder %s3655_s10, %s4388_s6 }
 0x13a   : > { %p3658_p7 = pnand %p3657_p4, %p3656_p12  ;;  %p3663_p2 = por %p3662_p10, %p3661_p5 }
 0x13c   : > { %p3659_p9 = pneg %p3658_p7  ;;  %p3665_p6 = por %p3664_p13, %p3663_p2 }
 0x13e   : > { %p3666_p3 = pnand %p3665_p6, %p3659_p9 }
 0x140   : > { %3669 = shalt.err (!%p3666_p3)
}
 0x141   : > { %s3670_s13 = scalar_lea.vmem %s4390_s28, 4096  ;;  %s3869_s21 = smov [#allocation11]  }
 0x142   : > { %p3671_p12 = scmp.ne.s32.totalorder %s4390_s28, %s3670_s13  ;;  %s3675_s26 = sshll.u32 %s3869_s21, 4  ;;  %s3676_s26 = int_to_ptr.vmem [resolvable:$false] %s3675_s26 }
 0x143   : > { %s3677_s15 = scalar_lea.vmem %s3676_s26, 8192  ;;  %p3678_p11 = scmp.lt.s32.totalorder %s4390_s28, %s3676_s26 }
 0x144   : > { %p3673_p7 = pnand %p3671_p12, %p3657_p4  ;;  %p3679_p5 = scmp.lt.s32.totalorder %s3677_s15, %s3670_s13 }
 0x146   : > { %p3674_p1 = pneg %p3673_p7  ;;  %p3680_p10 = por %p3679_p5, %p3678_p11 }
 0x148   : > { %p3681_p2 = pnand %p3680_p10, %p3674_p1 }
 0x14a   : > { %3684 = shalt.err (!%p3681_p2)
}
 0x14b   : > { %3163 = dma.hbm_to_vmem [thread:$0]  (!%p4396_p8), %s4388_s6, 4096, %s4390_s28, %s4209_s20, %s5269_s22, %s5269_s22, %s5268_s17  }
 0x14c   : > { %s5302_s7 = sld [smem:[#allocation42_spill]] }
 0x152   : > { %p5303_p4 = scmp.ne.s32.totalorder %s5302_s7, 0 }
 0x153   : > { %s456_s3 = sand.u32 (!%p5303_p4), 1, %s3829_s18   ;;  %p5304_p11 = scmp.ne.s32.totalorder (!%p5303_p4), %s5281_s5, 0 }
 0x154   : > { %454 = sbr.rel (%p5303_p4) target bundleno = 1393 (0x571), region = 52  ;;  %s2550_s10 = sshll.u32 (!%p5303_p4), %s456_s3, 8 }
 0x155   : > { %s457_s14 = scalar_lea.sflag (!%p5303_p4), [#allocation7], %s456_s3  ;;  %s4432_s25 = scalar_lea.vmem (!%p5303_p4), [#allocation6], %s2550_s10 }
 0x15b   : > { %3772 = dma.done.wait (%p5304_p11), %s457_s14, 4096  }
 0x15c   : > { %3774 = vsyncadd (%p5304_p11), %s457_s14, 4294963200  ;;  %s5305_s30 = sld [smem:[#allocation41_spill]]  ;;  %s5306_s8 = sld [smem:[#allocation36_spill]] }
 0x15d   : > { %s5307_s11 = sld [smem:[#allocation45_spill]] }
 0x162   : > { %s465_s12 = sand.u32 1, %s5305_s30   ;;  %s467_s17 = sand.u32 1, %s5306_s8  }
 0x163   : > { %s2551_s22 = sshll.u32 %s467_s17, 7  ;;  %s466_s20 = scalar_lea.sflag [#allocation10], %s465_s12 }
 0x164   : > { %s4440_s28 = scalar_lea.vmem [#allocation9], %s2551_s22  ;;  %p5308_p1 = scmp.ne.s32.totalorder %s5307_s11, 0 }
 0x166   : > { %3776 = dma.done.wait (%p5308_p1), %s466_s20, 2048  }
 0x167   : > { %3778 = vsyncadd (%p5308_p1), %s466_s20, 4294965248  ;;  %s5309_s6 = sld [smem:[#allocation34_spill]] }
 0x16d   : > { %s476_s13 = sand.u32 1, %s5309_s6  }
 0x16e   : > { %s2552_s5 = sshll.u32 %s476_s13, 8 }
 0x16f   : > { %s4449_s21 = scalar_lea.vmem [#allocation11], %s2552_s5 }
 0x170   : > { %3780 = dma.done.wait (%p4362_p0), %s466_s20, 4096  }
 0x171   : > { %3782 = vsyncadd (%p4362_p0), %s466_s20, 4294963200  ;;  %p5310_p8 = scmp.eq.s32.totalorder %s5305_s30, 0 }
 0x173   : > { %3784 = dma.done.wait (%p5310_p8), [#allocation13], 4096   ;;  %p5311_p9 = pmov %p5310_p8 }
 0x174   : > { %p5312_p13 = pmov %p5310_p8 }
 0x175   : > { %3786 = vsyncadd (%p5311_p9), [#allocation13], 4294963200 }
 0x176   : > { %3788 = dma.done.wait (%p5312_p13), [#allocation16], 32   ;;  %p5313_p6 = pmov %p5310_p8 }
 0x178   : > { %3790 = vsyncadd (%p5313_p6), [#allocation16], 4294967264  ;;  %p5314_p3 = pmov %p5313_p6 }
 0x17a   : > { %3792 = dma.done.wait (%p5314_p3), [#allocation19], 16   ;;  %p5315_p12 = pmov %p5314_p3 }
 0x17b   : > { %s4467_s27 = scalar_lea.vmem [#allocation20], %s2552_s5  ;;  %s5316_s26 = sld [smem:[#allocation38_spill]] }
 0x17c   : > { %3794 = vsyncadd (%p5315_p12), [#allocation19], 4294967280 }
 0x181   : > { %p2559_p0 = scmp.ne.s32.totalorder %s5316_s26, 0 }
 0x182   : > { %v3870_v0 = vmov (!%p2559_p0), 0.0  }
 0x183   : > { %566 = sbr.rel (%p2559_p0) target bundleno = 403 (0x193), region = 88  ;;  %567 = vst [vmem:[#allocation2] sm:$0xff] (!%p2559_p0), %v3870_v0  ;;  %568 = vst [vmem:[#allocation2 + $0x8] sm:$0xff] (!%p2559_p0), %v3870_v0 }
 0x184   : > { %569 = vst [vmem:[#allocation2 + $0x10] sm:$0xff] (!%p2559_p0), %v3870_v0  ;;  %570 = vst [vmem:[#allocation2 + $0x18] sm:$0xff] (!%p2559_p0), %v3870_v0 }
 0x185   : > { %571 = vst [vmem:[#allocation2 + $0x20] sm:$0xff] (!%p2559_p0), %v3870_v0  ;;  %572 = vst [vmem:[#allocation2 + $0x28] sm:$0xff] (!%p2559_p0), %v3870_v0 }
 0x186   : > { %573 = vst [vmem:[#allocation2 + $0x30] sm:$0xff] (!%p2559_p0), %v3870_v0  ;;  %574 = vst [vmem:[#allocation2 + $0x38] sm:$0xff] (!%p2559_p0), %v3870_v0 }
 0x187   : > { %575 = vst [vmem:[#allocation2 + $0x40] sm:$0xff] (!%p2559_p0), %v3870_v0  ;;  %576 = vst [vmem:[#allocation2 + $0x48] sm:$0xff] (!%p2559_p0), %v3870_v0 }
 0x188   : > { %577 = vst [vmem:[#allocation2 + $0x50] sm:$0xff] (!%p2559_p0), %v3870_v0  ;;  %578 = vst [vmem:[#allocation2 + $0x58] sm:$0xff] (!%p2559_p0), %v3870_v0 }
 0x189   : > { %579 = vst [vmem:[#allocation2 + $0x60] sm:$0xff] (!%p2559_p0), %v3870_v0  ;;  %580 = vst [vmem:[#allocation2 + $0x68] sm:$0xff] (!%p2559_p0), %v3870_v0 }
 0x18a   : > { %581 = vst [vmem:[#allocation2 + $0x70] sm:$0xff] %v3870_v0  ;;  %582 = vst [vmem:[#allocation2 + $0x78] sm:$0xff] %v3870_v0 }
 0x18b   : > { %583 = vst [vmem:[#allocation2 + $0x80] sm:$0xff] %v3870_v0  ;;  %584 = vst [vmem:[#allocation2 + $0x88] sm:$0xff] %v3870_v0 }
 0x18c   : > { %585 = vst [vmem:[#allocation2 + $0x90] sm:$0xff] %v3870_v0  ;;  %586 = vst [vmem:[#allocation2 + $0x98] sm:$0xff] %v3870_v0 }
 0x18d   : > { %587 = vst [vmem:[#allocation2 + $0xa0] sm:$0xff] %v3870_v0  ;;  %588 = vst [vmem:[#allocation2 + $0xa8] sm:$0xff] %v3870_v0 }
 0x18e   : > { %589 = vst [vmem:[#allocation2 + $0xb0] sm:$0xff] %v3870_v0  ;;  %590 = vst [vmem:[#allocation2 + $0xb8] sm:$0xff] %v3870_v0 }
 0x18f   : > { %591 = vst [vmem:[#allocation2 + $0xc0] sm:$0xff] %v3870_v0  ;;  %592 = vst [vmem:[#allocation2 + $0xc8] sm:$0xff] %v3870_v0 }
 0x190   : > { %593 = vst [vmem:[#allocation2 + $0xd0] sm:$0xff] %v3870_v0  ;;  %594 = vst [vmem:[#allocation2 + $0xd8] sm:$0xff] %v3870_v0 }
 0x191   : > { %595 = vst [vmem:[#allocation2 + $0xe0] sm:$0xff] %v3870_v0  ;;  %596 = vst [vmem:[#allocation2 + $0xe8] sm:$0xff] %v3870_v0 }
 0x192   : > { %597 = vst [vmem:[#allocation2 + $0xf0] sm:$0xff] %v3870_v0  ;;  %598 = vst [vmem:[#allocation2 + $0xf8] sm:$0xff] %v3870_v0 }
 0x193 PF: > { %s5317_s15 = sld [smem:[#allocation39_spill]]  ;;  %s5318_s3 = sld [smem:[#allocation38_spill]] }
 0x199   : > { %s599_s7 = sld [smem:[#allocation5 + %s5317_s15]] }
 0x19f   : > { %p2560_p7 = scmp.ge.s32.totalorder %s5318_s3, %s599_s7 }
 0x1a0   : > { %v3307_v1 = vld [vmem:[%s4440_s28 + $0x40] sm:$0xff] (!%p2560_p7)   ;;  %v3309_v3 = vld [vmem:[%s4440_s28 + $0x48] sm:$0xff] (!%p2560_p7)   ;;  %v3311_v5 = vld [vmem:[%s4440_s28 + $0x50] sm:$0xff] (!%p2560_p7)  }
 0x1a1   : > { %603 = sbr.rel (%p2560_p7) target bundleno = 725 (0x2d5), region = 92  ;;  %v3308_v2 = vld [vmem:[%s4440_s28] sm:$0xff] (!%p2560_p7)   ;;  %2621 = vmatprep.subr.bf16.mxu0 (!%p2560_p7), %v3307_v1  ;;  %3053 = vmatprep.subr.bf16.mxu1 (!%p2560_p7), %v3307_v1  ;;  %v3310_v4 = vld [vmem:[%s4440_s28 + $0x8] sm:$0xff] (!%p2560_p7)   ;;  %v3312_v6 = vld [vmem:[%s4440_s28 + $0x10] sm:$0xff] (!%p2560_p7)  }
 0x1a2   : > { %2622 = vmatpush3.bf16.msra.mxu0 (!%p2560_p7), %v3308_v2  ;;  %3061 = vmatpush3.bf16.msra.mxu1 (!%p2560_p7), %v3308_v2  ;;  %v3313_v7 = vld [vmem:[%s4440_s28 + $0x58] sm:$0xff] (!%p2560_p7)   ;;  %v3315_v9 = vld [vmem:[%s4440_s28 + $0x60] sm:$0xff] (!%p2560_p7)   ;;  %v3317_v11 = vld [vmem:[%s4440_s28 + $0x68] sm:$0xff] (!%p2560_p7)  }
 0x1a3   : > { %2623 = vmatprep.subr.bf16.mxu0 (!%p2560_p7), %v3309_v3  ;;  %3054 = vmatprep.subr.bf16.mxu1 (!%p2560_p7), %v3309_v3  ;;  %v3314_v8 = vld [vmem:[%s4440_s28 + $0x18] sm:$0xff] (!%p2560_p7)   ;;  %v3316_v10 = vld [vmem:[%s4440_s28 + $0x20] sm:$0xff] (!%p2560_p7)   ;;  %v3318_v14 = vld [vmem:[%s4440_s28 + $0x28] sm:$0xff] (!%p2560_p7)  }
 0x1a4   : > { %v3325_v12 = vld [vmem:[%s4432_s25 + $0x4] ss:$8 sps:$4 sm:$0xff] (!%p2560_p7)   ;;  %v3319_v15 = vld [vmem:[%s4440_s28 + $0x70] sm:$0xff] (!%p2560_p7)   ;;  %v3321_v17 = vld [vmem:[%s4440_s28 + $0x78] sm:$0xff] (!%p2560_p7)  }
 0x1a5   : > { %v3328_v13 = vld [vmem:[%s4432_s25 + $0x84] ss:$8 sps:$4 sm:$0xff] (!%p2560_p7)   ;;  %988 = vmatprep.mubr.bf16.mxu0 (!%p2560_p7), %v3325_v12  ;;  %v3320_v16 = vld [vmem:[%s4440_s28 + $0x30] sm:$0xff] (!%p2560_p7)   ;;  %v3322_v18 = vld [vmem:[%s4440_s28 + $0x38] sm:$0xff] (!%p2560_p7)  }
 0x1a6   : > { %2624 = vmatpush3.bf16.msra.mxu0 (!%p2560_p7), %v3310_v4  ;;  %3062 = vmatpush3.bf16.msra.mxu1 (!%p2560_p7), %v3310_v4  ;;  %v3323_v19 = vld [vmem:[%s4432_s25] ss:$8 sps:$4 sm:$0xff] (!%p2560_p7)   ;;  %v3329_v21 = vld [vmem:[%s4432_s25 + $0x14] ss:$8 sps:$4 sm:$0xff] (!%p2560_p7)   ;;  %v3333_v23 = vld [vmem:[%s4432_s25 + $0x10] ss:$8 sps:$4 sm:$0xff] (!%p2560_p7)  }
 0x1a7   : > { %2625 = vmatprep.subr.bf16.mxu0 (!%p2560_p7), %v3311_v5  ;;  %3055 = vmatprep.subr.bf16.mxu1 (!%p2560_p7), %v3311_v5  ;;  %v3326_v20 = vld [vmem:[%s4432_s25 + $0x80] ss:$8 sps:$4 sm:$0xff] (!%p2560_p7)   ;;  %v3331_v22 = vld [vmem:[%s4432_s25 + $0x94] ss:$8 sps:$4 sm:$0xff] (!%p2560_p7)   ;;  %v3334_v24 = vld [vmem:[%s4432_s25 + $0x90] ss:$8 sps:$4 sm:$0xff] (!%p2560_p7)  }
 0x1a8   : > { %1052 = vmatprep.mubr.bf16.mxu1 %v3328_v13  ;;  %v3335_v25 = vld [vmem:[%s4432_s25 + $0x24] ss:$8 sps:$4 sm:$0xff]   ;;  %v3339_v27 = vld [vmem:[%s4432_s25 + $0x20] ss:$8 sps:$4 sm:$0xff]   ;;  %v3341_v29 = vld [vmem:[%s4432_s25 + $0x34] ss:$8 sps:$4 sm:$0xff]  }
 0x1a9   : > { %v3337_v26 = vld [vmem:[%s4432_s25 + $0xa4] ss:$8 sps:$4 sm:$0xff]   ;;  %v3340_v28 = vld [vmem:[%s4432_s25 + $0xa0] ss:$8 sps:$4 sm:$0xff]   ;;  %v3343_v30 = vld [vmem:[%s4432_s25 + $0xb4] ss:$8 sps:$4 sm:$0xff]  }
 0x1aa   : > { %2626 = vmatpush3.bf16.msra.mxu0 %v3312_v6  ;;  %3063 = vmatpush3.bf16.msra.mxu1 %v3312_v6  ;;  %v3345_v31 = vld [vmem:[%s4432_s25 + $0x30] ss:$8 sps:$4 sm:$0xff]   ;;  %v3347_v33 = vld [vmem:[%s4432_s25 + $0x44] ss:$8 sps:$4 sm:$0xff]   ;;  %v3351_v35 = vld [vmem:[%s4432_s25 + $0x40] ss:$8 sps:$4 sm:$0xff]  }
 0x1ab   : > { %2627 = vmatprep.subr.bf16.mxu0 %v3313_v7  ;;  %3056 = vmatprep.subr.bf16.mxu1 %v3313_v7  ;;  %v3346_v32 = vld [vmem:[%s4432_s25 + $0xb0] ss:$8 sps:$4 sm:$0xff]   ;;  %v3349_v34 = vld [vmem:[%s4432_s25 + $0xc4] ss:$8 sps:$4 sm:$0xff]   ;;  %v3352_v36 = vld [vmem:[%s4432_s25 + $0xc0] ss:$8 sps:$4 sm:$0xff]  }
 0x1ac   : > { %v3353_v37 = vld [vmem:[%s4432_s25 + $0x54] ss:$8 sps:$4 sm:$0xff]   ;;  %v3357_v39 = vld [vmem:[%s4432_s25 + $0x50] ss:$8 sps:$4 sm:$0xff]   ;;  %v3359_v41 = vld [vmem:[%s4432_s25 + $0x64] ss:$8 sps:$4 sm:$0xff]  }
 0x1ad   : > { %v3355_v38 = vld [vmem:[%s4432_s25 + $0xd4] ss:$8 sps:$4 sm:$0xff]   ;;  %v3358_v40 = vld [vmem:[%s4432_s25 + $0xd0] ss:$8 sps:$4 sm:$0xff]   ;;  %v3361_v42 = vld [vmem:[%s4432_s25 + $0xe4] ss:$8 sps:$4 sm:$0xff]  }
 0x1ae   : > { %2628 = vmatpush3.bf16.msra.mxu0 %v3314_v8  ;;  %3064 = vmatpush3.bf16.msra.mxu1 %v3314_v8  ;;  %v3363_v43 = vld [vmem:[%s4432_s25 + $0x60] ss:$8 sps:$4 sm:$0xff]   ;;  %v3365_v45 = vld [vmem:[%s4432_s25 + $0x74] ss:$8 sps:$4 sm:$0xff]   ;;  %v3369_v47 = vld [vmem:[%s4432_s25 + $0x70] ss:$8 sps:$4 sm:$0xff]  }
 0x1af   : > { %2629 = vmatprep.subr.bf16.mxu0 %v3315_v9  ;;  %3057 = vmatprep.subr.bf16.mxu1 %v3315_v9  ;;  %v3364_v44 = vld [vmem:[%s4432_s25 + $0xe0] ss:$8 sps:$4 sm:$0xff]   ;;  %v3367_v46 = vld [vmem:[%s4432_s25 + $0xf4] ss:$8 sps:$4 sm:$0xff]   ;;  %v3370_v48 = vld [vmem:[%s4432_s25 + $0xf0] ss:$8 sps:$4 sm:$0xff]  }
 0x1b0   : > { %v604_v51 = vld [vmem:[#allocation2] sm:$0xff]  ;;  %v605_v59 = vld [vmem:[#allocation2 + $0x8] sm:$0xff]  ;;  %v606_v7 = vld [vmem:[#allocation2 + $0x10] sm:$0xff] }
 0x1b1   : > { %v620_v53 = vld [vmem:[#allocation2 + $0x80] sm:$0xff]  ;;  %v621_v61 = vld [vmem:[#allocation2 + $0x88] sm:$0xff]  ;;  %v622_v9 = vld [vmem:[#allocation2 + $0x90] sm:$0xff] }
 0x1b2   : > { %2630 = vmatpush3.bf16.msra.mxu0 %v3316_v10  ;;  %3065 = vmatpush3.bf16.msra.mxu1 %v3316_v10 }
 0x1b3   : > { %2631 = vmatprep.subr.bf16.mxu0 %v3317_v11  ;;  %3058 = vmatprep.subr.bf16.mxu1 %v3317_v11 }
 0x1b6   : > { %2632 = vmatpush3.bf16.msra.mxu0 %v3318_v14  ;;  %3066 = vmatpush3.bf16.msra.mxu1 %v3318_v14 }
 0x1b7   : > { %2633 = vmatprep.subr.bf16.mxu0 %v3319_v15  ;;  %3059 = vmatprep.subr.bf16.mxu1 %v3319_v15  ;;  %v607_v15 = vld [vmem:[#allocation2 + $0x18] sm:$0xff] }
 0x1ba   : > { %2634 = vmatpush3.bf16.msra.mxu0 %v3320_v16  ;;  %3067 = vmatpush3.bf16.msra.mxu1 %v3320_v16 }
 0x1bb   : > { %2635 = vmatprep.subr.bf16.mxu0 %v3321_v17  ;;  %3060 = vmatprep.subr.bf16.mxu1 %v3321_v17  ;;  %v623_v17 = vld [vmem:[#allocation2 + $0x98] sm:$0xff] }
 0x1be   : > { %2636 = vmatpush3.bf16.msra.mxu0 %v3322_v18  ;;  %3068 = vmatpush3.bf16.msra.mxu1 %v3322_v18 }
 0x1c1   : > { %989 = vmatmul.mubr.bf16.vlgmr.msra.gmra.mrb[0].mxu0 %v3323_v19  ;;  %1053 = vmatmul.mubr.bf16.vlgmr.msra.gmra.mrb[0].mxu1 %v3326_v20 }
 0x1c2   : > { %996 = vmatprep.mubr.bf16.mxu0 %v3329_v21  ;;  %1060 = vmatprep.mubr.bf16.mxu1 %v3331_v22 }
 0x1c9   : > { %997 = vmatmul.mubr.bf16.gmra.mrb[4].mxu0 %v3333_v23  ;;  %1061 = vmatmul.mubr.bf16.gmra.mrb[4].mxu1 %v3334_v24 }
 0x1ca   : > { %1004 = vmatprep.mubr.bf16.mxu0 %v3335_v25  ;;  %1068 = vmatprep.mubr.bf16.mxu1 %v3337_v26 }
 0x1d1   : > { %1005 = vmatmul.mubr.bf16.gmra.mrb[8].mxu0 %v3339_v27  ;;  %1069 = vmatmul.mubr.bf16.gmra.mrb[8].mxu1 %v3340_v28  ;;  %v608_v27 = vld [vmem:[#allocation2 + $0x20] sm:$0xff] }
 0x1d2   : > { %1012 = vmatprep.mubr.bf16.mxu0 %v3341_v29  ;;  %1076 = vmatprep.mubr.bf16.mxu1 %v3343_v30  ;;  %v624_v29 = vld [vmem:[#allocation2 + $0xa0] sm:$0xff] }
 0x1d9   : > { %1013 = vmatmul.mubr.bf16.gmra.mrb[12].mxu0 %v3345_v31  ;;  %1077 = vmatmul.mubr.bf16.gmra.mrb[12].mxu1 %v3346_v32 }
 0x1da   : > { %1020 = vmatprep.mubr.bf16.mxu0 %v3347_v33  ;;  %1084 = vmatprep.mubr.bf16.mxu1 %v3349_v34 }
 0x1e1   : > { %1021 = vmatmul.mubr.bf16.gmra.mrb[16].mxu0 %v3351_v35  ;;  %1085 = vmatmul.mubr.bf16.gmra.mrb[16].mxu1 %v3352_v36  ;;  %v609_v35 = vld [vmem:[#allocation2 + $0x28] sm:$0xff] }
 0x1e2   : > { %1028 = vmatprep.mubr.bf16.mxu0 %v3353_v37  ;;  %1092 = vmatprep.mubr.bf16.mxu1 %v3355_v38  ;;  %v625_v37 = vld [vmem:[#allocation2 + $0xa8] sm:$0xff] }
 0x1e9   : > { %1029 = vmatmul.mubr.bf16.gmra.mrb[20].mxu0 %v3357_v39  ;;  %1093 = vmatmul.mubr.bf16.gmra.mrb[20].mxu1 %v3358_v40 }
 0x1ea   : > { %1036 = vmatprep.mubr.bf16.mxu0 %v3359_v41  ;;  %1100 = vmatprep.mubr.bf16.mxu1 %v3361_v42 }
 0x1f1   : > { %1037 = vmatmul.mubr.bf16.gmra.mrb[24].mxu0 %v3363_v43  ;;  %1101 = vmatmul.mubr.bf16.gmra.mrb[24].mxu1 %v3364_v44 }
 0x1f2   : > { %1044 = vmatprep.mubr.bf16.mxu0 %v3365_v45  ;;  %1108 = vmatprep.mubr.bf16.mxu1 %v3367_v46 }
 0x1f9   : > { %1045 = vmatmul.mubr.bf16.gmra.mrb[28].mxu0 %v3369_v47  ;;  %1109 = vmatmul.mubr.bf16.gmra.mrb[28].mxu1 %v3370_v48  ;;  %v610_v47 = vld [vmem:[#allocation2 + $0x30] sm:$0xff] }
 0x294   : > { %v2637_v49 = vpop.f32.mrb[0].mxu0  ;;  %v2685_v50 = vpop.f32.mrb[0].mxu1 }
 0x295   : > { %v2638_v52 = vpop.f32.mrb[1].mxu0  ;;  %v2686_v54 = vpop.f32.mrb[1].mxu1 }
 0x296   : > { %v2639_v55 = vadd.f32 %v2638_v52, %v2637_v49  ;;  %v2687_v56 = vadd.f32 %v2686_v54, %v2685_v50  ;;  %v2640_v57 = vpop.f32.mrb[2].mxu0  ;;  %v2688_v58 = vpop.f32.mrb[2].mxu1  ;;  %v626_v49 = vld [vmem:[#allocation2 + $0xb0] sm:$0xff] }
 0x297   : > { %v2641_v60 = vpop.f32.mrb[3].mxu0  ;;  %v2689_v62 = vpop.f32.mrb[3].mxu1 }
 0x298   : > { %v1117_v63 = vadd.f32 %v2639_v55, %v604_v51  ;;  %v1133_v0 = vadd.f32 %v2687_v56, %v620_v53  ;;  %v2642_v1 = vadd.f32 %v2641_v60, %v2640_v57  ;;  %v2690_v2 = vadd.f32 %v2689_v62, %v2688_v58  ;;  %v611_v55 = vld [vmem:[#allocation2 + $0x38] sm:$0xff] }
 0x299   : > { %v627_v57 = vld [vmem:[#allocation2 + $0xb8] sm:$0xff] }
 0x29a   : > { %1149 = vst [vmem:[#allocation2] sm:$0xff] %v1117_v63  ;;  %1165 = vst [vmem:[#allocation2 + $0x80] sm:$0xff] %v1133_v0  ;;  %v1118_v3 = vadd.f32 %v2642_v1, %v605_v59  ;;  %v1134_v4 = vadd.f32 %v2690_v2, %v621_v61 }
 0x29c   : > { %1150 = vst [vmem:[#allocation2 + $0x8] sm:$0xff] %v1118_v3  ;;  %1166 = vst [vmem:[#allocation2 + $0x88] sm:$0xff] %v1134_v4  ;;  %v2643_v5 = vpop.f32.mrb[4].mxu0  ;;  %v2691_v6 = vpop.f32.mrb[4].mxu1  ;;  %v612_v3 = vld [vmem:[#allocation2 + $0x40] sm:$0xff] }
 0x29d   : > { %v2644_v8 = vpop.f32.mrb[5].mxu0  ;;  %v2692_v10 = vpop.f32.mrb[5].mxu1 }
 0x29e   : > { %v2645_v11 = vadd.f32 %v2644_v8, %v2643_v5  ;;  %v2693_v12 = vadd.f32 %v2692_v10, %v2691_v6  ;;  %v2646_v13 = vpop.f32.mrb[6].mxu0  ;;  %v2694_v14 = vpop.f32.mrb[6].mxu1  ;;  %v628_v5 = vld [vmem:[#allocation2 + $0xc0] sm:$0xff] }
 0x29f   : > { %v2647_v16 = vpop.f32.mrb[7].mxu0  ;;  %v2695_v18 = vpop.f32.mrb[7].mxu1 }
 0x2a0   : > { %v1119_v19 = vadd.f32 %v2645_v11, %v606_v7  ;;  %v1135_v20 = vadd.f32 %v2693_v12, %v622_v9  ;;  %v2648_v21 = vadd.f32 %v2647_v16, %v2646_v13  ;;  %v2696_v22 = vadd.f32 %v2695_v18, %v2694_v14  ;;  %v613_v11 = vld [vmem:[#allocation2 + $0x48] sm:$0xff] }
 0x2a1   : > { %v629_v13 = vld [vmem:[#allocation2 + $0xc8] sm:$0xff] }
 0x2a2   : > { %1151 = vst [vmem:[#allocation2 + $0x10] sm:$0xff] %v1119_v19  ;;  %1167 = vst [vmem:[#allocation2 + $0x90] sm:$0xff] %v1135_v20  ;;  %v1120_v23 = vadd.f32 %v2648_v21, %v607_v15  ;;  %v1136_v24 = vadd.f32 %v2696_v22, %v623_v17 }
 0x2a4   : > { %1152 = vst [vmem:[#allocation2 + $0x18] sm:$0xff] %v1120_v23  ;;  %1168 = vst [vmem:[#allocation2 + $0x98] sm:$0xff] %v1136_v24  ;;  %v2649_v25 = vpop.f32.mrb[8].mxu0  ;;  %v2697_v26 = vpop.f32.mrb[8].mxu1  ;;  %v614_v23 = vld [vmem:[#allocation2 + $0x50] sm:$0xff] }
 0x2a5   : > { %v2650_v28 = vpop.f32.mrb[9].mxu0  ;;  %v2698_v30 = vpop.f32.mrb[9].mxu1 }
 0x2a6   : > { %v2651_v31 = vadd.f32 %v2650_v28, %v2649_v25  ;;  %v2699_v32 = vadd.f32 %v2698_v30, %v2697_v26  ;;  %v2652_v33 = vpop.f32.mrb[10].mxu0  ;;  %v2700_v34 = vpop.f32.mrb[10].mxu1  ;;  %v630_v25 = vld [vmem:[#allocation2 + $0xd0] sm:$0xff] }
 0x2a7   : > { %v2653_v36 = vpop.f32.mrb[11].mxu0  ;;  %v2701_v38 = vpop.f32.mrb[11].mxu1 }
 0x2a8   : > { %v1121_v39 = vadd.f32 %v2651_v31, %v608_v27  ;;  %v1137_v40 = vadd.f32 %v2699_v32, %v624_v29  ;;  %v2654_v41 = vadd.f32 %v2653_v36, %v2652_v33  ;;  %v2702_v42 = vadd.f32 %v2701_v38, %v2700_v34  ;;  %v615_v31 = vld [vmem:[#allocation2 + $0x58] sm:$0xff] }
 0x2a9   : > { %v631_v33 = vld [vmem:[#allocation2 + $0xd8] sm:$0xff] }
 0x2aa   : > { %1153 = vst [vmem:[#allocation2 + $0x20] sm:$0xff] %v1121_v39  ;;  %1169 = vst [vmem:[#allocation2 + $0xa0] sm:$0xff] %v1137_v40  ;;  %v1122_v43 = vadd.f32 %v2654_v41, %v609_v35  ;;  %v1138_v44 = vadd.f32 %v2702_v42, %v625_v37 }
 0x2ac   : > { %1154 = vst [vmem:[#allocation2 + $0x28] sm:$0xff] %v1122_v43  ;;  %1170 = vst [vmem:[#allocation2 + $0xa8] sm:$0xff] %v1138_v44  ;;  %v2655_v45 = vpop.f32.mrb[12].mxu0  ;;  %v2703_v46 = vpop.f32.mrb[12].mxu1  ;;  %v616_v43 = vld [vmem:[#allocation2 + $0x60] sm:$0xff] }
 0x2ad   : > { %v2656_v48 = vpop.f32.mrb[13].mxu0  ;;  %v2704_v50 = vpop.f32.mrb[13].mxu1 }
 0x2ae   : > { %v2657_v51 = vadd.f32 %v2656_v48, %v2655_v45  ;;  %v2705_v52 = vadd.f32 %v2704_v50, %v2703_v46  ;;  %v2658_v53 = vpop.f32.mrb[14].mxu0  ;;  %v2706_v54 = vpop.f32.mrb[14].mxu1  ;;  %v632_v45 = vld [vmem:[#allocation2 + $0xe0] sm:$0xff] }
 0x2af   : > { %v2659_v56 = vpop.f32.mrb[15].mxu0  ;;  %v2707_v58 = vpop.f32.mrb[15].mxu1 }
 0x2b0   : > { %v1123_v59 = vadd.f32 %v2657_v51, %v610_v47  ;;  %v1139_v60 = vadd.f32 %v2705_v52, %v626_v49  ;;  %v2660_v61 = vadd.f32 %v2659_v56, %v2658_v53  ;;  %v2708_v62 = vadd.f32 %v2707_v58, %v2706_v54  ;;  %v617_v51 = vld [vmem:[#allocation2 + $0x68] sm:$0xff] }
 0x2b1   : > { %v633_v53 = vld [vmem:[#allocation2 + $0xe8] sm:$0xff] }
 0x2b2   : > { %1155 = vst [vmem:[#allocation2 + $0x30] sm:$0xff] %v1123_v59  ;;  %1171 = vst [vmem:[#allocation2 + $0xb0] sm:$0xff] %v1139_v60  ;;  %v1124_v63 = vadd.f32 %v2660_v61, %v611_v55  ;;  %v1140_v0 = vadd.f32 %v2708_v62, %v627_v57 }
 0x2b4   : > { %1156 = vst [vmem:[#allocation2 + $0x38] sm:$0xff] %v1124_v63  ;;  %1172 = vst [vmem:[#allocation2 + $0xb8] sm:$0xff] %v1140_v0  ;;  %v2661_v1 = vpop.f32.mrb[16].mxu0  ;;  %v2709_v2 = vpop.f32.mrb[16].mxu1  ;;  %v618_v63 = vld [vmem:[#allocation2 + $0x70] sm:$0xff] }
 0x2b5   : > { %v2662_v4 = vpop.f32.mrb[17].mxu0  ;;  %v2710_v6 = vpop.f32.mrb[17].mxu1 }
 0x2b6   : > { %v2663_v7 = vadd.f32 %v2662_v4, %v2661_v1  ;;  %v2711_v8 = vadd.f32 %v2710_v6, %v2709_v2  ;;  %v2664_v9 = vpop.f32.mrb[18].mxu0  ;;  %v2712_v10 = vpop.f32.mrb[18].mxu1  ;;  %v634_v1 = vld [vmem:[#allocation2 + $0xf0] sm:$0xff] }
 0x2b7   : > { %v2665_v12 = vpop.f32.mrb[19].mxu0  ;;  %v2713_v14 = vpop.f32.mrb[19].mxu1 }
 0x2b8   : > { %v1125_v15 = vadd.f32 %v2663_v7, %v612_v3  ;;  %v1141_v16 = vadd.f32 %v2711_v8, %v628_v5  ;;  %v2666_v17 = vadd.f32 %v2665_v12, %v2664_v9  ;;  %v2714_v18 = vadd.f32 %v2713_v14, %v2712_v10  ;;  %v619_v7 = vld [vmem:[#allocation2 + $0x78] sm:$0xff] }
 0x2b9   : > { %v635_v9 = vld [vmem:[#allocation2 + $0xf8] sm:$0xff] }
 0x2ba   : > { %1157 = vst [vmem:[#allocation2 + $0x40] sm:$0xff] %v1125_v15  ;;  %1173 = vst [vmem:[#allocation2 + $0xc0] sm:$0xff] %v1141_v16  ;;  %v1126_v19 = vadd.f32 %v2666_v17, %v613_v11  ;;  %v1142_v20 = vadd.f32 %v2714_v18, %v629_v13 }
 0x2bc   : > { %1158 = vst [vmem:[#allocation2 + $0x48] sm:$0xff] %v1126_v19  ;;  %1174 = vst [vmem:[#allocation2 + $0xc8] sm:$0xff] %v1142_v20  ;;  %v2667_v21 = vpop.f32.mrb[20].mxu0  ;;  %v2715_v22 = vpop.f32.mrb[20].mxu1 }
 0x2bd   : > { %v2668_v24 = vpop.f32.mrb[21].mxu0  ;;  %v2716_v26 = vpop.f32.mrb[21].mxu1 }
 0x2be   : > { %v2669_v27 = vadd.f32 %v2668_v24, %v2667_v21  ;;  %v2717_v28 = vadd.f32 %v2716_v26, %v2715_v22  ;;  %v2670_v29 = vpop.f32.mrb[22].mxu0  ;;  %v2718_v30 = vpop.f32.mrb[22].mxu1 }
 0x2bf   : > { %v2671_v32 = vpop.f32.mrb[23].mxu0  ;;  %v2719_v34 = vpop.f32.mrb[23].mxu1 }
 0x2c0   : > { %v1127_v35 = vadd.f32 %v2669_v27, %v614_v23  ;;  %v1143_v36 = vadd.f32 %v2717_v28, %v630_v25  ;;  %v2672_v37 = vadd.f32 %v2671_v32, %v2670_v29  ;;  %v2720_v38 = vadd.f32 %v2719_v34, %v2718_v30 }
 0x2c2   : > { %1159 = vst [vmem:[#allocation2 + $0x50] sm:$0xff] %v1127_v35  ;;  %1175 = vst [vmem:[#allocation2 + $0xd0] sm:$0xff] %v1143_v36  ;;  %v1128_v39 = vadd.f32 %v2672_v37, %v615_v31  ;;  %v1144_v40 = vadd.f32 %v2720_v38, %v631_v33 }
 0x2c4   : > { %1160 = vst [vmem:[#allocation2 + $0x58] sm:$0xff] %v1128_v39  ;;  %1176 = vst [vmem:[#allocation2 + $0xd8] sm:$0xff] %v1144_v40  ;;  %v2673_v41 = vpop.f32.mrb[24].mxu0  ;;  %v2721_v42 = vpop.f32.mrb[24].mxu1 }
 0x2c5   : > { %v2674_v44 = vpop.f32.mrb[25].mxu0  ;;  %v2722_v46 = vpop.f32.mrb[25].mxu1 }
 0x2c6   : > { %v2675_v47 = vadd.f32 %v2674_v44, %v2673_v41  ;;  %v2723_v48 = vadd.f32 %v2722_v46, %v2721_v42  ;;  %v2676_v49 = vpop.f32.mrb[26].mxu0  ;;  %v2724_v50 = vpop.f32.mrb[26].mxu1 }
 0x2c7   : > { %v2677_v52 = vpop.f32.mrb[27].mxu0  ;;  %v2725_v54 = vpop.f32.mrb[27].mxu1 }
 0x2c8   : > { %v1129_v55 = vadd.f32 %v2675_v47, %v616_v43  ;;  %v1145_v56 = vadd.f32 %v2723_v48, %v632_v45  ;;  %v2678_v57 = vadd.f32 %v2677_v52, %v2676_v49  ;;  %v2726_v58 = vadd.f32 %v2725_v54, %v2724_v50 }
 0x2ca   : > { %1161 = vst [vmem:[#allocation2 + $0x60] sm:$0xff] %v1129_v55  ;;  %1177 = vst [vmem:[#allocation2 + $0xe0] sm:$0xff] %v1145_v56  ;;  %v1130_v59 = vadd.f32 %v2678_v57, %v617_v51  ;;  %v1146_v60 = vadd.f32 %v2726_v58, %v633_v53 }
 0x2cc   : > { %1162 = vst [vmem:[#allocation2 + $0x68] sm:$0xff] %v1130_v59  ;;  %1178 = vst [vmem:[#allocation2 + $0xe8] sm:$0xff] %v1146_v60  ;;  %v2679_v61 = vpop.f32.mrb[28].mxu0  ;;  %v2727_v62 = vpop.f32.mrb[28].mxu1 }
 0x2cd   : > { %v2680_v0 = vpop.f32.mrb[29].mxu0  ;;  %v2728_v2 = vpop.f32.mrb[29].mxu1 }
 0x2ce   : > { %v2681_v3 = vadd.f32 %v2680_v0, %v2679_v61  ;;  %v2729_v4 = vadd.f32 %v2728_v2, %v2727_v62  ;;  %v2682_v5 = vpop.f32.mrb[30].mxu0  ;;  %v2730_v6 = vpop.f32.mrb[30].mxu1 }
 0x2cf   : > { %v2683_v8 = vpop.f32.mrb[31].mxu0  ;;  %v2731_v10 = vpop.f32.mrb[31].mxu1 }
 0x2d0   : > { %v1131_v11 = vadd.f32 %v2681_v3, %v618_v63  ;;  %v1147_v12 = vadd.f32 %v2729_v4, %v634_v1  ;;  %v2684_v13 = vadd.f32 %v2683_v8, %v2682_v5  ;;  %v2732_v14 = vadd.f32 %v2731_v10, %v2730_v6 }
 0x2d2   : > { %1163 = vst [vmem:[#allocation2 + $0x70] sm:$0xff] %v1131_v11  ;;  %1179 = vst [vmem:[#allocation2 + $0xf0] sm:$0xff] %v1147_v12  ;;  %v1132_v15 = vadd.f32 %v2684_v13, %v619_v7  ;;  %v1148_v16 = vadd.f32 %v2732_v14, %v635_v9 }
 0x2d4   : > { %1164 = vst [vmem:[#allocation2 + $0x78] sm:$0xff] %v1132_v15  ;;  %1180 = vst [vmem:[#allocation2 + $0xf8] sm:$0xff] %v1148_v16 }
 0x2d5 PF: > { %s5319_s10 = sld [smem:[#allocation38_spill]] }
 0x2db   : > { %p2609_p5 = scmp.ne.s32.totalorder %s5319_s10, 2 }
 0x2dc   : > { %v1265_v17 = vld [vmem:[#allocation14] sm:$0xff] (!%p2609_p5)  ;;  %v1266_v18 = vld [vmem:[#allocation14 + $0x8] sm:$0xff] (!%p2609_p5)  ;;  %v1267_v22 = vld [vmem:[#allocation14 + $0x10] sm:$0xff] (!%p2609_p5) }
 0x2dd   : > { %1184 = sbr.rel (%p2609_p5) target bundleno = 1365 (0x555), region = 96  ;;  %v1249_v19 = vld [vmem:[#allocation12] sm:$0xff] (!%p2609_p5)  ;;  %v2989_v20 = vpack.c.bf16 (!%p2609_p5), %v1266_v18, %v1265_v17  ;;  %v1250_v21 = vld [vmem:[#allocation12 + $0x8] sm:$0xff] (!%p2609_p5)  ;;  %v1268_v23 = vld [vmem:[#allocation14 + $0x18] sm:$0xff] (!%p2609_p5) }
 0x2de   : > { %v3021_v24 = vpack.c.bf16 (!%p2609_p5), %v1250_v21, %v1249_v19  ;;  %v2993_v25 = vpack.c.bf16 (!%p2609_p5), %v1268_v23, %v1267_v22  ;;  %v1251_v26 = vld [vmem:[#allocation12 + $0x10] sm:$0xff] (!%p2609_p5)  ;;  %v1252_v27 = vld [vmem:[#allocation12 + $0x18] sm:$0xff] (!%p2609_p5)  ;;  %v1269_v28 = vld [vmem:[#allocation14 + $0x20] sm:$0xff] (!%p2609_p5) }
 0x2df   : > { %2990 = vmatprep.subr.bf16.mxu1 (!%p2609_p5), %v2989_v20  ;;  %v3025_v29 = vpack.c.bf16 (!%p2609_p5), %v1252_v27, %v1251_v26  ;;  %v1270_v30 = vld [vmem:[#allocation14 + $0x28] sm:$0xff] (!%p2609_p5)  ;;  %v1253_v31 = vld [vmem:[#allocation12 + $0x20] sm:$0xff] (!%p2609_p5)  ;;  %v1271_v35 = vld [vmem:[#allocation14 + $0x30] sm:$0xff] (!%p2609_p5) }
 0x2e0   : > { %v1254_v32 = vld [vmem:[#allocation12 + $0x28] sm:$0xff] (!%p2609_p5)  ;;  %3022 = vmatprep.subr.bf16.mxu0 (!%p2609_p5), %v3021_v24  ;;  %2992 = vmatpush3.bf16.msra.mxu1 (!%p2609_p5), %v2989_v20  ;;  %v2997_v33 = vpack.c.bf16 (!%p2609_p5), %v1270_v30, %v1269_v28  ;;  %v1272_v36 = vld [vmem:[#allocation14 + $0x38] sm:$0xff] (!%p2609_p5)  ;;  %v1255_v37 = vld [vmem:[#allocation12 + $0x30] sm:$0xff] (!%p2609_p5) }
 0x2e1   : > { %3024 = vmatpush3.bf16.msra.mxu0 (!%p2609_p5), %v3021_v24  ;;  %2994 = vmatprep.subr.bf16.mxu1 (!%p2609_p5), %v2993_v25  ;;  %v3029_v34 = vpack.c.bf16 (!%p2609_p5), %v1254_v32, %v1253_v31  ;;  %v1256_v38 = vld [vmem:[#allocation12 + $0x38] sm:$0xff] (!%p2609_p5)  ;;  %v3001_v39 = vpack.c.bf16 (!%p2609_p5), %v1272_v36, %v1271_v35  ;;  %v1273_v41 = vld [vmem:[#allocation14 + $0x40] sm:$0xff] (!%p2609_p5)  ;;  %v1274_v42 = vld [vmem:[#allocation14 + $0x48] sm:$0xff] (!%p2609_p5) }
 0x2e2   : > { %3026 = vmatprep.subr.bf16.mxu0 (!%p2609_p5), %v3025_v29  ;;  %v3033_v40 = vpack.c.bf16 (!%p2609_p5), %v1256_v38, %v1255_v37  ;;  %v1217_v43 = vld [vmem:[%s4449_s21] sm:$0xff] (!%p2609_p5)  ;;  %v1258_v45 = vld [vmem:[#allocation12 + $0x48] sm:$0xff] (!%p2609_p5)  ;;  %v3005_v47 = vpack.c.bf16 (!%p2609_p5), %v1274_v42, %v1273_v41  ;;  %v1275_v49 = vld [vmem:[#allocation14 + $0x50] sm:$0xff] (!%p2609_p5) }
 0x2e3   : > { %v1257_v44 = vld [vmem:[#allocation12 + $0x40] sm:$0xff] (!%p2609_p5)  ;;  %2861 = vmatprep.mubr.f32.mxu1 (!%p2609_p5), %v1217_v43  ;;  %v1276_v50 = vld [vmem:[#allocation14 + $0x58] sm:$0xff] (!%p2609_p5)  ;;  %v1259_v51 = vld [vmem:[#allocation12 + $0x50] sm:$0xff] (!%p2609_p5) }
 0x2e4   : > { %2996 = vmatpush3.bf16.msra.mxu1 %v2993_v25  ;;  %v1185_v46 = vld [vmem:[#allocation2] sm:$0xff]  ;;  %v3037_v48 = vpack.c.bf16 %v1258_v45, %v1257_v44  ;;  %v1260_v52 = vld [vmem:[#allocation12 + $0x58] sm:$0xff]  ;;  %v3009_v53 = vpack.c.bf16 %v1276_v50, %v1275_v49  ;;  %v1278_v56 = vld [vmem:[#allocation14 + $0x68] sm:$0xff] }
 0x2e5   : > { %3028 = vmatpush3.bf16.msra.mxu0 %v3025_v29  ;;  %2998 = vmatprep.subr.bf16.mxu1 %v2997_v33  ;;  %v3041_v54 = vpack.c.bf16 %v1260_v52, %v1259_v51  ;;  %v1277_v55 = vld [vmem:[#allocation14 + $0x60] sm:$0xff]  ;;  %v1262_v58 = vld [vmem:[#allocation12 + $0x68] sm:$0xff]  ;;  %v1279_v61 = vld [vmem:[#allocation14 + $0x70] sm:$0xff] }
 0x2e6   : > { %3030 = vmatprep.subr.bf16.mxu0 %v3029_v34  ;;  %2941 = vmatprep.mubr.f32.mxu0 %v1185_v46  ;;  %v1261_v57 = vld [vmem:[#allocation12 + $0x60] sm:$0xff]  ;;  %v3013_v59 = vpack.c.bf16 %v1278_v56, %v1277_v55  ;;  %v1280_v62 = vld [vmem:[#allocation14 + $0x78] sm:$0xff]  ;;  %v1263_v63 = vld [vmem:[#allocation12 + $0x70] sm:$0xff] }
 0x2e7   : > { %v3045_v60 = vpack.c.bf16 %v1262_v58, %v1261_v57  ;;  %v1264_v0 = vld [vmem:[#allocation12 + $0x78] sm:$0xff]  ;;  %v3017_v1 = vpack.c.bf16 %v1280_v62, %v1279_v61  ;;  %v1218_v3 = vld [vmem:[%s4449_s21 + $0x8] sm:$0xff]  ;;  %v1219_v5 = vld [vmem:[%s4449_s21 + $0x10] sm:$0xff] }
 0x2e8   : > { %3000 = vmatpush3.bf16.msra.mxu1 %v2997_v33  ;;  %v3049_v2 = vpack.c.bf16 %v1264_v0, %v1263_v63  ;;  %v1186_v4 = vld [vmem:[#allocation2 + $0x8] sm:$0xff]  ;;  %v1187_v6 = vld [vmem:[#allocation2 + $0x10] sm:$0xff]  ;;  %v1220_v7 = vld [vmem:[%s4449_s21 + $0x18] sm:$0xff] }
 0x2e9   : > { %3032 = vmatpush3.bf16.msra.mxu0 %v3029_v34  ;;  %3002 = vmatprep.subr.bf16.mxu1 %v3001_v39  ;;  %v1188_v8 = vld [vmem:[#allocation2 + $0x18] sm:$0xff]  ;;  %v1221_v9 = vld [vmem:[%s4449_s21 + $0x20] sm:$0xff]  ;;  %v1222_v11 = vld [vmem:[%s4449_s21 + $0x28] sm:$0xff] }
 0x2ea   : > { %3034 = vmatprep.subr.bf16.mxu0 %v3033_v40  ;;  %v1189_v10 = vld [vmem:[#allocation2 + $0x20] sm:$0xff]  ;;  %v1190_v12 = vld [vmem:[#allocation2 + $0x28] sm:$0xff]  ;;  %v1223_v13 = vld [vmem:[%s4449_s21 + $0x30] sm:$0xff] }
 0x2eb   : > { %v1191_v14 = vld [vmem:[#allocation2 + $0x30] sm:$0xff]  ;;  %v1224_v15 = vld [vmem:[%s4449_s21 + $0x38] sm:$0xff]  ;;  %v1225_v17 = vld [vmem:[%s4449_s21 + $0x40] sm:$0xff] }
 0x2ec   : > { %3004 = vmatpush3.bf16.msra.mxu1 %v3001_v39  ;;  %v1192_v16 = vld [vmem:[#allocation2 + $0x38] sm:$0xff]  ;;  %v1193_v18 = vld [vmem:[#allocation2 + $0x40] sm:$0xff]  ;;  %v1226_v19 = vld [vmem:[%s4449_s21 + $0x48] sm:$0xff] }
 0x2ed   : > { %3036 = vmatpush3.bf16.msra.mxu0 %v3033_v40  ;;  %3006 = vmatprep.subr.bf16.mxu1 %v3005_v47  ;;  %v1194_v20 = vld [vmem:[#allocation2 + $0x48] sm:$0xff]  ;;  %v1227_v21 = vld [vmem:[%s4449_s21 + $0x50] sm:$0xff]  ;;  %v1228_v23 = vld [vmem:[%s4449_s21 + $0x58] sm:$0xff] }
 0x2ee   : > { %3038 = vmatprep.subr.bf16.mxu0 %v3037_v48  ;;  %v1195_v22 = vld [vmem:[#allocation2 + $0x50] sm:$0xff]  ;;  %v1196_v24 = vld [vmem:[#allocation2 + $0x58] sm:$0xff]  ;;  %v1229_v25 = vld [vmem:[%s4449_s21 + $0x60] sm:$0xff] }
 0x2ef   : > { %v1197_v26 = vld [vmem:[#allocation2 + $0x60] sm:$0xff]  ;;  %v1230_v27 = vld [vmem:[%s4449_s21 + $0x68] sm:$0xff]  ;;  %v1231_v29 = vld [vmem:[%s4449_s21 + $0x70] sm:$0xff] }
 0x2f0   : > { %3008 = vmatpush3.bf16.msra.mxu1 %v3005_v47  ;;  %v1198_v28 = vld [vmem:[#allocation2 + $0x68] sm:$0xff]  ;;  %v1199_v30 = vld [vmem:[#allocation2 + $0x70] sm:$0xff]  ;;  %v1232_v31 = vld [vmem:[%s4449_s21 + $0x78] sm:$0xff] }
 0x2f1   : > { %3040 = vmatpush3.bf16.msra.mxu0 %v3037_v48  ;;  %3010 = vmatprep.subr.bf16.mxu1 %v3009_v53  ;;  %v1200_v32 = vld [vmem:[#allocation2 + $0x78] sm:$0xff]  ;;  %v1233_v33 = vld [vmem:[%s4449_s21 + $0x80] sm:$0xff]  ;;  %v1234_v35 = vld [vmem:[%s4449_s21 + $0x88] sm:$0xff] }
 0x2f2   : > { %3042 = vmatprep.subr.bf16.mxu0 %v3041_v54  ;;  %v1201_v34 = vld [vmem:[#allocation2 + $0x80] sm:$0xff]  ;;  %v1202_v36 = vld [vmem:[#allocation2 + $0x88] sm:$0xff]  ;;  %v1235_v37 = vld [vmem:[%s4449_s21 + $0x90] sm:$0xff] }
 0x2f3   : > { %v1203_v38 = vld [vmem:[#allocation2 + $0x90] sm:$0xff]  ;;  %v1236_v39 = vld [vmem:[%s4449_s21 + $0x98] sm:$0xff]  ;;  %v1237_v41 = vld [vmem:[%s4449_s21 + $0xa0] sm:$0xff] }
 0x2f4   : > { %3012 = vmatpush3.bf16.msra.mxu1 %v3009_v53  ;;  %v1204_v40 = vld [vmem:[#allocation2 + $0x98] sm:$0xff]  ;;  %v1205_v42 = vld [vmem:[#allocation2 + $0xa0] sm:$0xff]  ;;  %v1238_v43 = vld [vmem:[%s4449_s21 + $0xa8] sm:$0xff] }
 0x2f5   : > { %3044 = vmatpush3.bf16.msra.mxu0 %v3041_v54  ;;  %3014 = vmatprep.subr.bf16.mxu1 %v3013_v59  ;;  %v1206_v44 = vld [vmem:[#allocation2 + $0xa8] sm:$0xff]  ;;  %v1239_v45 = vld [vmem:[%s4449_s21 + $0xb0] sm:$0xff]  ;;  %v1240_v47 = vld [vmem:[%s4449_s21 + $0xb8] sm:$0xff] }
 0x2f6   : > { %3046 = vmatprep.subr.bf16.mxu0 %v3045_v60  ;;  %v1207_v46 = vld [vmem:[#allocation2 + $0xb0] sm:$0xff]  ;;  %v1208_v48 = vld [vmem:[#allocation2 + $0xb8] sm:$0xff]  ;;  %v1241_v49 = vld [vmem:[%s4449_s21 + $0xc0] sm:$0xff] }
 0x2f7   : > { %v1209_v50 = vld [vmem:[#allocation2 + $0xc0] sm:$0xff]  ;;  %v1242_v51 = vld [vmem:[%s4449_s21 + $0xc8] sm:$0xff]  ;;  %v1243_v53 = vld [vmem:[%s4449_s21 + $0xd0] sm:$0xff] }
 0x2f8   : > { %3016 = vmatpush3.bf16.msra.mxu1 %v3013_v59  ;;  %v1210_v52 = vld [vmem:[#allocation2 + $0xc8] sm:$0xff]  ;;  %v1211_v54 = vld [vmem:[#allocation2 + $0xd0] sm:$0xff]  ;;  %v1244_v55 = vld [vmem:[%s4449_s21 + $0xd8] sm:$0xff] }
 0x2f9   : > { %3048 = vmatpush3.bf16.msra.mxu0 %v3045_v60  ;;  %3018 = vmatprep.subr.bf16.mxu1 %v3017_v1  ;;  %v1212_v56 = vld [vmem:[#allocation2 + $0xd8] sm:$0xff]  ;;  %v1245_v57 = vld [vmem:[%s4449_s21 + $0xe0] sm:$0xff]  ;;  %v1246_v59 = vld [vmem:[%s4449_s21 + $0xe8] sm:$0xff] }
 0x2fa   : > { %3050 = vmatprep.subr.bf16.mxu0 %v3049_v2  ;;  %v1213_v58 = vld [vmem:[#allocation2 + $0xe0] sm:$0xff]  ;;  %v1214_v60 = vld [vmem:[#allocation2 + $0xe8] sm:$0xff]  ;;  %v1247_v61 = vld [vmem:[%s4449_s21 + $0xf0] sm:$0xff] }
 0x2fb   : > { %v1215_v62 = vld [vmem:[#allocation2 + $0xf0] sm:$0xff]  ;;  %v1248_v63 = vld [vmem:[%s4449_s21 + $0xf8] sm:$0xff] }
 0x2fc   : > { %3020 = vmatpush3.bf16.msra.mxu1 %v3017_v1  ;;  %v1216_v0 = vld [vmem:[#allocation2 + $0xf8] sm:$0xff]  ;;  %v1770_v1 = vlaneseq }
 0x2fd   : > { %3052 = vmatpush3.bf16.msra.mxu0 %v3049_v2 }
 0x2fe   : > { %v4553_v2 = vand.u32 127, %v1770_v1 }
 0x2ff   : > { %2862 = vmatmul.mubr.f32.vlgmr.msra.gmra.mrb[0].mxu1 %v1218_v3 }
 0x300   : > { %2942 = vmatmul.mubr.f32.vlgmr.msra.gmra.mrb[0].mxu0 %v1186_v4  ;;  %2864 = vmatprep.mubr.f32.mxu1 %v1219_v5  ;;  %vm1772_vm0 = vcmp.lt.s32.totalorder %v4553_v2, 32 }
 0x301   : > { %2944 = vmatprep.mubr.f32.mxu0 %v1187_v6  ;;  %v4555_v6 = vld [vmem:[#allocation15] ss:$0 sm:$0xff] }
 0x303   : > { %2865 = vmatmul.mubr.f32.gmra.mrb[2].mxu1 %v1220_v7 }
 0x304   : > { %2945 = vmatmul.mubr.f32.gmra.mrb[2].mxu0 %v1188_v8  ;;  %2867 = vmatprep.mubr.f32.mxu1 %v1221_v9 }
 0x305   : > { %2947 = vmatprep.mubr.f32.mxu0 %v1189_v10 }
 0x307   : > { %2868 = vmatmul.mubr.f32.gmra.mrb[4].mxu1 %v1222_v11 }
 0x308   : > { %2948 = vmatmul.mubr.f32.gmra.mrb[4].mxu0 %v1190_v12  ;;  %2870 = vmatprep.mubr.f32.mxu1 %v1223_v13 }
 0x309   : > { %2950 = vmatprep.mubr.f32.mxu0 %v1191_v14 }
 0x30b   : > { %2871 = vmatmul.mubr.f32.gmra.mrb[6].mxu1 %v1224_v15 }
 0x30c   : > { %2951 = vmatmul.mubr.f32.gmra.mrb[6].mxu0 %v1192_v16  ;;  %2873 = vmatprep.mubr.f32.mxu1 %v1225_v17 }
 0x30d   : > { %2953 = vmatprep.mubr.f32.mxu0 %v1193_v18 }
 0x30f   : > { %2874 = vmatmul.mubr.f32.gmra.mrb[8].mxu1 %v1226_v19 }
 0x310   : > { %2954 = vmatmul.mubr.f32.gmra.mrb[8].mxu0 %v1194_v20  ;;  %2876 = vmatprep.mubr.f32.mxu1 %v1227_v21 }
 0x311   : > { %2956 = vmatprep.mubr.f32.mxu0 %v1195_v22 }
 0x313   : > { %2877 = vmatmul.mubr.f32.gmra.mrb[10].mxu1 %v1228_v23 }
 0x314   : > { %2957 = vmatmul.mubr.f32.gmra.mrb[10].mxu0 %v1196_v24  ;;  %2879 = vmatprep.mubr.f32.mxu1 %v1229_v25 }
 0x315   : > { %2959 = vmatprep.mubr.f32.mxu0 %v1197_v26 }
 0x317   : > { %2880 = vmatmul.mubr.f32.gmra.mrb[12].mxu1 %v1230_v27 }
 0x318   : > { %2960 = vmatmul.mubr.f32.gmra.mrb[12].mxu0 %v1198_v28  ;;  %2882 = vmatprep.mubr.f32.mxu1 %v1231_v29 }
 0x319   : > { %2962 = vmatprep.mubr.f32.mxu0 %v1199_v30 }
 0x31b   : > { %2883 = vmatmul.mubr.f32.gmra.mrb[14].mxu1 %v1232_v31 }
 0x31c   : > { %2963 = vmatmul.mubr.f32.gmra.mrb[14].mxu0 %v1200_v32  ;;  %2885 = vmatprep.mubr.f32.mxu1 %v1233_v33 }
 0x31d   : > { %2965 = vmatprep.mubr.f32.mxu0 %v1201_v34 }
 0x31f   : > { %2886 = vmatmul.mubr.f32.gmra.mrb[16].mxu1 %v1234_v35 }
 0x320   : > { %2966 = vmatmul.mubr.f32.gmra.mrb[16].mxu0 %v1202_v36  ;;  %2888 = vmatprep.mubr.f32.mxu1 %v1235_v37 }
 0x321   : > { %2968 = vmatprep.mubr.f32.mxu0 %v1203_v38 }
 0x323   : > { %2889 = vmatmul.mubr.f32.gmra.mrb[18].mxu1 %v1236_v39 }
 0x324   : > { %2969 = vmatmul.mubr.f32.gmra.mrb[18].mxu0 %v1204_v40  ;;  %2891 = vmatprep.mubr.f32.mxu1 %v1237_v41 }
 0x325   : > { %2971 = vmatprep.mubr.f32.mxu0 %v1205_v42 }
 0x327   : > { %2892 = vmatmul.mubr.f32.gmra.mrb[20].mxu1 %v1238_v43 }
 0x328   : > { %2972 = vmatmul.mubr.f32.gmra.mrb[20].mxu0 %v1206_v44  ;;  %2894 = vmatprep.mubr.f32.mxu1 %v1239_v45 }
 0x329   : > { %2974 = vmatprep.mubr.f32.mxu0 %v1207_v46 }
 0x32b   : > { %2895 = vmatmul.mubr.f32.gmra.mrb[22].mxu1 %v1240_v47 }
 0x32c   : > { %2975 = vmatmul.mubr.f32.gmra.mrb[22].mxu0 %v1208_v48  ;;  %2897 = vmatprep.mubr.f32.mxu1 %v1241_v49 }
 0x32d   : > { %2977 = vmatprep.mubr.f32.mxu0 %v1209_v50 }
 0x32f   : > { %2898 = vmatmul.mubr.f32.gmra.mrb[24].mxu1 %v1242_v51 }
 0x330   : > { %2978 = vmatmul.mubr.f32.gmra.mrb[24].mxu0 %v1210_v52  ;;  %2900 = vmatprep.mubr.f32.mxu1 %v1243_v53 }
 0x331   : > { %2980 = vmatprep.mubr.f32.mxu0 %v1211_v54 }
 0x333   : > { %2901 = vmatmul.mubr.f32.gmra.mrb[26].mxu1 %v1244_v55 }
 0x334   : > { %2981 = vmatmul.mubr.f32.gmra.mrb[26].mxu0 %v1212_v56  ;;  %2903 = vmatprep.mubr.f32.mxu1 %v1245_v57 }
 0x335   : > { %2983 = vmatprep.mubr.f32.mxu0 %v1213_v58 }
 0x337   : > { %2904 = vmatmul.mubr.f32.gmra.mrb[28].mxu1 %v1246_v59 }
 0x338   : > { %2984 = vmatmul.mubr.f32.gmra.mrb[28].mxu0 %v1214_v60  ;;  %2906 = vmatprep.mubr.f32.mxu1 %v1247_v61 }
 0x339   : > { %2986 = vmatprep.mubr.f32.mxu0 %v1215_v62 }
 0x33b   : > { %2907 = vmatmul.mubr.f32.gmra.mrb[30].mxu1 %v1248_v63 }
 0x33c   : > { %2987 = vmatmul.mubr.f32.gmra.mrb[30].mxu0 %v1216_v0 }
 0x3d2   : > { %v2863_v3 = vpop.f32.mrb[0].mxu1 }
 0x3d3   : > { %v2943_v4 = vpop.f32.mrb[0].mxu0  ;;  %v1347_v5 = vpop.f32.mrb[1].mxu1 }
 0x3d4   : > { %v1578_v7 = vadd.f32 %v2943_v4, %v2863_v3  ;;  %v1572_v8 = vpop.f32.mrb[1].mxu0 }
 0x3d5   : > { %v1573_v9 = vadd.f32 %v1572_v8, %v1347_v5 }
 0x3d6   : > { %v2866_v10 = vpop.f32.mrb[2].mxu1  ;;  %v1739_v11 = vadd.f32 %v4555_v6, %v1578_v7 }
 0x3d7   : > { %v2946_v12 = vpop.f32.mrb[2].mxu0  ;;  %v1357_v13 = vpop.f32.mrb[3].mxu1  ;;  %v1738_v17 = vadd.f32 %v4555_v6, %v1573_v9 }
 0x3d8   : > { %v1588_v14 = vadd.f32 %v2946_v12, %v2866_v10  ;;  %v1582_v15 = vpop.f32.mrb[3].mxu0  ;;  %v4561_v16 = vsel %vm1772_vm0, %v1739_v11, 0.0 }
 0x3d9   : > { %v1583_v18 = vadd.f32 %v1582_v15, %v1357_v13  ;;  %1807 = vadd.xlane.f32.xlu0 %v4561_v16  ;;  %v4572_v26 = vsel %vm1772_vm0, %v1738_v17, 0.0 }
 0x3da   : > { %v2869_v19 = vpop.f32.mrb[4].mxu1  ;;  %v1741_v20 = vadd.f32 %v4555_v6, %v1588_v14 }
 0x3db   : > { %v2949_v21 = vpop.f32.mrb[4].mxu0  ;;  %v1367_v22 = vpop.f32.mrb[5].mxu1  ;;  %v1740_v27 = vadd.f32 %v4555_v6, %v1583_v18 }
 0x3dc   : > { %v1598_v23 = vadd.f32 %v2949_v21, %v2869_v19  ;;  %v1592_v24 = vpop.f32.mrb[5].mxu0  ;;  %v4568_v25 = vsel %vm1772_vm0, %v1741_v20, 0.0 }
 0x3dd   : > { %v1593_v28 = vadd.f32 %v1592_v24, %v1367_v22  ;;  %1811 = vadd.xlane.f32.xlu1 %v4568_v25  ;;  %1805 = vadd.xlane.f32.xlu0 %v4572_v26  ;;  %v4581_v36 = vsel %vm1772_vm0, %v1740_v27, 0.0 }
 0x3de   : > { %v2872_v29 = vpop.f32.mrb[6].mxu1  ;;  %v1743_v30 = vadd.f32 %v4555_v6, %v1598_v23 }
 0x3df   : > { %v2952_v31 = vpop.f32.mrb[6].mxu0  ;;  %v1377_v32 = vpop.f32.mrb[7].mxu1  ;;  %v1742_v33 = vadd.f32 %v4555_v6, %v1593_v28 }
 0x3e0   : > { %v1608_v34 = vadd.f32 %v2952_v31, %v2872_v29  ;;  %v1602_v35 = vpop.f32.mrb[7].mxu0  ;;  %v4591_v40 = vsel %vm1772_vm0, %v1743_v30, 0.0 }
 0x3e1   : > { %v1603_v37 = vadd.f32 %v1602_v35, %v1377_v32  ;;  %1809 = vadd.xlane.f32.xlu1 %v4581_v36  ;;  %v4586_v38 = vsel %vm1772_vm0, %v1742_v33, 0.0 }
 0x3e2   : > { %1813 = vadd.xlane.f32.xlu0 %v4586_v38  ;;  %v2875_v39 = vpop.f32.mrb[8].mxu1  ;;  %v1745_v41 = vadd.f32 %v4555_v6, %v1608_v34 }
 0x3e3   : > { %v2955_v42 = vpop.f32.mrb[8].mxu0  ;;  %v1387_v43 = vpop.f32.mrb[9].mxu1  ;;  %v1744_v44 = vadd.f32 %v4555_v6, %v1603_v37 }
 0x3e4   : > { %v1618_v45 = vadd.f32 %v2955_v42, %v2875_v39  ;;  %v1612_v46 = vpop.f32.mrb[9].mxu0  ;;  %v4603_v50 = vsel %vm1772_vm0, %v1745_v41, 0.0 }
 0x3e5   : > { %v1613_v47 = vadd.f32 %v1612_v46, %v1387_v43  ;;  %1815 = vadd.xlane.f32.xlu1 %v4591_v40  ;;  %v4598_v48 = vsel %vm1772_vm0, %v1744_v44, 0.0 }
 0x3e6   : > { %1817 = vadd.xlane.f32.xlu0 %v4598_v48  ;;  %v2878_v49 = vpop.f32.mrb[10].mxu1  ;;  %v1747_v51 = vadd.f32 %v4555_v6, %v1618_v45 }
 0x3e7   : > { %v2958_v52 = vpop.f32.mrb[10].mxu0  ;;  %v1397_v53 = vpop.f32.mrb[11].mxu1  ;;  %v1746_v54 = vadd.f32 %v4555_v6, %v1613_v47 }
 0x3e8   : > { %v1628_v55 = vadd.f32 %v2958_v52, %v2878_v49  ;;  %v1622_v56 = vpop.f32.mrb[11].mxu0  ;;  %v4615_v60 = vsel %vm1772_vm0, %v1747_v51, 0.0 }
 0x3e9   : > { %v1623_v57 = vadd.f32 %v1622_v56, %v1397_v53  ;;  %1819 = vadd.xlane.f32.xlu1 %v4603_v50  ;;  %v4610_v58 = vsel %vm1772_vm0, %v1746_v54, 0.0 }
 0x3ea   : > { %1821 = vadd.xlane.f32.xlu0 %v4610_v58  ;;  %v2881_v59 = vpop.f32.mrb[12].mxu1  ;;  %v1749_v61 = vadd.f32 %v4555_v6, %v1628_v55 }
 0x3eb   : > { %v2961_v62 = vpop.f32.mrb[12].mxu0  ;;  %v1407_v63 = vpop.f32.mrb[13].mxu1  ;;  %v1748_v0 = vadd.f32 %v4555_v6, %v1623_v57 }
 0x3ec   : > { %v1638_v1 = vadd.f32 %v2961_v62, %v2881_v59  ;;  %v1632_v3 = vpop.f32.mrb[13].mxu0  ;;  %v4627_v8 = vsel %vm1772_vm0, %v1749_v61, 0.0 }
 0x3ed   : > { %v1633_v4 = vadd.f32 %v1632_v3, %v1407_v63  ;;  %1823 = vadd.xlane.f32.xlu1 %v4615_v60  ;;  %v4622_v5 = vsel %vm1772_vm0, %v1748_v0, 0.0 }
 0x3ee   : > { %1825 = vadd.xlane.f32.xlu0 %v4622_v5  ;;  %v2884_v7 = vpop.f32.mrb[14].mxu1  ;;  %v1751_v9 = vadd.f32 %v4555_v6, %v1638_v1 }
 0x3ef   : > { %v2964_v10 = vpop.f32.mrb[14].mxu0  ;;  %v1417_v11 = vpop.f32.mrb[15].mxu1  ;;  %v1750_v12 = vadd.f32 %v4555_v6, %v1633_v4 }
 0x3f0   : > { %v1648_v13 = vadd.f32 %v2964_v10, %v2884_v7  ;;  %v1642_v14 = vpop.f32.mrb[15].mxu0  ;;  %v4639_v19 = vsel %vm1772_vm0, %v1751_v9, 0.0 }
 0x3f1   : > { %v1643_v15 = vadd.f32 %v1642_v14, %v1417_v11  ;;  %1827 = vadd.xlane.f32.xlu1 %v4627_v8  ;;  %v4634_v17 = vsel %vm1772_vm0, %v1750_v12, 0.0 }
 0x3f2   : > { %1829 = vadd.xlane.f32.xlu0 %v4634_v17  ;;  %v2887_v18 = vpop.f32.mrb[16].mxu1  ;;  %v1753_v20 = vadd.f32 %v4555_v6, %v1648_v13 }
 0x3f3   : > { %v2967_v21 = vpop.f32.mrb[16].mxu0  ;;  %v1427_v22 = vpop.f32.mrb[17].mxu1  ;;  %v1752_v23 = vadd.f32 %v4555_v6, %v1643_v15 }
 0x3f4   : > { %v1658_v24 = vadd.f32 %v2967_v21, %v2887_v18  ;;  %v1652_v27 = vpop.f32.mrb[17].mxu0  ;;  %v4651_v31 = vsel %vm1772_vm0, %v1753_v20, 0.0 }
 0x3f5   : > { %v1653_v28 = vadd.f32 %v1652_v27, %v1427_v22  ;;  %1831 = vadd.xlane.f32.xlu1 %v4639_v19  ;;  %v4646_v29 = vsel %vm1772_vm0, %v1752_v23, 0.0 }
 0x3f6   : > { %1833 = vadd.xlane.f32.xlu0 %v4646_v29  ;;  %v2890_v30 = vpop.f32.mrb[18].mxu1  ;;  %v1755_v32 = vadd.f32 %v4555_v6, %v1658_v24 }
 0x3f7   : > { %v2970_v33 = vpop.f32.mrb[18].mxu0  ;;  %v1437_v34 = vpop.f32.mrb[19].mxu1  ;;  %v1754_v35 = vadd.f32 %v4555_v6, %v1653_v28 }
 0x3f8   : > { %v1668_v37 = vadd.f32 %v2970_v33, %v2890_v30  ;;  %v1662_v39 = vpop.f32.mrb[19].mxu0  ;;  %v4663_v44 = vsel %vm1772_vm0, %v1755_v32, 0.0 }
 0x3f9   : > { %v1663_v41 = vadd.f32 %v1662_v39, %v1437_v34  ;;  %1835 = vadd.xlane.f32.xlu1 %v4651_v31  ;;  %v4658_v42 = vsel %vm1772_vm0, %v1754_v35, 0.0 }
 0x3fa   : > { %1837 = vadd.xlane.f32.xlu0 %v4658_v42  ;;  %v2893_v43 = vpop.f32.mrb[20].mxu1  ;;  %v1757_v45 = vadd.f32 %v4555_v6, %v1668_v37 }
 0x3fb   : > { %v2973_v46 = vpop.f32.mrb[20].mxu0  ;;  %v1447_v47 = vpop.f32.mrb[21].mxu1  ;;  %v1756_v49 = vadd.f32 %v4555_v6, %v1663_v41 }
 0x3fc   : > { %v1678_v51 = vadd.f32 %v2973_v46, %v2893_v43  ;;  %v1672_v52 = vpop.f32.mrb[21].mxu0  ;;  %v4675_v56 = vsel %vm1772_vm0, %v1757_v45, 0.0 }
 0x3fd   : > { %v1673_v53 = vadd.f32 %v1672_v52, %v1447_v47  ;;  %1839 = vadd.xlane.f32.xlu1 %v4663_v44  ;;  %v4670_v54 = vsel %vm1772_vm0, %v1756_v49, 0.0 }
 0x3fe   : > { %1841 = vadd.xlane.f32.xlu0 %v4670_v54  ;;  %v2896_v55 = vpop.f32.mrb[22].mxu1  ;;  %v1759_v57 = vadd.f32 %v4555_v6, %v1678_v51 }
 0x3ff   : > { %v2976_v59 = vpop.f32.mrb[22].mxu0  ;;  %v1457_v61 = vpop.f32.mrb[23].mxu1  ;;  %v1758_v62 = vadd.f32 %v4555_v6, %v1673_v53 }
 0x400   : > { %v1688_v63 = vadd.f32 %v2976_v59, %v2896_v55  ;;  %v1682_v0 = vpop.f32.mrb[23].mxu0  ;;  %v4687_v7 = vsel %vm1772_vm0, %v1759_v57, 0.0 }
 0x401   : > { %v1683_v1 = vadd.f32 %v1682_v0, %v1457_v61  ;;  %1843 = vadd.xlane.f32.xlu1 %v4675_v56  ;;  %v4682_v3 = vsel %vm1772_vm0, %v1758_v62, 0.0 }
 0x402   : > { %1845 = vadd.xlane.f32.xlu0 %v4682_v3  ;;  %v2899_v4 = vpop.f32.mrb[24].mxu1  ;;  %v1761_v9 = vadd.f32 %v4555_v6, %v1688_v63 }
 0x403   : > { %v2979_v10 = vpop.f32.mrb[24].mxu0  ;;  %v1467_v11 = vpop.f32.mrb[25].mxu1  ;;  %v1760_v12 = vadd.f32 %v4555_v6, %v1683_v1 }
 0x404   : > { %v1698_v13 = vadd.f32 %v2979_v10, %v2899_v4  ;;  %v1692_v14 = vpop.f32.mrb[25].mxu0  ;;  %v4699_v21 = vsel %vm1772_vm0, %v1761_v9, 0.0 }
 0x405   : > { %v1693_v15 = vadd.f32 %v1692_v14, %v1467_v11  ;;  %1847 = vadd.xlane.f32.xlu1 %v4687_v7  ;;  %v4694_v18 = vsel %vm1772_vm0, %v1760_v12, 0.0 }
 0x406   : > { %1849 = vadd.xlane.f32.xlu0 %v4694_v18  ;;  %v2902_v20 = vpop.f32.mrb[26].mxu1  ;;  %v1763_v22 = vadd.f32 %v4555_v6, %v1698_v13 }
 0x407   : > { %v2982_v23 = vpop.f32.mrb[26].mxu0  ;;  %v1477_v24 = vpop.f32.mrb[27].mxu1  ;;  %v1762_v27 = vadd.f32 %v4555_v6, %v1693_v15 }
 0x408   : > { %v1708_v28 = vadd.f32 %v2982_v23, %v2902_v20  ;;  %v1702_v30 = vpop.f32.mrb[27].mxu0  ;;  %v4711_v35 = vsel %vm1772_vm0, %v1763_v22, 0.0 }
 0x409   : > { %v1703_v32 = vadd.f32 %v1702_v30, %v1477_v24  ;;  %1851 = vadd.xlane.f32.xlu1 %v4699_v21  ;;  %v4706_v33 = vsel %vm1772_vm0, %v1762_v27, 0.0 }
 0x40a   : > { %1853 = vadd.xlane.f32.xlu0 %v4706_v33  ;;  %v2905_v34 = vpop.f32.mrb[28].mxu1  ;;  %v1765_v37 = vadd.f32 %v4555_v6, %v1708_v28 }
 0x40b   : > { %v2985_v39 = vpop.f32.mrb[28].mxu0  ;;  %v1487_v41 = vpop.f32.mrb[29].mxu1  ;;  %v1764_v43 = vadd.f32 %v4555_v6, %v1703_v32 }
 0x40c   : > { %v1718_v45 = vadd.f32 %v2985_v39, %v2905_v34  ;;  %v1712_v46 = vpop.f32.mrb[29].mxu0  ;;  %v4723_v52 = vsel %vm1772_vm0, %v1765_v37, 0.0 }
 0x40d   : > { %v1713_v47 = vadd.f32 %v1712_v46, %v1487_v41  ;;  %1855 = vadd.xlane.f32.xlu1 %v4711_v35  ;;  %v4718_v49 = vsel %vm1772_vm0, %v1764_v43, 0.0 }
 0x40e   : > { %1857 = vadd.xlane.f32.xlu0 %v4718_v49  ;;  %v2908_v51 = vpop.f32.mrb[30].mxu1  ;;  %v1767_v53 = vadd.f32 %v4555_v6, %v1718_v45 }
 0x40f   : > { %v2988_v55 = vpop.f32.mrb[30].mxu0  ;;  %v1497_v57 = vpop.f32.mrb[31].mxu1  ;;  %v1766_v59 = vadd.f32 %v4555_v6, %v1713_v47 }
 0x410   : > { %v1728_v61 = vadd.f32 %v2988_v55, %v2908_v51  ;;  %v1722_v62 = vpop.f32.mrb[31].mxu0  ;;  %v4735_v1 = vsel %vm1772_vm0, %v1767_v53, 0.0 }
 0x411   : > { %v1723_v63 = vadd.f32 %v1722_v62, %v1497_v57  ;;  %1859 = vadd.xlane.f32.xlu1 %v4723_v52  ;;  %v4730_v0 = vsel %vm1772_vm0, %v1766_v59, 0.0 }
 0x412   : > { %1861 = vadd.xlane.f32.xlu0 %v4730_v0  ;;  %v1769_v4 = vadd.f32 %v4555_v6, %v1728_v61 }
 0x413   : > { %v1768_v9 = vadd.f32 %v4555_v6, %v1723_v63 }
 0x414   : > { %v4747_v11 = vsel %vm1772_vm0, %v1769_v4, 0.0 }
 0x415   : > { %1863 = vadd.xlane.f32.xlu1 %v4735_v1  ;;  %v4742_v10 = vsel %vm1772_vm0, %v1768_v9, 0.0 }
 0x416   : > { %1865 = vadd.xlane.f32.xlu0 %v4742_v10 }
 0x419   : > { %1867 = vadd.xlane.f32.xlu1 %v4747_v11 }
 0x466   : > { %v1808_v12 = vpop.xlane.xlu0 %1807 }
 0x467   : > { %v1870_v13 = vmul.f32 0.03125, %v1808_v12 }
 0x469   : > { %v1902_v14 = vsub.f32 %v4561_v16, %v1870_v13 }
 0x46a   : > { %v1812_v15 = vpop.xlane.xlu1 %1811  ;;  %v1806_v6 = vpop.xlane.xlu0 %1805 }
 0x46b   : > { %v1872_v20 = vmul.f32 0.03125, %v1812_v15  ;;  %v1869_v22 = vmul.f32 0.03125, %v1806_v6  ;;  %v4753_v23 = vsel %vm1772_vm0, %v1902_v14, 0.0 }
 0x46c   : > { %v1966_v24 = vmul.f32 %v4753_v23, %v4753_v23 }
 0x46d   : > { %v1904_v27 = vsub.f32 %v4568_v25, %v1872_v20  ;;  %v1901_v28 = vsub.f32 %v4572_v26, %v1869_v22 }
 0x46e   : > { %1999 = vadd.xlane.f32.xlu1 %v1966_v24  ;;  %v1810_v30 = vpop.xlane.xlu1 %1809 }
 0x46f   : > { %v1871_v32 = vmul.f32 0.03125, %v1810_v30  ;;  %v1814_v34 = vpop.xlane.xlu0 %1813  ;;  %v4761_v16 = vsel %vm1772_vm0, %v1904_v27, 0.0  ;;  %v4765_v37 = vsel %vm1772_vm0, %v1901_v28, 0.0 }
 0x470   : > { %v1873_v39 = vmul.f32 0.03125, %v1814_v34  ;;  %v1968_v41 = vmul.f32 %v4761_v16, %v4761_v16  ;;  %v1965_v25 = vmul.f32 %v4765_v37, %v4765_v37 }
 0x471   : > { %v1903_v26 = vsub.f32 %v4581_v36, %v1871_v32 }
 0x472   : > { %v1905_v43 = vsub.f32 %v4586_v38, %v1873_v39  ;;  %2003 = vadd.xlane.f32.xlu1 %v1968_v41  ;;  %v1816_v45 = vpop.xlane.xlu1 %1815  ;;  %1997 = vadd.xlane.f32.xlu0 %v1965_v25 }
 0x473   : > { %v1874_v46 = vmul.f32 0.03125, %v1816_v45  ;;  %v1818_v47 = vpop.xlane.xlu0 %1817  ;;  %v4775_v51 = vsel %vm1772_vm0, %v1903_v26, 0.0 }
 0x474   : > { %v1875_v53 = vmul.f32 0.03125, %v1818_v47  ;;  %v1967_v55 = vmul.f32 %v4775_v51, %v4775_v51  ;;  %v4782_v36 = vsel %vm1772_vm0, %v1905_v43, 0.0 }
 0x475   : > { %v1906_v57 = vsub.f32 %v4591_v40, %v1874_v46  ;;  %v1969_v40 = vmul.f32 %v4782_v36, %v4782_v36 }
 0x476   : > { %v1907_v38 = vsub.f32 %v4598_v48, %v1875_v53  ;;  %v1820_v59 = vpop.xlane.xlu1 %1819  ;;  %2001 = vadd.xlane.f32.xlu0 %v1967_v55 }
 0x477   : > { %v1876_v61 = vmul.f32 0.03125, %v1820_v59  ;;  %v1822_v62 = vpop.xlane.xlu0 %1821  ;;  %v4787_v63 = vsel %vm1772_vm0, %v1906_v57, 0.0 }
 0x478   : > { %v1877_v4 = vmul.f32 0.03125, %v1822_v62  ;;  %v1970_v9 = vmul.f32 %v4787_v63, %v4787_v63  ;;  %v4796_v48 = vsel %vm1772_vm0, %v1907_v38, 0.0 }
 0x479   : > { %v1908_v12 = vsub.f32 %v4603_v50, %v1876_v61  ;;  %v1971_v50 = vmul.f32 %v4796_v48, %v4796_v48 }
 0x47a   : > { %v1909_v13 = vsub.f32 %v4610_v58, %v1877_v4  ;;  %2007 = vadd.xlane.f32.xlu1 %v1970_v9  ;;  %v1824_v14 = vpop.xlane.xlu1 %1823  ;;  %2005 = vadd.xlane.f32.xlu0 %v1969_v40 }
 0x47b   : > { %v1878_v15 = vmul.f32 0.03125, %v1824_v14  ;;  %v1826_v6 = vpop.xlane.xlu0 %1825  ;;  %v4801_v20 = vsel %vm1772_vm0, %v1908_v12, 0.0 }
 0x47c   : > { %v1879_v22 = vmul.f32 0.03125, %v1826_v6  ;;  %v1972_v24 = vmul.f32 %v4801_v20, %v4801_v20  ;;  %v4810_v58 = vsel %vm1772_vm0, %v1909_v13, 0.0 }
 0x47d   : > { %v1910_v27 = vsub.f32 %v4615_v60, %v1878_v15  ;;  %v1973_v60 = vmul.f32 %v4810_v58, %v4810_v58 }
 0x47e   : > { %v1911_v28 = vsub.f32 %v4622_v5, %v1879_v22  ;;  %2011 = vadd.xlane.f32.xlu1 %v1972_v24  ;;  %v1828_v30 = vpop.xlane.xlu1 %1827  ;;  %2009 = vadd.xlane.f32.xlu0 %v1971_v50 }
 0x47f   : > { %v1880_v32 = vmul.f32 0.03125, %v1828_v30  ;;  %v1830_v34 = vpop.xlane.xlu0 %1829  ;;  %v4815_v39 = vsel %vm1772_vm0, %v1910_v27, 0.0 }
 0x480   : > { %v1881_v41 = vmul.f32 0.03125, %v1830_v34  ;;  %v1974_v25 = vmul.f32 %v4815_v39, %v4815_v39  ;;  %v4824_v5 = vsel %vm1772_vm0, %v1911_v28, 0.0 }
 0x481   : > { %v1912_v26 = vsub.f32 %v4627_v8, %v1880_v32  ;;  %v1975_v8 = vmul.f32 %v4824_v5, %v4824_v5 }
 0x482   : > { %v1913_v43 = vsub.f32 %v4634_v17, %v1881_v41  ;;  %2015 = vadd.xlane.f32.xlu1 %v1974_v25  ;;  %v1832_v45 = vpop.xlane.xlu1 %1831  ;;  %2013 = vadd.xlane.f32.xlu0 %v1973_v60 }
 0x483   : > { %v1882_v46 = vmul.f32 0.03125, %v1832_v45  ;;  %v1834_v47 = vpop.xlane.xlu0 %1833  ;;  %v4829_v53 = vsel %vm1772_vm0, %v1912_v26, 0.0 }
 0x484   : > { %v1883_v55 = vmul.f32 0.03125, %v1834_v47  ;;  %v1976_v57 = vmul.f32 %v4829_v53, %v4829_v53  ;;  %v4838_v17 = vsel %vm1772_vm0, %v1913_v43, 0.0 }
 0x485   : > { %v1914_v38 = vsub.f32 %v4639_v19, %v1882_v46  ;;  %v1977_v19 = vmul.f32 %v4838_v17, %v4838_v17 }
 0x486   : > { %v1915_v59 = vsub.f32 %v4646_v29, %v1883_v55  ;;  %2019 = vadd.xlane.f32.xlu1 %v1976_v57  ;;  %v1836_v61 = vpop.xlane.xlu1 %1835  ;;  %2017 = vadd.xlane.f32.xlu0 %v1975_v8 }
 0x487   : > { %v1884_v62 = vmul.f32 0.03125, %v1836_v61  ;;  %v1838_v4 = vpop.xlane.xlu0 %1837  ;;  %v4843_v9 = vsel %vm1772_vm0, %v1914_v38, 0.0 }
 0x488   : > { %v1885_v40 = vmul.f32 0.03125, %v1838_v4  ;;  %v1978_v12 = vmul.f32 %v4843_v9, %v4843_v9  ;;  %v4852_v29 = vsel %vm1772_vm0, %v1915_v59, 0.0 }
 0x489   : > { %v1916_v13 = vsub.f32 %v4651_v31, %v1884_v62  ;;  %v1979_v31 = vmul.f32 %v4852_v29, %v4852_v29 }
 0x48a   : > { %v1917_v14 = vsub.f32 %v4658_v42, %v1885_v40  ;;  %2023 = vadd.xlane.f32.xlu1 %v1978_v12  ;;  %v1840_v15 = vpop.xlane.xlu1 %1839  ;;  %2021 = vadd.xlane.f32.xlu0 %v1977_v19 }
 0x48b   : > { %v1886_v6 = vmul.f32 0.03125, %v1840_v15  ;;  %v1842_v22 = vpop.xlane.xlu0 %1841  ;;  %v4857_v24 = vsel %vm1772_vm0, %v1916_v13, 0.0 }
 0x48c   : > { %v1887_v50 = vmul.f32 0.03125, %v1842_v22  ;;  %v1980_v27 = vmul.f32 %v4857_v24, %v4857_v24  ;;  %v4866_v42 = vsel %vm1772_vm0, %v1917_v14, 0.0 }
 0x48d   : > { %v1918_v28 = vsub.f32 %v4663_v44, %v1886_v6  ;;  %v1981_v44 = vmul.f32 %v4866_v42, %v4866_v42 }
 0x48e   : > { %v1919_v30 = vsub.f32 %v4670_v54, %v1887_v50  ;;  %2027 = vadd.xlane.f32.xlu1 %v1980_v27  ;;  %v1844_v32 = vpop.xlane.xlu1 %1843  ;;  %2025 = vadd.xlane.f32.xlu0 %v1979_v31 }
 0x48f   : > { %v1888_v34 = vmul.f32 0.03125, %v1844_v32  ;;  %v1846_v41 = vpop.xlane.xlu0 %1845  ;;  %v4871_v25 = vsel %vm1772_vm0, %v1918_v28, 0.0 }
 0x490   : > { %v1889_v60 = vmul.f32 0.03125, %v1846_v41  ;;  %v1982_v26 = vmul.f32 %v4871_v25, %v4871_v25  ;;  %v4880_v54 = vsel %vm1772_vm0, %v1919_v30, 0.0 }
 0x491   : > { %v1920_v43 = vsub.f32 %v4675_v56, %v1888_v34  ;;  %v1983_v56 = vmul.f32 %v4880_v54, %v4880_v54 }
 0x492   : > { %v1921_v45 = vsub.f32 %v4682_v3, %v1889_v60  ;;  %2031 = vadd.xlane.f32.xlu1 %v1982_v26  ;;  %v1848_v46 = vpop.xlane.xlu1 %1847  ;;  %2029 = vadd.xlane.f32.xlu0 %v1981_v44 }
 0x493   : > { %v1890_v47 = vmul.f32 0.03125, %v1848_v46  ;;  %v1850_v55 = vpop.xlane.xlu0 %1849  ;;  %v4885_v57 = vsel %vm1772_vm0, %v1920_v43, 0.0 }
 0x494   : > { %v1891_v8 = vmul.f32 0.03125, %v1850_v55  ;;  %v1984_v38 = vmul.f32 %v4885_v57, %v4885_v57  ;;  %v4894_v3 = vsel %vm1772_vm0, %v1921_v45, 0.0 }
 0x495   : > { %v1922_v59 = vsub.f32 %v4687_v7, %v1890_v47  ;;  %v1985_v7 = vmul.f32 %v4894_v3, %v4894_v3 }
 0x496   : > { %v1923_v61 = vsub.f32 %v4694_v18, %v1891_v8  ;;  %2035 = vadd.xlane.f32.xlu1 %v1984_v38  ;;  %v1852_v62 = vpop.xlane.xlu1 %1851  ;;  %2033 = vadd.xlane.f32.xlu0 %v1983_v56 }
 0x497   : > { %v1892_v4 = vmul.f32 0.03125, %v1852_v62  ;;  %v1854_v40 = vpop.xlane.xlu0 %1853  ;;  %v4899_v12 = vsel %vm1772_vm0, %v1922_v59, 0.0 }
 0x498   : > { %v1893_v19 = vmul.f32 0.03125, %v1854_v40  ;;  %v1986_v13 = vmul.f32 %v4899_v12, %v4899_v12  ;;  %v4908_v18 = vsel %vm1772_vm0, %v1923_v61, 0.0 }
 0x499   : > { %v1924_v14 = vsub.f32 %v4699_v21, %v1892_v4  ;;  %v1987_v21 = vmul.f32 %v4908_v18, %v4908_v18 }
 0x49a   : > { %v1925_v15 = vsub.f32 %v4706_v33, %v1893_v19  ;;  %2039 = vadd.xlane.f32.xlu1 %v1986_v13  ;;  %v1856_v6 = vpop.xlane.xlu1 %1855  ;;  %2037 = vadd.xlane.f32.xlu0 %v1985_v7 }
 0x49b   : > { %v1894_v22 = vmul.f32 0.03125, %v1856_v6  ;;  %v1858_v50 = vpop.xlane.xlu0 %1857  ;;  %v4913_v27 = vsel %vm1772_vm0, %v1924_v14, 0.0 }
 0x49c   : > { %v1895_v31 = vmul.f32 0.03125, %v1858_v50  ;;  %v1988_v28 = vmul.f32 %v4913_v27, %v4913_v27  ;;  %v4922_v33 = vsel %vm1772_vm0, %v1925_v15, 0.0 }
 0x49d   : > { %v1926_v30 = vsub.f32 %v4711_v35, %v1894_v22  ;;  %v1989_v35 = vmul.f32 %v4922_v33, %v4922_v33 }
 0x49e   : > { %v1927_v32 = vsub.f32 %v4718_v49, %v1895_v31  ;;  %2043 = vadd.xlane.f32.xlu1 %v1988_v28  ;;  %v1860_v34 = vpop.xlane.xlu1 %1859  ;;  %2041 = vadd.xlane.f32.xlu0 %v1987_v21 }
 0x49f   : > { %v1896_v41 = vmul.f32 0.03125, %v1860_v34  ;;  %v1862_v60 = vpop.xlane.xlu0 %1861  ;;  %v4927_v26 = vsel %vm1772_vm0, %v1926_v30, 0.0 }
 0x4a0   : > { %v1897_v44 = vmul.f32 0.03125, %v1862_v60  ;;  %v1990_v43 = vmul.f32 %v4927_v26, %v4927_v26  ;;  %v4936_v49 = vsel %vm1772_vm0, %v1927_v32, 0.0 }
 0x4a1   : > { %v1928_v45 = vsub.f32 %v4723_v52, %v1896_v41  ;;  %v1991_v52 = vmul.f32 %v4936_v49, %v4936_v49 }
 0x4a2   : > { %v1929_v46 = vsub.f32 %v4730_v0, %v1897_v44  ;;  %2047 = vadd.xlane.f32.xlu1 %v1990_v43  ;;  %v1864_v47 = vpop.xlane.xlu1 %1863  ;;  %2045 = vadd.xlane.f32.xlu0 %v1989_v35 }
 0x4a3   : > { %v1898_v55 = vmul.f32 0.03125, %v1864_v47  ;;  %v1866_v8 = vpop.xlane.xlu0 %1865  ;;  %v4941_v38 = vsel %vm1772_vm0, %v1928_v45, 0.0  ;;  %v4974_v47 = vld [vmem:[#allocation17] ss:$0 sm:$0xff] }
 0x4a4   : > { %v1899_v56 = vmul.f32 0.03125, %v1866_v8  ;;  %v1992_v59 = vmul.f32 %v4941_v38, %v4941_v38  ;;  %v4950_v0 = vsel %vm1772_vm0, %v1929_v46, 0.0 }
 0x4a5   : > { %v1930_v61 = vsub.f32 %v4735_v1, %v1898_v55  ;;  %v1993_v1 = vmul.f32 %v4950_v0, %v4950_v0 }
 0x4a6   : > { %v1931_v62 = vsub.f32 %v4742_v10, %v1899_v56  ;;  %2051 = vadd.xlane.f32.xlu1 %v1992_v59  ;;  %v1868_v4 = vpop.xlane.xlu1 %1867  ;;  %2049 = vadd.xlane.f32.xlu0 %v1991_v52 }
 0x4a7   : > { %v1900_v40 = vmul.f32 0.03125, %v1868_v4  ;;  %v4955_v19 = vsel %vm1772_vm0, %v1930_v61, 0.0  ;;  %v4977_v61 = vld [vmem:[#allocation18] ss:$0 sm:$0xff] }
 0x4a8   : > { %v1994_v13 = vmul.f32 %v4955_v19, %v4955_v19  ;;  %v4964_v14 = vsel %vm1772_vm0, %v1931_v62, 0.0 }
 0x4a9   : > { %v1932_v7 = vsub.f32 %v4747_v11, %v1900_v40  ;;  %v1995_v6 = vmul.f32 %v4964_v14, %v4964_v14 }
 0x4aa   : > { %2055 = vadd.xlane.f32.xlu1 %v1994_v13  ;;  %2053 = vadd.xlane.f32.xlu0 %v1993_v1 }
 0x4ab   : > { %v4968_v10 = vsel %vm1772_vm0, %v1932_v7, 0.0 }
 0x4ac   : > { %v1996_v15 = vmul.f32 %v4968_v10, %v4968_v10 }
 0x4ae   : > { %2059 = vadd.xlane.f32.xlu1 %v1996_v15  ;;  %2057 = vadd.xlane.f32.xlu0 %v1995_v6 }
 0x4fb   : > { %v2000_v22 = vpop.xlane.xlu1 %1999 }
 0x4fc   : > { %v2062_v11 = vmul.f32 0.03125, %v2000_v22 }
 0x4fe   : > { %v2094_v50 = vadd.f32 1e-05, %v2062_v11 }
 0x4ff   : > { %v2004_v31 = vpop.xlane.xlu1 %2003  ;;  %v1998_v28 = vpop.xlane.xlu0 %1997 }
 0x500   : > { %3371 = vrsqrt.f32 %v2094_v50  ;;  %v2064_v21 = vmul.f32 0.03125, %v2004_v31  ;;  %v2061_v30 = vmul.f32 0.03125, %v1998_v28 }
 0x502   : > { %v2096_v32 = vadd.f32 1e-05, %v2064_v21  ;;  %v2093_v2 = vadd.f32 1e-05, %v2061_v30 }
 0x503   : > { %v2002_v34 = vpop.xlane.xlu0 %2001 }
 0x504   : > { %3373 = vrsqrt.f32 %v2096_v32  ;;  %v2063_v41 = vmul.f32 0.03125, %v2002_v34 }
 0x505   : > { %3375 = vrsqrt.f32 %v2093_v2 }
 0x506   : > { %v2095_v60 = vadd.f32 1e-05, %v2063_v41 }
 0x507   : > { %v2008_v44 = vpop.xlane.xlu1 %2007  ;;  %v2006_v43 = vpop.xlane.xlu0 %2005 }
 0x508   : > { %3377 = vrsqrt.f32 %v2095_v60  ;;  %v2066_v35 = vmul.f32 0.03125, %v2008_v44  ;;  %v2065_v45 = vmul.f32 0.03125, %v2006_v43 }
 0x50a   : > { %v3372_v46 = vpop.eup %3371  ;;  %v2098_v55 = vadd.f32 1e-05, %v2066_v35  ;;  %v2097_v8 = vadd.f32 1e-05, %v2065_v45 }
 0x50b   : > { %v2158_v56 = vmul.f32 %v3372_v46, %v4753_v23  ;;  %v2012_v59 = vpop.xlane.xlu1 %2011  ;;  %v2010_v52 = vpop.xlane.xlu0 %2009 }
 0x50c   : > { %3379 = vrsqrt.f32 %v2098_v55  ;;  %v2068_v62 = vmul.f32 0.03125, %v2012_v59  ;;  %v2067_v4 = vmul.f32 0.03125, %v2010_v52 }
 0x50d   : > { %v2197_v40 = vmul.f32 %v4974_v47, %v2158_v56  ;;  %3381 = vrsqrt.f32 %v2097_v8 }
 0x50e   : > { %v3374_v13 = vpop.eup %3373  ;;  %v2100_v1 = vadd.f32 1e-05, %v2068_v62  ;;  %v2099_v7 = vadd.f32 1e-05, %v2067_v4 }
 0x50f   : > { %v3376_v15 = vpop.eup %3375  ;;  %v2236_v6 = vadd.f32 %v4977_v61, %v2197_v40  ;;  %v2160_v22 = vmul.f32 %v3374_v13, %v4761_v16  ;;  %v2016_v23 = vpop.xlane.xlu1 %2015 }
 0x510   : > { %v2014_v11 = vpop.xlane.xlu0 %2013  ;;  %v2157_v50 = vmul.f32 %v3376_v15, %v4765_v37  ;;  %3383 = vrsqrt.f32 %v2100_v1  ;;  %v2070_v31 = vmul.f32 0.03125, %v2016_v23 }
 0x511   : > { %v2069_v28 = vmul.f32 0.03125, %v2014_v11  ;;  %v2268_v21 = vmax.f32 %v2236_v6, 0.0  ;;  %v2199_v30 = vmul.f32 %v4974_v47, %v2160_v22  ;;  %3385 = vrsqrt.f32 %v2099_v7 }
 0x512   : > { %v3378_v32 = vpop.eup %3377  ;;  %v2196_v2 = vmul.f32 %v4974_v47, %v2157_v50  ;;  %v2102_v34 = vadd.f32 1e-05, %v2070_v31 }
 0x513   : > { %v2101_v41 = vadd.f32 1e-05, %v2069_v28  ;;  %2300 = vst [vmem:[%s4467_s27 + $0x8] sm:$0xff] %v2268_v21  ;;  %v2238_v60 = vadd.f32 %v4977_v61, %v2199_v30  ;;  %v2159_v16 = vmul.f32 %v3378_v32, %v4775_v51  ;;  %v2020_v44 = vpop.xlane.xlu1 %2019 }
 0x514   : > { %v2018_v37 = vpop.xlane.xlu0 %2017  ;;  %v2235_v43 = vadd.f32 %v4977_v61, %v2196_v2  ;;  %3387 = vrsqrt.f32 %v2102_v34  ;;  %v2072_v35 = vmul.f32 0.03125, %v2020_v44 }
 0x515   : > { %v2071_v45 = vmul.f32 0.03125, %v2018_v37  ;;  %v2270_v46 = vmax.f32 %v2238_v60, 0.0  ;;  %v2198_v55 = vmul.f32 %v4974_v47, %v2159_v16  ;;  %3389 = vrsqrt.f32 %v2101_v41 }
 0x516   : > { %v3380_v8 = vpop.eup %3379  ;;  %v2267_v56 = vmax.f32 %v2235_v43, 0.0  ;;  %v2104_v59 = vadd.f32 1e-05, %v2072_v35 }
 0x517   : > { %v2103_v52 = vadd.f32 1e-05, %v2071_v45  ;;  %v3382_v62 = vpop.eup %3381  ;;  %2302 = vst [vmem:[%s4467_s27 + $0x18] sm:$0xff] %v2270_v46  ;;  %v2237_v51 = vadd.f32 %v4977_v61, %v2198_v55  ;;  %v2162_v4 = vmul.f32 %v3380_v8, %v4787_v63  ;;  %v2024_v40 = vpop.xlane.xlu1 %2023 }
 0x518   : > { %v2022_v13 = vpop.xlane.xlu0 %2021  ;;  %2299 = vst [vmem:[%s4467_s27] sm:$0xff] %v2267_v56  ;;  %v2161_v1 = vmul.f32 %v3382_v62, %v4782_v36  ;;  %3391 = vrsqrt.f32 %v2104_v59  ;;  %v2074_v7 = vmul.f32 0.03125, %v2024_v40 }
 0x519   : > { %v2073_v15 = vmul.f32 0.03125, %v2022_v13  ;;  %v2269_v6 = vmax.f32 %v2237_v51, 0.0  ;;  %v2201_v22 = vmul.f32 %v4974_v47, %v2162_v4  ;;  %3393 = vrsqrt.f32 %v2103_v52 }
 0x51a   : > { %v3384_v23 = vpop.eup %3383  ;;  %v2200_v11 = vmul.f32 %v4974_v47, %v2161_v1  ;;  %v2106_v50 = vadd.f32 1e-05, %v2074_v7 }
 0x51b   : > { %v2105_v31 = vadd.f32 1e-05, %v2073_v15  ;;  %v3386_v28 = vpop.eup %3385  ;;  %2301 = vst [vmem:[%s4467_s27 + $0x10] sm:$0xff] %v2269_v6  ;;  %v2240_v63 = vadd.f32 %v4977_v61, %v2201_v22  ;;  %v2164_v21 = vmul.f32 %v3384_v23, %v4801_v20  ;;  %v2028_v36 = vpop.xlane.xlu1 %2027 }
 0x51c   : > { %v2026_v30 = vpop.xlane.xlu0 %2025  ;;  %v2239_v32 = vadd.f32 %v4977_v61, %v2200_v11  ;;  %v2163_v2 = vmul.f32 %v3386_v28, %v4796_v48  ;;  %3395 = vrsqrt.f32 %v2106_v50  ;;  %v2076_v34 = vmul.f32 0.03125, %v2028_v36 }
 0x51d   : > { %v2272_v41 = vmax.f32 %v2240_v63, 0.0  ;;  %v2203_v60 = vmul.f32 %v4974_v47, %v2164_v21  ;;  %3397 = vrsqrt.f32 %v2105_v31  ;;  %v2075_v16 = vmul.f32 0.03125, %v2026_v30 }
 0x51e   : > { %v3388_v44 = vpop.eup %3387  ;;  %v2271_v37 = vmax.f32 %v2239_v32, 0.0  ;;  %v2202_v43 = vmul.f32 %v4974_v47, %v2163_v2  ;;  %v2108_v20 = vadd.f32 1e-05, %v2076_v34 }
 0x51f   : > { %v3390_v35 = vpop.eup %3389  ;;  %2304 = vst [vmem:[%s4467_s27 + $0x28] sm:$0xff] %v2272_v41  ;;  %v2242_v45 = vadd.f32 %v4977_v61, %v2203_v60  ;;  %v2166_v46 = vmul.f32 %v3388_v44, %v4815_v39  ;;  %v2107_v48 = vadd.f32 1e-05, %v2075_v16  ;;  %v2032_v55 = vpop.xlane.xlu1 %2031 }
 0x520   : > { %v2030_v8 = vpop.xlane.xlu0 %2029  ;;  %2303 = vst [vmem:[%s4467_s27 + $0x20] sm:$0xff] %v2271_v37  ;;  %v2241_v56 = vadd.f32 %v4977_v61, %v2202_v43  ;;  %v2165_v59 = vmul.f32 %v3390_v35, %v4810_v58  ;;  %3399 = vrsqrt.f32 %v2108_v20  ;;  %v2078_v52 = vmul.f32 0.03125, %v2032_v55 }
 0x521   : > { %v2274_v62 = vmax.f32 %v2242_v45, 0.0  ;;  %v2205_v51 = vmul.f32 %v4974_v47, %v2166_v46  ;;  %3401 = vrsqrt.f32 %v2107_v48  ;;  %v2077_v4 = vmul.f32 0.03125, %v2030_v8 }
 0x522   : > { %v3392_v40 = vpop.eup %3391  ;;  %v2273_v13 = vmax.f32 %v2241_v56, 0.0  ;;  %v2204_v39 = vmul.f32 %v4974_v47, %v2165_v59  ;;  %v2110_v1 = vadd.f32 1e-05, %v2078_v52 }
 0x523   : > { %v3394_v7 = vpop.eup %3393  ;;  %2306 = vst [vmem:[%s4467_s27 + $0x38] sm:$0xff] %v2274_v62  ;;  %v2244_v15 = vadd.f32 %v4977_v61, %v2205_v51  ;;  %v2168_v6 = vmul.f32 %v3392_v40, %v4829_v53  ;;  %v2109_v58 = vadd.f32 1e-05, %v2077_v4  ;;  %v2036_v22 = vpop.xlane.xlu1 %2035 }
 0x524   : > { %v2034_v23 = vpop.xlane.xlu0 %2033  ;;  %2305 = vst [vmem:[%s4467_s27 + $0x30] sm:$0xff] %v2273_v13  ;;  %v2243_v11 = vadd.f32 %v4977_v61, %v2204_v39  ;;  %v2167_v50 = vmul.f32 %v3394_v7, %v4824_v5  ;;  %3403 = vrsqrt.f32 %v2110_v1  ;;  %v2080_v31 = vmul.f32 0.03125, %v2036_v22 }
 0x525   : > { %v2276_v28 = vmax.f32 %v2244_v15, 0.0  ;;  %v2207_v63 = vmul.f32 %v4974_v47, %v2168_v6  ;;  %3405 = vrsqrt.f32 %v2109_v58  ;;  %v2079_v21 = vmul.f32 0.03125, %v2034_v23 }
 0x526   : > { %v3396_v36 = vpop.eup %3395  ;;  %v2275_v30 = vmax.f32 %v2243_v11, 0.0  ;;  %v2206_v53 = vmul.f32 %v4974_v47, %v2167_v50  ;;  %v2112_v32 = vadd.f32 1e-05, %v2080_v31 }
 0x527   : > { %v3398_v2 = vpop.eup %3397  ;;  %2308 = vst [vmem:[%s4467_s27 + $0x48] sm:$0xff] %v2276_v28  ;;  %v2246_v34 = vadd.f32 %v4977_v61, %v2207_v63  ;;  %v2170_v41 = vmul.f32 %v3396_v36, %v4843_v9  ;;  %v2111_v5 = vadd.f32 1e-05, %v2079_v21  ;;  %v2040_v60 = vpop.xlane.xlu1 %2039 }
 0x528   : > { %v2038_v16 = vpop.xlane.xlu0 %2037  ;;  %2307 = vst [vmem:[%s4467_s27 + $0x40] sm:$0xff] %v2275_v30  ;;  %v2245_v44 = vadd.f32 %v4977_v61, %v2206_v53  ;;  %v2169_v37 = vmul.f32 %v3398_v2, %v4838_v17  ;;  %3407 = vrsqrt.f32 %v2112_v32  ;;  %v2082_v43 = vmul.f32 0.03125, %v2040_v60 }
 0x529   : > { %v2278_v20 = vmax.f32 %v2246_v34, 0.0  ;;  %v2209_v35 = vmul.f32 %v4974_v47, %v2170_v41  ;;  %3409 = vrsqrt.f32 %v2111_v5  ;;  %v2081_v45 = vmul.f32 0.03125, %v2038_v16 }
 0x52a   : > { %v3400_v46 = vpop.eup %3399  ;;  %v2277_v48 = vmax.f32 %v2245_v44, 0.0  ;;  %v2208_v9 = vmul.f32 %v4974_v47, %v2169_v37  ;;  %v2114_v55 = vadd.f32 1e-05, %v2082_v43 }
 0x52b   : > { %v3402_v8 = vpop.eup %3401  ;;  %2310 = vst [vmem:[%s4467_s27 + $0x58] sm:$0xff] %v2278_v20  ;;  %v2248_v56 = vadd.f32 %v4977_v61, %v2209_v35  ;;  %v2172_v59 = vmul.f32 %v3400_v46, %v4857_v24  ;;  %v2113_v17 = vadd.f32 1e-05, %v2081_v45  ;;  %v2044_v52 = vpop.xlane.xlu1 %2043 }
 0x52c   : > { %v2042_v62 = vpop.xlane.xlu0 %2041  ;;  %2309 = vst [vmem:[%s4467_s27 + $0x50] sm:$0xff] %v2277_v48  ;;  %v2247_v51 = vadd.f32 %v4977_v61, %v2208_v9  ;;  %v2171_v4 = vmul.f32 %v3402_v8, %v4852_v29  ;;  %3411 = vrsqrt.f32 %v2114_v55  ;;  %v2084_v40 = vmul.f32 0.03125, %v2044_v52 }
 0x52d   : > { %v2280_v13 = vmax.f32 %v2248_v56, 0.0  ;;  %v2211_v39 = vmul.f32 %v4974_v47, %v2172_v59  ;;  %3413 = vrsqrt.f32 %v2113_v17  ;;  %v2083_v1 = vmul.f32 0.03125, %v2042_v62 }
 0x52e   : > { %v3404_v7 = vpop.eup %3403  ;;  %v2279_v15 = vmax.f32 %v2247_v51, 0.0  ;;  %v2210_v24 = vmul.f32 %v4974_v47, %v2171_v4  ;;  %v2116_v6 = vadd.f32 1e-05, %v2084_v40 }
 0x52f   : > { %v3406_v58 = vpop.eup %3405  ;;  %2312 = vst [vmem:[%s4467_s27 + $0x68] sm:$0xff] %v2280_v13  ;;  %v2250_v22 = vadd.f32 %v4977_v61, %v2211_v39  ;;  %v2174_v23 = vmul.f32 %v3404_v7, %v4871_v25  ;;  %v2115_v29 = vadd.f32 1e-05, %v2083_v1  ;;  %v2048_v11 = vpop.xlane.xlu1 %2047 }
 0x530   : > { %v2046_v50 = vpop.xlane.xlu0 %2045  ;;  %2311 = vst [vmem:[%s4467_s27 + $0x60] sm:$0xff] %v2279_v15  ;;  %v2249_v31 = vadd.f32 %v4977_v61, %v2210_v24  ;;  %v2173_v28 = vmul.f32 %v3406_v58, %v4866_v42  ;;  %3415 = vrsqrt.f32 %v2116_v6  ;;  %v2086_v63 = vmul.f32 0.03125, %v2048_v11 }
 0x531   : > { %v2282_v21 = vmax.f32 %v2250_v22, 0.0  ;;  %v2213_v36 = vmul.f32 %v4974_v47, %v2174_v23  ;;  %3417 = vrsqrt.f32 %v2115_v29  ;;  %v2085_v30 = vmul.f32 0.03125, %v2046_v50 }
 0x532   : > { %v3408_v53 = vpop.eup %3407  ;;  %v2281_v32 = vmax.f32 %v2249_v31, 0.0  ;;  %v2212_v25 = vmul.f32 %v4974_v47, %v2173_v28  ;;  %v2118_v2 = vadd.f32 1e-05, %v2086_v63 }
 0x533   : > { %v3410_v34 = vpop.eup %3409  ;;  %2314 = vst [vmem:[%s4467_s27 + $0x78] sm:$0xff] %v2282_v21  ;;  %v2252_v41 = vadd.f32 %v4977_v61, %v2213_v36  ;;  %v2176_v5 = vmul.f32 %v3408_v53, %v4885_v57  ;;  %v2117_v42 = vadd.f32 1e-05, %v2085_v30  ;;  %v2052_v60 = vpop.xlane.xlu1 %2051 }
 0x534   : > { %v2050_v16 = vpop.xlane.xlu0 %2049  ;;  %2313 = vst [vmem:[%s4467_s27 + $0x70] sm:$0xff] %v2281_v32  ;;  %v2251_v44 = vadd.f32 %v4977_v61, %v2212_v25  ;;  %v2175_v37 = vmul.f32 %v3410_v34, %v4880_v54  ;;  %3419 = vrsqrt.f32 %v2118_v2  ;;  %v2088_v43 = vmul.f32 0.03125, %v2052_v60 }
 0x535   : > { %v2284_v20 = vmax.f32 %v2252_v41, 0.0  ;;  %v2215_v35 = vmul.f32 %v4974_v47, %v2176_v5  ;;  %3421 = vrsqrt.f32 %v2117_v42  ;;  %v2087_v45 = vmul.f32 0.03125, %v2050_v16 }
 0x536   : > { %v3412_v46 = vpop.eup %3411  ;;  %v2283_v48 = vmax.f32 %v2251_v44, 0.0  ;;  %v2214_v57 = vmul.f32 %v4974_v47, %v2175_v37  ;;  %v2120_v9 = vadd.f32 1e-05, %v2088_v43 }
 0x537   : > { %v3414_v55 = vpop.eup %3413  ;;  %2316 = vst [vmem:[%s4467_s27 + $0x88] sm:$0xff] %v2284_v20  ;;  %v2254_v8 = vadd.f32 %v4977_v61, %v2215_v35  ;;  %v2178_v56 = vmul.f32 %v3412_v46, %v4899_v12  ;;  %v2119_v54 = vadd.f32 1e-05, %v2087_v45  ;;  %v2056_v59 = vpop.xlane.xlu1 %2055 }
 0x538   : > { %v2054_v17 = vpop.xlane.xlu0 %2053  ;;  %2315 = vst [vmem:[%s4467_s27 + $0x80] sm:$0xff] %v2283_v48  ;;  %v2253_v52 = vadd.f32 %v4977_v61, %v2214_v57  ;;  %v2177_v62 = vmul.f32 %v3414_v55, %v4894_v3  ;;  %3423 = vrsqrt.f32 %v2120_v9  ;;  %v2090_v51 = vmul.f32 0.03125, %v2056_v59 }
 0x539   : > { %v2286_v4 = vmax.f32 %v2254_v8, 0.0  ;;  %v2217_v40 = vmul.f32 %v4974_v47, %v2178_v56  ;;  %3425 = vrsqrt.f32 %v2119_v54  ;;  %v2089_v13 = vmul.f32 0.03125, %v2054_v17 }
 0x53a   : > { %v3416_v39 = vpop.eup %3415  ;;  %v2285_v1 = vmax.f32 %v2253_v52, 0.0  ;;  %v2216_v12 = vmul.f32 %v4974_v47, %v2177_v62  ;;  %v2122_v7 = vadd.f32 1e-05, %v2090_v51 }
 0x53b   : > { %v3418_v15 = vpop.eup %3417  ;;  %2318 = vst [vmem:[%s4467_s27 + $0x98] sm:$0xff] %v2286_v4  ;;  %v2256_v24 = vadd.f32 %v4977_v61, %v2217_v40  ;;  %v2180_v6 = vmul.f32 %v3416_v39, %v4913_v27  ;;  %v2121_v3 = vadd.f32 1e-05, %v2089_v13  ;;  %v2060_v58 = vpop.xlane.xlu1 %2059 }
 0x53c   : > { %v2058_v22 = vpop.xlane.xlu0 %2057  ;;  %2317 = vst [vmem:[%s4467_s27 + $0x90] sm:$0xff] %v2285_v1  ;;  %v2255_v23 = vadd.f32 %v4977_v61, %v2216_v12  ;;  %v2179_v29 = vmul.f32 %v3418_v15, %v4908_v18  ;;  %3427 = vrsqrt.f32 %v2122_v7  ;;  %v2092_v11 = vmul.f32 0.03125, %v2060_v58 }
 0x53d   : > { %v2288_v50 = vmax.f32 %v2256_v24, 0.0  ;;  %v2219_v31 = vmul.f32 %v4974_v47, %v2180_v6  ;;  %3429 = vrsqrt.f32 %v2121_v3  ;;  %v2091_v28 = vmul.f32 0.03125, %v2058_v22 }
 0x53e   : > { %v3420_v63 = vpop.eup %3419  ;;  %v2287_v21 = vmax.f32 %v2255_v23, 0.0  ;;  %v2218_v27 = vmul.f32 %v4974_v47, %v2179_v29  ;;  %v2124_v36 = vadd.f32 1e-05, %v2092_v11 }
 0x53f   : > { %v3422_v30 = vpop.eup %3421  ;;  %2320 = vst [vmem:[%s4467_s27 + $0xa8] sm:$0xff] %v2288_v50  ;;  %v2258_v53 = vadd.f32 %v4977_v61, %v2219_v31  ;;  %v2182_v18 = vmul.f32 %v3420_v63, %v4927_v26  ;;  %v2123_v32 = vadd.f32 1e-05, %v2091_v28 }
 0x540   : > { %2319 = vst [vmem:[%s4467_s27 + $0xa0] sm:$0xff] %v2287_v21  ;;  %v2257_v25 = vadd.f32 %v4977_v61, %v2218_v27  ;;  %v2181_v2 = vmul.f32 %v3422_v30, %v4922_v33  ;;  %3431 = vrsqrt.f32 %v2124_v36 }
 0x541   : > { %v2290_v34 = vmax.f32 %v2258_v53, 0.0  ;;  %v2221_v41 = vmul.f32 %v4974_v47, %v2182_v18  ;;  %3433 = vrsqrt.f32 %v2123_v32 }
 0x542   : > { %v3424_v5 = vpop.eup %3423  ;;  %v2289_v42 = vmax.f32 %v2257_v25, 0.0  ;;  %v2220_v60 = vmul.f32 %v4974_v47, %v2181_v2 }
 0x543   : > { %v3426_v16 = vpop.eup %3425  ;;  %2322 = vst [vmem:[%s4467_s27 + $0xb8] sm:$0xff] %v2290_v34  ;;  %v2260_v26 = vadd.f32 %v4977_v61, %v2221_v41  ;;  %v2184_v44 = vmul.f32 %v3424_v5, %v4941_v38 }
 0x544   : > { %2321 = vst [vmem:[%s4467_s27 + $0xb0] sm:$0xff] %v2289_v42  ;;  %v2259_v33 = vadd.f32 %v4977_v61, %v2220_v60  ;;  %v2183_v37 = vmul.f32 %v3426_v16, %v4936_v49 }
 0x545   : > { %v2292_v43 = vmax.f32 %v2260_v26, 0.0  ;;  %v2223_v20 = vmul.f32 %v4974_v47, %v2184_v44 }
 0x546   : > { %v3428_v35 = vpop.eup %3427  ;;  %v2291_v45 = vmax.f32 %v2259_v33, 0.0  ;;  %v2222_v46 = vmul.f32 %v4974_v47, %v2183_v37 }
 0x547   : > { %v3430_v48 = vpop.eup %3429  ;;  %2324 = vst [vmem:[%s4467_s27 + $0xc8] sm:$0xff] %v2292_v43  ;;  %v2262_v57 = vadd.f32 %v4977_v61, %v2223_v20  ;;  %v2186_v38 = vmul.f32 %v3428_v35, %v4955_v19 }
 0x548   : > { %2323 = vst [vmem:[%s4467_s27 + $0xc0] sm:$0xff] %v2291_v45  ;;  %v2261_v9 = vadd.f32 %v4977_v61, %v2222_v46  ;;  %v2185_v49 = vmul.f32 %v3430_v48, %v4950_v0 }
 0x549   : > { %v2294_v55 = vmax.f32 %v2262_v57, 0.0  ;;  %v2225_v8 = vmul.f32 %v4974_v47, %v2186_v38 }
 0x54a   : > { %v3432_v56 = vpop.eup %3431  ;;  %v2293_v54 = vmax.f32 %v2261_v9, 0.0  ;;  %v2224_v59 = vmul.f32 %v4974_v47, %v2185_v49 }
 0x54b   : > { %v3434_v17 = vpop.eup %3433  ;;  %2326 = vst [vmem:[%s4467_s27 + $0xd8] sm:$0xff] %v2294_v55  ;;  %v2264_v52 = vadd.f32 %v4977_v61, %v2225_v8  ;;  %v2188_v19 = vmul.f32 %v3432_v56, %v4968_v10 }
 0x54c   : > { %2325 = vst [vmem:[%s4467_s27 + $0xd0] sm:$0xff] %v2293_v54  ;;  %v2263_v0 = vadd.f32 %v4977_v61, %v2224_v59  ;;  %v2187_v62 = vmul.f32 %v3434_v17, %v4964_v14 }
 0x54d   : > { %v2296_v51 = vmax.f32 %v2264_v52, 0.0  ;;  %v2227_v4 = vmul.f32 %v4974_v47, %v2188_v19 }
 0x54e   : > { %v2295_v40 = vmax.f32 %v2263_v0, 0.0  ;;  %v2226_v13 = vmul.f32 %v4974_v47, %v2187_v62 }
 0x54f   : > { %2328 = vst [vmem:[%s4467_s27 + $0xe8] sm:$0xff] %v2296_v51  ;;  %v2266_v39 = vadd.f32 %v4977_v61, %v2227_v4 }
 0x550   : > { %2327 = vst [vmem:[%s4467_s27 + $0xe0] sm:$0xff] %v2295_v40  ;;  %v2265_v1 = vadd.f32 %v4977_v61, %v2226_v13 }
 0x551   : > { %v2298_v12 = vmax.f32 %v2266_v39, 0.0 }
 0x552   : > { %v2297_v7 = vmax.f32 %v2265_v1, 0.0 }
 0x553   : > { %2330 = vst [vmem:[%s4467_s27 + $0xf8] sm:$0xff] %v2298_v12 }
 0x554   : > { %2329 = vst [vmem:[%s4467_s27 + $0xf0] sm:$0xff] %v2297_v7 }
 0x555 PF: > { %s5320_s14 = sld [smem:[#allocation39_spill]]  ;;  %s5322_s12 = sld [smem:[#allocation55_spill]] }
 0x556   : > { %s2345_s22 = sshll.u32 %s4467_s27, 4  ;;  %s5117_s20 = scalar_lea.sflag [#allocation8], %s476_s13  ;;  %s5113_s22 = int_to_ptr.vmem [resolvable:$true] %s2345_s22 }
 0x557   : > { %s3685_s28 = scalar_lea.vmem %s5113_s22, 4096  ;;  %p5323_p2 = scmp.ne.s32.totalorder %s5296_s0, 0 }
 0x558   : > { %p3686_p10 = scmp.ne.s32.totalorder %s5113_s22, %s3685_s28  ;;  %s3871_s6 = smov [#allocation20]  }
 0x559   : > { %s3689_s5 = sshll.u32 %s3871_s6, 4  ;;  %s3690_s5 = int_to_ptr.vmem [resolvable:$false] %s3689_s5 }
 0x55a   : > { %p3687_p4 = pnand %p3686_p10, %p5323_p2  ;;  %s3691_s21 = scalar_lea.vmem %s3690_s5, 8192 }
 0x55b   : > { %s2620_s30 = sshll.u32 %s5320_s14, 12  ;;  %p3692_p1 = scmp.lt.s32.totalorder %s5113_s22, %s3690_s5 }
 0x55c   : > { %s5110_s17 = scalar_lea.hbm %s5322_s12, %s2620_s30  ;;  %p3688_p11 = pneg %p3687_p4 }
 0x55d   : > { %p3693_p8 = scmp.lt.s32.totalorder %s3691_s21, %s3685_s28 }
 0x55f   : > { %p3694_p9 = por %p3693_p8, %p3692_p1 }
 0x561   : > { %p3695_p13 = pnand %p3694_p9, %p3688_p11 }
 0x563   : > { %3698 = shalt.err (!%p3695_p13)
}
 0x564   : > { %s3699_s13 = scalar_lea.hbm %s5110_s17, 4096  ;;  %s3703_s15 = scalar_lea.hbm %s5322_s12, 12288 }
 0x565   : > { %p3700_p6 = scmp.ne.s32.totalorder %s5110_s17, %s3699_s13  ;;  %p3704_p0 = scmp.lt.u32.totalorder %s5110_s17, %s5322_s12 }
 0x566   : > { %p3705_p7 = scmp.lt.u32.totalorder %s3703_s15, %s3699_s13  ;;  %p3707_p10 = scmp.lt.u32.totalorder %s3699_s13, %s5110_s17 }
 0x567   : > { %p3701_p3 = pnand %p3700_p6, %p5323_p2 }
 0x568   : > { %p3706_p5 = por %p3705_p7, %p3704_p0 }
 0x569   : > { %p3702_p12 = pneg %p3701_p3 }
 0x56a   : > { %p3708_p4 = por %p3707_p10, %p3706_p5 }
 0x56c   : > { %p3709_p11 = pnand %p3708_p4, %p3702_p12 }
 0x56e   : > { %3712 = shalt.err (!%p3709_p11)
}
 0x56f   : > { %s3872_s10 = smov 128   ;;  %s3873_s14 = smov 8  }
 0x570   : > { %3132 = dma.vmem_to_hbm [thread:$0]  (%p5323_p2), %s5113_s22, 4096, %s5110_s17, %s5117_s20, %s3872_s10, %s3872_s10, %s3873_s14  }
 0x571 PF: > { %s5324_s25 = sld [smem:[#allocation33_spill]]  ;;  %p3179_p1 = scmp.ge.s32.totalorder %s3853_s24, 2 }
 0x572   : > { %p5325_p8 = scmp.ne.s32.totalorder %s5298_s29, 0 }
 0x574   : > { %p3165_p9 = pnand %p3179_p1, %p5325_p8 }
 0x577   : > { %s2360_s30 = sand.u32 1, %s5324_s25  }
 0x578   : > { %s2361_s8 = scalar_lea.sflag [#allocation8], %s2360_s30 }
 0x579   : > { %3796 = dma.done.wait (!%p3165_p9), %s2361_s8, 4096  }
 0x57a   : > { %3798 = vsyncadd (!%p3165_p9), %s2361_s8, 4294963200  ;;  %s38_s24 = sadd.s32 1, %s3853_s24   ;;  %s5327_s0 = sld [smem:[#allocation34_spill]] }
 0x57b   : > { %p5146_p13 = scmp.ge.s32.totalorder %s38_s24, 11   ;;  %s5328_s13 = sld [smem:[#allocation35_spill]] }
 0x57c   : > { %s5329_s15 = sld [smem:[#allocation36_spill]]  ;;  %s5330_s17 = sld [smem:[#allocation46_spill]] }
 0x57d   : > { %s5331_s20 = sld [smem:[#allocation40_spill]]  ;;  %s5332_s22 = sld [smem:[#allocation43_spill]] }
 0x57e   : > { %s5333_s29 = sld [smem:[#allocation44_spill]]  ;;  %s5334_s14 = smov %s4355_s1 }
 0x57f   : > { %s5335_s1 = smov %s3821_s16  ;;  %s5340_s21 = smov %s3849_s23 }
 0x580   :  { %37 = sbr.rel (!%p5146_p13) target bundleno = 38 (0x26), region = 153 }
 0x582   : > { %s5336_s16 = smov %s5330_s17  ;;  %s5337_s17 = smov %s3829_s18 }
 0x583   : > { %s5338_s18 = smov %s3833_s19  ;;  %s5339_s19 = smov %s4275_s2 }
 0x584   : > { %s5341_s23 = smov %s5333_s29 }
 0x587   :  { %2366 = vsyncpa [#allocation7], 1 }
 0x588   :  { %2368 = vsyncpa [#allocation7 + $0x1], 1 }
 0x589   :  { %2369 = vsyncpa [#allocation10], 1 }
 0x58a   :  { %2371 = vsyncpa [#allocation10 + $0x1], 1 }
 0x58b   :  { %2372 = vsyncpa [#allocation13], 1 }
 0x58c   :  { %2373 = vsyncpa [#allocation16], 1 }
 0x58d   :  { %2374 = vsyncpa [#allocation19], 1 }
 0x58e   :  { %2375 = vsyncpa [#allocation8], 1 }
 0x58f   :  { %2377 = vsyncpa [#allocation8 + $0x1], 1 }

// kernel: tpu_custom_call.1
= control target key start
LH: loop header
LB: loop body
LE: loop exit
PB: predicated region body
PF: predicated region fallthrough
CT: control target
= control target key end

     0   :  { %s5193_s0 = inlined_call_operand.hbm [shape: s32[3,3], index: 0, kind: input, shape index: {}]   ;;  %s5194_s2 = inlined_call_operand.hbm [shape: bf16[768,768], index: 2, kind: input, shape index: {}]   ;;  %s5195_s3 = inlined_call_operand.hbm [shape: bf16[768,128], index: 3, kind: input, shape index: {}]   ;;  %s5196_s4 = inlined_call_operand.hbm [shape: f32[768,128], index: 4, kind: input, shape index: {}]   ;;  %s5197_s5 = inlined_call_operand.hbm [shape: f32[128,128], index: 5, kind: input, shape index: {}]   ;;  %s5198_s6 = inlined_call_operand.hbm [shape: f32[128,128], index: 6, kind: input, shape index: {}]   ;;  %s5199_s7 = inlined_call_operand.hbm [shape: f32[1,128], index: 7, kind: input, shape index: {}]   ;;  %s5200_s8 = inlined_call_operand.hbm [shape: f32[1,128], index: 8, kind: input, shape index: {}]   ;;  %s5201_s9 = inlined_call_operand.hbm [shape: f32[1,128], index: 9, kind: input, shape index: {}]   ;;  %s5202_s10 = inlined_call_operand.hbm [shape: f32[768,128], index: 10, kind: output, shape index: {}]   ;;  %s5203_s1 = inlined_call_operand.hbm [shape: s32[3], index: 1, kind: input, shape index: {}]  }
   0x1   :  { %5235 = sst [smem:[#allocation47_spill]] %s5194_s2  ;;  %s3435_s15 = scalar_lea.hbm %s5193_s0, 64 }
   0x2   :  { %5236 = sst [smem:[#allocation48_spill]] %s5195_s3  ;;  %p3436_p0 = scmp.ne.s32.totalorder %s5193_s0, %s3435_s15 }
   0x3   :  { %5237 = sst [smem:[#allocation49_spill]] %s5196_s4  ;;  %p3439_p1 = scmp.lt.u32.totalorder %s3435_s15, %s5193_s0 }
   0x4   :  { %5238 = sst [smem:[#allocation50_spill]] %s5197_s5 }
   0x5   :  { %5239 = sst [smem:[#allocation51_spill]] %s5198_s6  ;;  %p3441_p2 = pnand %p3439_p1, %p3436_p0 }
   0x6   :  { %5240 = sst [smem:[#allocation52_spill]] %s5199_s7 }
   0x7   :  { %5241 = sst [smem:[#allocation53_spill]] %s5200_s8 }
   0x8   :  { %5242 = sst [smem:[#allocation54_spill]] %s5201_s9 }
   0x9   :  { %5243 = sst [smem:[#allocation55_spill]] %s5202_s10 }
   0xa   :  { %3444 = shalt.err (!%p3441_p2)  }
   0xb   :  { %s3855_s20 = smov [#allocation4]   ;;  %s3445_s25 = scalar_lea.hbm %s5203_s1, 16 }
   0xc   :  { %16 = dma.hbm_to_smem %s5193_s0, 64, %s3855_s20, [#allocation3] }
   0xd   :  { %p3446_p3 = scmp.ne.s32.totalorder %s5203_s1, %s3445_s25  ;;  %p3449_p4 = scmp.lt.u32.totalorder %s3445_s25, %s5203_s1 }
   0xf   :  { %p3451_p5 = pnand %p3449_p4, %p3446_p3 }
  0x11   :  { %3454 = shalt.err (!%p3451_p5)  }
  0x12   :  { %s3856_s30 = smov [#allocation5]  }
  0x13   :  { %18 = dma.hbm_to_smem %s5203_s1, 16, %s3856_s30, [#allocation3] }
  0x14   :  { %3769 = dma.done.wait [#allocation3], 80 }
  0x15   :  { %3770 = vsyncadd [#allocation3], 4294967216 }
  0x16   :  { %20 = sfence }
  0x17   :  { %21 = vsyncpa [#allocation7], 0 }
  0x18   :  { %23 = vsyncpa [#allocation7 + $0x1], 0 }
  0x19   :  { %24 = vsyncpa [#allocation10], 0 }
  0x1a   :  { %26 = vsyncpa [#allocation10 + $0x1], 0 }
  0x1b   :  { %27 = vsyncpa [#allocation13], 0 }
  0x1c   :  { %28 = vsyncpa [#allocation16], 0 }
  0x1d   :  { %29 = vsyncpa [#allocation19], 0 }
  0x1e   :  { %30 = vsyncpa [#allocation8], 0 }
  0x1f   :  { %32 = vsyncpa [#allocation8 + $0x1], 0  ;;  %s3953_s0 = smov 0   ;;  %s3955_s13 = smov 0  }
  0x20   :  { %s3957_s14 = smov 0   ;;  %s3959_s15 = smov 0  }
  0x21   :  { %s3961_s1 = smov 0   ;;  %s3963_s16 = smov 0  }
  0x22   :  { %s3965_s17 = smov 0   ;;  %s3967_s18 = smov 0  }
  0x23   :  { %s3969_s19 = smov 0   ;;  %s3971_s20 = smov 0  }
  0x24   :  { %s3973_s21 = smov 0   ;;  %s3975_s22 = smov 0  }
  0x25   :  { %s3977_s23 = smov 0   ;;  %s3979_s24 = smov 0  }
  0x26 LB: > { %5244 = sst [smem:[#allocation33_spill]] %s3801_s0  ;;  %s4024_s25 = sadd.s32 4294967295, %s3853_s24   ;;  %s3853_s24 = sphi %s3979_s24, %s38_s24   ;;  %s3849_s23 = sphi %s3977_s23, %s5341_s23   ;;  %s3845_s22 = sphi %s3975_s22, %s5332_s22   ;;  %s3841_s21 = sphi %s3973_s21, %s5340_s21   ;;  %s3837_s20 = sphi %s3971_s20, %s5331_s20   ;;  %s3833_s19 = sphi %s3969_s19, %s5339_s19   ;;  %s3829_s18 = sphi %s3967_s18, %s5338_s18   ;;  %s3825_s17 = sphi %s3965_s17, %s5337_s17   ;;  %s3821_s16 = sphi %s3963_s16, %s5336_s16   ;;  %s3817_s1 = sphi %s3961_s1, %s5335_s1   ;;  %s3813_s15 = sphi %s3959_s15, %s5329_s15   ;;  %s3809_s14 = sphi %s3957_s14, %s5334_s14   ;;  %s3805_s13 = sphi %s3955_s13, %s5328_s13   ;;  %s3801_s0 = sphi %s3953_s0, %s5327_s0  }
  0x27   : > { %5245 = sst [smem:[#allocation34_spill]] %s3805_s13  ;;  %p2529_p6 = scmp.ge.s32.totalorder %s3853_s24, 1 }
  0x28   : > { %5246 = sst [smem:[#allocation35_spill]] %s3809_s14  ;;  %p5207_p7 = scmp.eq.s32.totalorder %s4024_s25, 0 }
  0x29   : > { %5247 = sst [smem:[#allocation36_spill]] %s3817_s1  ;;  %p298_p8 = scmp.lt.s32.totalorder %s3853_s24, 10 }
  0x2a   : > { %5248 = sst [smem:[#allocation37_spill]] %s3825_s17  ;;  %s3857_s27 = smov [#allocation12]  }
  0x2b   : > { %5249 = sst [smem:[#allocation38_spill]] %s3837_s20  ;;  %p4029_p9 = pnand %p2529_p6, %p298_p8 }
  0x2c   : > { %5250 = sst [smem:[#allocation39_spill]] %s3841_s21  ;;  %s310_s28 = sshll.u32 %s3857_s27, 4  ;;  %s311_s28 = int_to_ptr.vmem [resolvable:$true] %s310_s28 }
  0x2d   : > { %5251 = sst [smem:[#allocation40_spill]] %s3845_s22  ;;  %p3134_p10 = pneg %p4029_p9 }
  0x2e   : > { %5252 = sst [smem:[#allocation41_spill]] %s4024_s25  ;;  %s3858_s30 = smov [#allocation15]  }
  0x2f   : > { %s5253_s26 = scalar_select %p4029_p9, 1, 0 }
  0x30   : > { %p4037_p11 = pnand %p3134_p10, %p5207_p7  ;;  %s337_s11 = sshll.u32 %s3858_s30, 4  ;;  %s4041_s11 = int_to_ptr.vmem [resolvable:$true] %s337_s11 }
  0x31   : > { %5254 = sst [smem:[#allocation42_spill]] %s5253_s26  ;;  %s5256_s5 = sld [smem:[#allocation50_spill]] }
  0x32   : > { %s5255_s29 = scalar_select %p4037_p11, 1, 0 }
  0x33   : > { %p4051_p13 = pneg %p4037_p11 }
  0x37   : > { %s3455_s21 = scalar_lea.hbm %s5256_s5, 2048 }
  0x38   : > { %p3456_p12 = scmp.ne.s32.totalorder %s5256_s5, %s3455_s21  ;;  %p3462_p2 = scmp.lt.u32.totalorder %s3455_s21, %s5256_s5 }
  0x3a   : > { %p3458_p0 = pnand %p4051_p13, %p3456_p12 }
  0x3c   : > { %p3459_p1 = pneg %p3458_p0 }
  0x3e   : > { %p3464_p3 = pnand %p3462_p2, %p3459_p1 }
  0x40   : > { %3467 = shalt.err (!%p3464_p3)
}
  0x41   : > { %s3468_s10 = scalar_lea.vmem %s311_s28, 2048  ;;  %p3476_p8 = scmp.lt.s32.totalorder %s311_s28, %s311_s28 }
  0x42   : > { %p3469_p4 = scmp.ne.s32.totalorder %s311_s28, %s3468_s10  ;;  %p3477_p10 = scmp.lt.s32.totalorder %s3468_s10, %s3468_s10 }
  0x44   : > { %p3471_p5 = pnand %p3469_p4, %p4051_p13  ;;  %p3478_p7 = por %p3477_p10, %p3476_p8 }
  0x46   : > { %p3472_p6 = pneg %p3471_p5 }
  0x48   : > { %p3479_p9 = pnand %p3478_p7, %p3472_p6 }
  0x4a   : > { %3482 = shalt.err (!%p3479_p9)
}
  0x4b   : > { %s5214_s4 = smov 128   ;;  %s5216_s20 = smov 8  }
  0x4c   : > { %3137 = dma.hbm_to_vmem [thread:$0]  (!%p4037_p11), %s5256_s5, 2048, %s311_s28, [#allocation13], %s5214_s4, %s5214_s4, %s5216_s20  }
  0x4d   : > { %s5258_s7 = sld [smem:[#allocation52_spill]] }
  0x53   : > { %s3483_s2 = scalar_lea.hbm %s5258_s7, 16 }
  0x54   : > { %p3484_p7 = scmp.ne.s32.totalorder %s5258_s7, %s3483_s2  ;;  %p3490_p0 = scmp.lt.u32.totalorder %s3483_s2, %s5258_s7 }
  0x56   : > { %p3486_p9 = pnand %p3484_p7, %p4051_p13 }
  0x58   : > { %p3487_p12 = pneg %p3486_p9 }
  0x5a   : > { %p3492_p1 = pnand %p3490_p0, %p3487_p12 }
  0x5c   : > { %3495 = shalt.err (!%p3492_p1)
}
  0x5d   : > { %s3496_s28 = scalar_lea.vmem %s4041_s11, 16  ;;  %s3503_s0 = scalar_lea.vmem %s4041_s11, 32 }
  0x5e   : > { %p3497_p2 = scmp.ne.s32.totalorder %s4041_s11, %s3496_s28  ;;  %p3504_p5 = scmp.lt.s32.totalorder %s4041_s11, %s4041_s11 }
  0x5f   : > { %p3505_p6 = scmp.lt.s32.totalorder %s3503_s0, %s3496_s28 }
  0x60   : > { %p3499_p3 = pnand %p3497_p2, %p4051_p13 }
  0x61   : > { %p3506_p8 = por %p3505_p6, %p3504_p5 }
  0x62   : > { %p3500_p4 = pneg %p3499_p3 }
  0x64   : > { %p3507_p10 = pnand %p3506_p8, %p3500_p4 }
  0x66   : > { %3510 = shalt.err (!%p3507_p10)
}
  0x67   : > { %3143 = dma.hbm_to_vmem [thread:$0]  (!%p4037_p11), %s5258_s7, 16, %s4041_s11, [#allocation16]  }
  0x68   : > { %s47_s14 = sadd.s32 1, %s3845_s22  ;;  %s50_s21 = sadd.s32 1, %s3849_s23 }
  0x69   : > { %p48_p7 = scmp.ge.s32.totalorder %s47_s14, 3  ;;  %s54_s26 = sshra.s32 %s3845_s22, 7 }
  0x6a   : > { %s56_s12 = sadd.s32 %s3849_s23, %s54_s26  ;;  %s59_s30 = sand.u32 127, %s3845_s22 }
  0x6b   : > { %s5343_s14 = smov (%p48_p7, %s47_s14), 0  ;;  %s5345_s21 = smov (!%p48_p7, %s50_s21), %s3849_s23 }
  0x6c   : > { %5259 = sst [smem:[#allocation43_spill]] %s5343_s14  ;;  %s2525_s10 = sshll.u32 %s56_s12, 7 }
  0x6d   : > { %s62_s28 = sshra.s32 %s5343_s14, 7  ;;  %p52_p9 = scmp.ge.s32.totalorder %s5345_s21, 3 }
  0x6e   : > { %s4103_s11 = sadd.s32 %s2525_s10, %s59_s30  ;;  %s67_s2 = sand.u32 127, %s5343_s14 }
  0x6f   : > { %s4106_s0 = sld [smem:[#allocation4 + %s4103_s11]]  ;;  %s5347_s21 = smov (%p52_p9, %s5345_s21), 0 }
  0x70   : > { %5260 = sst [smem:[#allocation44_spill]] %s5347_s21  ;;  %p5227_p12 = scmp.eq.s32.totalorder %s3853_s24, 0 }
  0x71   : > { %s105_s13 = sld [smem:[#allocation4 + %s4103_s11]]  ;;  %s64_s26 = sadd.s32 %s62_s28, %s5347_s21 }
  0x72   : > { %s117_s12 = sadd.s32 1, %s3821_s16  ;;  %s2526_s4 = sshll.u32 %s64_s26, 7 }
  0x73   : > { %p124_p0 = scmp.ne.s32.totalorder %s3821_s16, %s3817_s1  ;;  %s68_s30 = sadd.s32 %s2526_s4, %s67_s2 }
  0x74   : > { %p130_p1 = scmp.ne.s32.totalorder %s3817_s1, %s3813_s15  ;;  %s4119_s10 = sld [smem:[#allocation4 + %s68_s30]] }
  0x75   : > { %s113_s20 = sld [smem:[#allocation4 + %s68_s30]]  ;;  %p4123_p2 = por %p124_p0, %p5227_p12 }
  0x76   : > { %p5262_p3 = scmp.eq.s32.totalorder %s4024_s25, 0  ;;  %p5226_p5 = scmp.lt.s32.totalorder %s3853_s24, 9 }
  0x77   : > { %s404_s4 = sand.u32 1, %s3821_s16   ;;  %s3861_s1 = smov [#allocation14]  }
  0x78   : > { %p4129_p4 = por %p130_p1, %p5262_p3  ;;  %s2542_s2 = sshll.u32 %s404_s4, 7 }
  0x79   : > { %p4140_p6 = pnand %p5226_p5, %p4123_p2  ;;  %s406_s7 = scalar_lea.vmem [#allocation9], %s2542_s2 }
  0x7a   : > { %s5263_s28 = scalar_select %p4129_p4, 1, 0 }
  0x7b   : > { %s5265_s26 = scalar_select %p4140_p6, 1, 0 }
  0x7c   : > { %5264 = sst [smem:[#allocation45_spill]] %s5263_s28  ;;  %s114_s30 = ssub.s32 %s105_s13, %s113_s20 }
  0x7d   : > { %s421_s14 = sshll.u32 %s406_s7, 4  ;;  %p115_p8 = scmp.eq.s32.totalorder %s114_s30, 0  ;;  %s4144_s14 = int_to_ptr.vmem [resolvable:$true] %s421_s14 }
  0x7e   : > { %s3115_s22 = scalar_select %p4123_p2, [#allocation4], [#allocation22] }
  0x7f   : > { %s4149_s28 = scalar_select %p115_p8, %s3821_s16, %s117_s12  }
  0x80   : > { %s3116_s15 = scalar_select %p4123_p2, %s4103_s11, 0 }
  0x81   : > { %5266 = sst [smem:[#allocation46_spill]] %s4149_s28  ;;  %s5349_s22 = smov (!%p5226_p5, %s3115_s22), [#allocation24] }
  0x82   : > { %s5351_s15 = smov (!%p5226_p5, %s3116_s15), 0  ;;  %s323_s20 = sshll.u32 %s3861_s1, 4  ;;  %s324_s20 = int_to_ptr.vmem [resolvable:$true] %s323_s20 }
  0x83   : > { %s4158_s4 = sld [smem:[%s5349_s22 + %s5351_s15]]  ;;  %s3862_s7 = smov [#allocation17]  }
  0x84   : > { %s348_s13 = sshll.u32 %s3862_s7, 4  ;;  %s5267_s6 = sld [smem:[#allocation51_spill]]  ;;  %s349_s13 = int_to_ptr.vmem [resolvable:$true] %s348_s13 }
  0x8a   : > { %s3511_s25 = scalar_lea.hbm %s5267_s6, 2048 }
  0x8b   : > { %p3512_p10 = scmp.ne.s32.totalorder %s5267_s6, %s3511_s25  ;;  %p3518_p0 = scmp.lt.u32.totalorder %s3511_s25, %s5267_s6 }
  0x8d   : > { %p3514_p7 = pnand %p3512_p10, %p4051_p13 }
  0x8f   : > { %p3515_p9 = pneg %p3514_p7 }
  0x91   : > { %p3520_p1 = pnand %p3518_p0, %p3515_p9 }
  0x93   : > { %3523 = shalt.err (!%p3520_p1)
}
  0x94   : > { %s3524_s1 = scalar_lea.vmem %s324_s20, 2048  ;;  %p3532_p5 = scmp.lt.s32.totalorder %s324_s20, %s324_s20 }
  0x95   : > { %p3525_p2 = scmp.ne.s32.totalorder %s324_s20, %s3524_s1  ;;  %p3533_p12 = scmp.lt.s32.totalorder %s3524_s1, %s3524_s1 }
  0x97   : > { %p3527_p3 = pnand %p3525_p2, %p4051_p13  ;;  %p3534_p4 = por %p3533_p12, %p3532_p5 }
  0x99   : > { %p3528_p8 = pneg %p3527_p3 }
  0x9b   : > { %p3535_p6 = pnand %p3534_p4, %p3528_p8 }
  0x9d   : > { %3538 = shalt.err (!%p3535_p6)
}
  0x9e   : > { %s5268_s17 = smov 8   ;;  %s5269_s22 = smov 128  }
  0x9f   : > { %3140 = dma.hbm_to_vmem [thread:$0]  (!%p4037_p11), %s5267_s6, 2048, %s324_s20, [#allocation13], %s5269_s22, %s5269_s22, %s5268_s17  }
  0xa0   : > { %s5270_s8 = sld [smem:[#allocation53_spill]] }
  0xa6   : > { %s3539_s2 = scalar_lea.hbm %s5270_s8, 16 }
  0xa7   : > { %p3540_p12 = scmp.ne.s32.totalorder %s5270_s8, %s3539_s2  ;;  %p3546_p6 = scmp.lt.u32.totalorder %s3539_s2, %s5270_s8 }
  0xa9   : > { %p3542_p4 = pnand %p3540_p12, %p4051_p13 }
  0xab   : > { %p3543_p5 = pneg %p3542_p4 }
  0xad   : > { %p3548_p10 = pnand %p3546_p6, %p3543_p5 }
  0xaf   : > { %3551 = shalt.err (!%p3548_p10)
}
  0xb0   : > { %s3552_s28 = scalar_lea.vmem %s349_s13, 16  ;;  %s3559_s20 = scalar_lea.vmem %s349_s13, 32 }
  0xb1   : > { %p3553_p7 = scmp.ne.s32.totalorder %s349_s13, %s3552_s28  ;;  %p3560_p1 = scmp.lt.s32.totalorder %s349_s13, %s349_s13 }
  0xb2   : > { %p3561_p2 = scmp.lt.s32.totalorder %s3559_s20, %s3552_s28 }
  0xb3   : > { %p3555_p9 = pnand %p3553_p7, %p4051_p13 }
  0xb4   : > { %p3562_p3 = por %p3561_p2, %p3560_p1 }
  0xb5   : > { %p3556_p0 = pneg %p3555_p9 }
  0xb7   : > { %p3563_p8 = pnand %p3562_p3, %p3556_p0 }
  0xb9   : > { %3566 = shalt.err (!%p3563_p8)
}
  0xba   : > { %3146 = dma.hbm_to_vmem [thread:$0]  (!%p4037_p11), %s5270_s8, 16, %s349_s13, [#allocation16]  }
  0xbb   : > { %s2618_s7 = sshll.u32 %s4158_s4, 11  ;;  %s3863_s2 = smov [#allocation18]  }
  0xbc   : > { %s359_s30 = sshll.u32 %s3863_s2, 4  ;;  %s5271_s3 = sld [smem:[#allocation48_spill]]  ;;  %s4205_s30 = int_to_ptr.vmem [resolvable:$true] %s359_s30 }
  0xbd   : > { %s5272_s28 = sand.u32 1, %s3853_s24   ;;  %p5273_p4 = scmp.ne.s32.totalorder %s5265_s26, 0 }
  0xbe   : > { %s4209_s20 = scalar_lea.sflag [#allocation10], %s5272_s28 }
  0xbf   : > { %p3569_p5 = pneg %p5273_p4 }
  0xc2   : > { %s4203_s1 = scalar_lea.hbm %s5271_s3, %s2618_s7  ;;  %s3572_s15 = scalar_lea.hbm %s5271_s3, 6144 }
  0xc3   : > { %s3567_s25 = scalar_lea.hbm %s4203_s1, 2048  ;;  %p3573_p7 = scmp.lt.u32.totalorder %s4203_s1, %s5271_s3 }
  0xc4   : > { %p3568_p12 = scmp.ne.s32.totalorder %s4203_s1, %s3567_s25  ;;  %p3574_p9 = scmp.lt.u32.totalorder %s3572_s15, %s3567_s25 }
  0xc5   : > { %p3576_p1 = scmp.lt.u32.totalorder %s3567_s25, %s4203_s1 }
  0xc6   : > { %p3570_p6 = pnand %p3569_p5, %p3568_p12  ;;  %p3575_p0 = por %p3574_p9, %p3573_p7 }
  0xc8   : > { %p3571_p10 = pneg %p3570_p6  ;;  %p3577_p2 = por %p3576_p1, %p3575_p0 }
  0xca   : > { %p3578_p3 = pnand %p3577_p2, %p3571_p10 }
  0xcc   : > { %3581 = shalt.err (!%p3578_p3)
}
  0xcd   : > { %s3582_s12 = scalar_lea.vmem %s4144_s14, 2048  ;;  %s3864_s5 = smov [#allocation9]  }
  0xce   : > { %p3583_p8 = scmp.ne.s32.totalorder %s4144_s14, %s3582_s12  ;;  %s3587_s28 = sshll.u32 %s3864_s5, 4  ;;  %s3588_s28 = int_to_ptr.vmem [resolvable:$false] %s3587_s28 }
  0xcf   : > { %s3589_s4 = scalar_lea.vmem %s3588_s28, 4096  ;;  %p3590_p11 = scmp.lt.s32.totalorder %s4144_s14, %s3588_s28 }
  0xd0   : > { %p3585_p12 = pnand %p3583_p8, %p3569_p5  ;;  %p3591_p7 = scmp.lt.s32.totalorder %s3589_s4, %s3582_s12 }
  0xd2   : > { %p3586_p6 = pneg %p3585_p12  ;;  %p3592_p9 = por %p3591_p7, %p3590_p11 }
  0xd4   : > { %p3593_p0 = pnand %p3592_p9, %p3586_p6 }
  0xd6   : > { %3596 = shalt.err (!%p3593_p0)
}
  0xd7   : > { %s3865_s25 = smov 64   ;;  %s3866_s13 = smov 4  }
  0xd8   : > { %3160 = dma.hbm_to_vmem [thread:$0]  (!%p5273_p4), %s4203_s1, 2048, %s4144_s14, %s4209_s20, %s3865_s25, %s3865_s25, %s3866_s13  }
  0xd9   : > { %s5274_s9 = sld [smem:[#allocation54_spill]] }
  0xdf   : > { %s3597_s2 = scalar_lea.hbm %s5274_s9, 16 }
  0xe0   : > { %p3598_p5 = scmp.ne.s32.totalorder %s5274_s9, %s3597_s2  ;;  %p3604_p1 = scmp.lt.u32.totalorder %s3597_s2, %s5274_s9 }
  0xe2   : > { %p3600_p11 = pnand %p3598_p5, %p4051_p13 }
  0xe4   : > { %p3601_p10 = pneg %p3600_p11 }
  0xe6   : > { %p3606_p2 = pnand %p3604_p1, %p3601_p10 }
  0xe8   : > { %3609 = shalt.err (!%p3606_p2)
}
  0xe9   : > { %s3610_s14 = scalar_lea.vmem %s4205_s30, 16  ;;  %s3617_s3 = scalar_lea.vmem %s4205_s30, 32 }
  0xea   : > { %p3611_p4 = scmp.ne.s32.totalorder %s4205_s30, %s3610_s14  ;;  %p3618_p12 = scmp.lt.s32.totalorder %s4205_s30, %s4205_s30 }
  0xeb   : > { %p3619_p6 = scmp.lt.s32.totalorder %s3617_s3, %s3610_s14 }
  0xec   : > { %p3613_p3 = pnand %p3611_p4, %p4051_p13 }
  0xed   : > { %p3620_p7 = por %p3619_p6, %p3618_p12 }
  0xee   : > { %p3614_p8 = pneg %p3613_p3 }
  0xf0   : > { %p3621_p9 = pnand %p3620_p7, %p3614_p8 }
  0xf2   : > { %3624 = shalt.err (!%p3621_p9)
}
  0xf3   : > { %p5275_p0 = scmp.ne.s32.totalorder %s5255_s29, 0  ;;  %s5276_s27 = sld [smem:[#allocation37_spill]] }
  0xf4   : > { %s5277_s4 = sld [smem:[#allocation41_spill]]  ;;  %s4263_s29 = ssub.s32 %s3849_s23, %s5347_s21 }
  0xf5   : > { %3149 = dma.hbm_to_vmem [thread:$0]  (!%p5275_p0), %s5274_s9, 16, %s4205_s30, [#allocation19]  }
  0xf6   : > { %s71_s25 = ssub.s32 %s4106_s0, %s4119_s10  ;;  %s75_s15 = sadd.s32 1, %s3833_s19 }
  0xf7   : > { %s72_s13 = sor.u32 %s71_s25, %s4263_s29  ;;  %p82_p5 = scmp.ne.s32.totalorder %s3833_s19, %s3829_s18 }
  0xf8   : > { %p73_p13 = scmp.eq.s32.totalorder %s72_s13, 0  ;;  %s370_s7 = sand.u32 1, %s3833_s19  }
  0xf9   : > { %p88_p11 = scmp.ne.s32.totalorder %s3829_s18, %s5276_s27  ;;  %p5278_p10 = scmp.eq.s32.totalorder %s3853_s24, 0 }
  0xfa   : > { %s4275_s2 = scalar_select %p73_p13, %s3833_s19, %s75_s15  }
  0xfb   : > { %p84_p1 = por %p5278_p10, %p82_p5  ;;  %p5279_p2 = scmp.eq.s32.totalorder %s5277_s4, 0 }
  0xfc   : > { %s5280_s30 = sld [smem:[#allocation35_spill]]  ;;  %s2536_s0 = sshll.u32 %s370_s7, 8 }
  0xfd   : > { %p4281_p4 = por %p5279_p2, %p88_p11  ;;  %s5282_s10 = sld [smem:[#allocation34_spill]] }
  0xfe   : > { %s3101_s12 = smul.u32 192, %s3849_s23  ;;  %s5283_s14 = sld [smem:[#allocation33_spill]] }
  0xff   : > { %s5281_s5 = scalar_select %p4281_p4, 1, 0 }
 0x100   : > { %s3112_s28 = scalar_select %p84_p1, [#allocation4], [#allocation21] }
 0x101   : > { %s5353_s11 = smov (!%p84_p1, %s4103_s11), 0  ;;  %p5284_p3 = scmp.lt.s32.totalorder %s3853_s24, 9 }
 0x102   : > { %s374_s3 = scalar_lea.vmem [#allocation6], %s2536_s0  ;;  %s2524_s25 = sadd.s32 4294967294, %s3853_s24  }
 0x103   : > { %s5355_s28 = smov (!%p5284_p3, %s3112_s28), [#allocation23]  ;;  %p5285_p8 = pmov %p5284_p3 }
 0x104   : > { %s392_s26 = sshll.u32 %s374_s3, 4  ;;  %p5286_p12 = pmov %p5284_p3  ;;  %s4297_s26 = int_to_ptr.vmem [resolvable:$true] %s392_s26 }
 0x105   : > { %s5357_s11 = smov (!%p5285_p8, %s5353_s11), 0  ;;  %s143_s15 = sadd.s32 1, %s5280_s30 }
 0x106   : > { %p4293_p6 = pnand %p5286_p12, %p84_p1  ;;  %s382_s27 = sld [smem:[%s5355_s28 + %s5357_s11]] }
 0x107   : > { %p5232_p9 = scmp.ne.s32.totalorder %s5280_s30, %s5282_s10  ;;  %s5288_s9 = sld [smem:[#allocation47_spill]] }
 0x108   : > { %p5289_p13 = pmov %p5278_p10  ;;  %s4320_s28 = scalar_lea.sflag [#allocation7], %s370_s7 }
 0x109   : > { %p3627_p10 = pneg %p4293_p6 }
 0x10a   : > { %p4316_p5 = por %p5232_p9, %p5289_p13 }
 0x10c   : > { %s2539_s13 = sshll.u32 %s382_s27, 1 }
 0x10d   : > { %s389_s6 = sadd.s32 %s3101_s12, %s2539_s13  ;;  %s3630_s27 = scalar_lea.hbm %s5288_s9, 36864 }
 0x10e   : > { %s2541_s8 = sshll.u32 %s389_s6, 6 }
 0x10f   : > { %s4309_s21 = scalar_lea.hbm %s5288_s9, %s2541_s8 }
 0x110   : > { %s3625_s12 = scalar_lea.hbm %s4309_s21, 4096  ;;  %p3631_p3 = scmp.lt.u32.totalorder %s4309_s21, %s5288_s9 }
 0x111   : > { %p3626_p11 = scmp.ne.s32.totalorder %s4309_s21, %s3625_s12  ;;  %p3632_p8 = scmp.lt.u32.totalorder %s3630_s27, %s3625_s12 }
 0x112   : > { %p3634_p13 = scmp.lt.u32.totalorder %s3625_s12, %s4309_s21 }
 0x113   : > { %p3628_p1 = pnand %p3627_p10, %p3626_p11  ;;  %p3633_p12 = por %p3632_p8, %p3631_p3 }
 0x115   : > { %p3629_p2 = pneg %p3628_p1  ;;  %p3635_p9 = por %p3634_p13, %p3633_p12 }
 0x117   : > { %p3636_p0 = pnand %p3635_p9, %p3629_p2 }
 0x119   : > { %3639 = shalt.err (!%p3636_p0)
}
 0x11a   : > { %s3640_s7 = scalar_lea.vmem %s4297_s26, 4096  ;;  %s3867_s3 = smov [#allocation6]  }
 0x11b   : > { %p3641_p11 = scmp.ne.s32.totalorder %s4297_s26, %s3640_s7  ;;  %s3645_s6 = sshll.u32 %s3867_s3, 4  ;;  %s3646_s6 = int_to_ptr.vmem [resolvable:$false] %s3645_s6 }
 0x11c   : > { %s3647_s8 = scalar_lea.vmem %s3646_s6, 8192  ;;  %p3648_p4 = scmp.lt.s32.totalorder %s4297_s26, %s3646_s6 }
 0x11d   : > { %p3643_p1 = pnand %p3641_p11, %p3627_p10  ;;  %p3649_p3 = scmp.lt.s32.totalorder %s3647_s8, %s3640_s7 }
 0x11f   : > { %p3644_p7 = pneg %p3643_p1  ;;  %p3650_p8 = por %p3649_p3, %p3648_p4 }
 0x121   : > { %p3651_p12 = pnand %p3650_p8, %p3644_p7 }
 0x123   : > { %3654 = shalt.err (!%p3651_p12)
}
 0x124   : > { %s3868_s12 = smov 384   ;;  %p5291_p4 = scmp.eq.s32.totalorder %s4263_s29, 0 }
 0x125   : > { %3155 = dma.hbm_to_vmem [thread:$0]  (!%p4293_p6), %s4309_s21, 4096, %s4297_s26, %s4320_s28, %s3868_s12, %s5269_s22, %s5268_s17  }
 0x126   : > { %s4355_s1 = scalar_select %p5291_p4, %s5280_s30, %s143_s15  }
 0x127   : > { %p5292_p7 = scmp.eq.s32.totalorder %s5277_s4, 0  ;;  %p5293_p9 = scmp.ne.s32.totalorder %s5282_s10, %s5283_s14 }
 0x128   : > { %p285_p10 = scmp.eq.s32.totalorder %s5277_s4, 8  ;;  %p291_p2 = scmp.eq.s32.totalorder %s2524_s25, 8 }
 0x129   : > { %p4362_p0 = por %p5293_p9, %p5292_p7  ;;  %s433_s13 = sand.u32 1, %s5280_s30  }
 0x12a   : > { %p5295_p13 = scmp.ne.s32.totalorder %s5280_s30, %s5282_s10  ;;  %s2546_s21 = sshll.u32 %s433_s13, 8 }
 0x12b   : > { %p5297_p6 = pmov %p5293_p9  ;;  %s2619_s26 = sshll.u32 %s3849_s23, 12 }
 0x12c   : > { %p4373_p11 = por %p285_p10, %p5295_p13  ;;  %s435_s15 = scalar_lea.vmem [#allocation11], %s2546_s21 }
 0x12d   : > { %p4380_p1 = por %p291_p2, %p5297_p6  ;;  %s442_s28 = sshll.u32 %s435_s15, 4  ;;  %s4390_s28 = int_to_ptr.vmem [resolvable:$true] %s442_s28 }
 0x12e   : > { %s5296_s0 = scalar_select %p4373_p11, 1, 0 }
 0x12f   : > { %s5298_s29 = scalar_select %p4380_p1, 1, 0 }
 0x130   : > { %s5299_s4 = sld [smem:[#allocation49_spill]]  ;;  %p5300_p3 = scmp.lt.s32.totalorder %s3853_s24, 9 }
 0x132   : > { %p4396_p8 = pnand %p5300_p3, %p4316_p5 }
 0x134   : > { %p3657_p4 = pneg %p4396_p8 }
 0x136   : > { %s4388_s6 = scalar_lea.hbm %s5299_s4, %s2619_s26  ;;  %s3660_s8 = scalar_lea.hbm %s5299_s4, 12288 }
 0x137   : > { %s3655_s10 = scalar_lea.hbm %s4388_s6, 4096  ;;  %p3661_p5 = scmp.lt.u32.totalorder %s4388_s6, %s5299_s4 }
 0x138   : > { %p3656_p12 = scmp.ne.s32.totalorder %s4388_s6, %s3655_s10  ;;  %p3662_p10 = scmp.lt.u32.totalorder %s3660_s8, %s3655_s10 }
 0x139   : > { %p3664_p13 = scmp.lt.u32.totalorder %s3655_s10, %s4388_s6 }
 0x13a   : > { %p3658_p7 = pnand %p3657_p4, %p3656_p12  ;;  %p3663_p2 = por %p3662_p10, %p3661_p5 }
 0x13c   : > { %p3659_p9 = pneg %p3658_p7  ;;  %p3665_p6 = por %p3664_p13, %p3663_p2 }
 0x13e   : > { %p3666_p3 = pnand %p3665_p6, %p3659_p9 }
 0x140   : > { %3669 = shalt.err (!%p3666_p3)
}
 0x141   : > { %s3670_s13 = scalar_lea.vmem %s4390_s28, 4096  ;;  %s3869_s21 = smov [#allocation11]  }
 0x142   : > { %p3671_p12 = scmp.ne.s32.totalorder %s4390_s28, %s3670_s13  ;;  %s3675_s26 = sshll.u32 %s3869_s21, 4  ;;  %s3676_s26 = int_to_ptr.vmem [resolvable:$false] %s3675_s26 }
 0x143   : > { %s3677_s15 = scalar_lea.vmem %s3676_s26, 8192  ;;  %p3678_p11 = scmp.lt.s32.totalorder %s4390_s28, %s3676_s26 }
 0x144   : > { %p3673_p7 = pnand %p3671_p12, %p3657_p4  ;;  %p3679_p5 = scmp.lt.s32.totalorder %s3677_s15, %s3670_s13 }
 0x146   : > { %p3674_p1 = pneg %p3673_p7  ;;  %p3680_p10 = por %p3679_p5, %p3678_p11 }
 0x148   : > { %p3681_p2 = pnand %p3680_p10, %p3674_p1 }
 0x14a   : > { %3684 = shalt.err (!%p3681_p2)
}
 0x14b   : > { %3163 = dma.hbm_to_vmem [thread:$0]  (!%p4396_p8), %s4388_s6, 4096, %s4390_s28, %s4209_s20, %s5269_s22, %s5269_s22, %s5268_s17  }
 0x14c   : > { %s5302_s7 = sld [smem:[#allocation42_spill]] }
 0x152   : > { %p5303_p4 = scmp.ne.s32.totalorder %s5302_s7, 0 }
 0x153   : > { %s456_s3 = sand.u32 (!%p5303_p4), 1, %s3829_s18   ;;  %p5304_p11 = scmp.ne.s32.totalorder (!%p5303_p4), %s5281_s5, 0 }
 0x154   : > { %454 = sbr.rel (%p5303_p4) target bundleno = 1393 (0x571), region = 52  ;;  %s2550_s10 = sshll.u32 (!%p5303_p4), %s456_s3, 8 }
 0x155   : > { %s457_s14 = scalar_lea.sflag (!%p5303_p4), [#allocation7], %s456_s3  ;;  %s4432_s25 = scalar_lea.vmem (!%p5303_p4), [#allocation6], %s2550_s10 }
 0x15b   : > { %3772 = dma.done.wait (%p5304_p11), %s457_s14, 4096  }
 0x15c   : > { %3774 = vsyncadd (%p5304_p11), %s457_s14, 4294963200  ;;  %s5305_s30 = sld [smem:[#allocation41_spill]]  ;;  %s5306_s8 = sld [smem:[#allocation36_spill]] }
 0x15d   : > { %s5307_s11 = sld [smem:[#allocation45_spill]] }
 0x162   : > { %s465_s12 = sand.u32 1, %s5305_s30   ;;  %s467_s17 = sand.u32 1, %s5306_s8  }
 0x163   : > { %s2551_s22 = sshll.u32 %s467_s17, 7  ;;  %s466_s20 = scalar_lea.sflag [#allocation10], %s465_s12 }
 0x164   : > { %s4440_s28 = scalar_lea.vmem [#allocation9], %s2551_s22  ;;  %p5308_p1 = scmp.ne.s32.totalorder %s5307_s11, 0 }
 0x166   : > { %3776 = dma.done.wait (%p5308_p1), %s466_s20, 2048  }
 0x167   : > { %3778 = vsyncadd (%p5308_p1), %s466_s20, 4294965248  ;;  %s5309_s6 = sld [smem:[#allocation34_spill]] }
 0x16d   : > { %s476_s13 = sand.u32 1, %s5309_s6  }
 0x16e   : > { %s2552_s5 = sshll.u32 %s476_s13, 8 }
 0x16f   : > { %s4449_s21 = scalar_lea.vmem [#allocation11], %s2552_s5 }
 0x170   : > { %3780 = dma.done.wait (%p4362_p0), %s466_s20, 4096  }
 0x171   : > { %3782 = vsyncadd (%p4362_p0), %s466_s20, 4294963200  ;;  %p5310_p8 = scmp.eq.s32.totalorder %s5305_s30, 0 }
 0x173   : > { %3784 = dma.done.wait (%p5310_p8), [#allocation13], 4096   ;;  %p5311_p9 = pmov %p5310_p8 }
 0x174   : > { %p5312_p13 = pmov %p5310_p8 }
 0x175   : > { %3786 = vsyncadd (%p5311_p9), [#allocation13], 4294963200 }
 0x176   : > { %3788 = dma.done.wait (%p5312_p13), [#allocation16], 32   ;;  %p5313_p6 = pmov %p5310_p8 }
 0x178   : > { %3790 = vsyncadd (%p5313_p6), [#allocation16], 4294967264  ;;  %p5314_p3 = pmov %p5313_p6 }
 0x17a   : > { %3792 = dma.done.wait (%p5314_p3), [#allocation19], 16   ;;  %p5315_p12 = pmov %p5314_p3 }
 0x17b   : > { %s4467_s27 = scalar_lea.vmem [#allocation20], %s2552_s5  ;;  %s5316_s26 = sld [smem:[#allocation38_spill]] }
 0x17c   : > { %3794 = vsyncadd (%p5315_p12), [#allocation19], 4294967280 }
 0x181   : > { %p2559_p0 = scmp.ne.s32.totalorder %s5316_s26, 0 }
 0x182   : > { %v3870_v0 = vmov (!%p2559_p0), 0.0  }
 0x183   : > { %566 = sbr.rel (%p2559_p0) target bundleno = 403 (0x193), region = 88  ;;  %567 = vst [vmem:[#allocation2] sm:$0xff] (!%p2559_p0), %v3870_v0  ;;  %568 = vst [vmem:[#allocation2 + $0x8] sm:$0xff] (!%p2559_p0), %v3870_v0 }
 0x184   : > { %569 = vst [vmem:[#allocation2 + $0x10] sm:$0xff] (!%p2559_p0), %v3870_v0  ;;  %570 = vst [vmem:[#allocation2 + $0x18] sm:$0xff] (!%p2559_p0), %v3870_v0 }
 0x185   : > { %571 = vst [vmem:[#allocation2 + $0x20] sm:$0xff] (!%p2559_p0), %v3870_v0  ;;  %572 = vst [vmem:[#allocation2 + $0x28] sm:$0xff] (!%p2559_p0), %v3870_v0 }
 0x186   : > { %573 = vst [vmem:[#allocation2 + $0x30] sm:$0xff] (!%p2559_p0), %v3870_v0  ;;  %574 = vst [vmem:[#allocation2 + $0x38] sm:$0xff] (!%p2559_p0), %v3870_v0 }
 0x187   : > { %575 = vst [vmem:[#allocation2 + $0x40] sm:$0xff] (!%p2559_p0), %v3870_v0  ;;  %576 = vst [vmem:[#allocation2 + $0x48] sm:$0xff] (!%p2559_p0), %v3870_v0 }
 0x188   : > { %577 = vst [vmem:[#allocation2 + $0x50] sm:$0xff] (!%p2559_p0), %v3870_v0  ;;  %578 = vst [vmem:[#allocation2 + $0x58] sm:$0xff] (!%p2559_p0), %v3870_v0 }
 0x189   : > { %579 = vst [vmem:[#allocation2 + $0x60] sm:$0xff] (!%p2559_p0), %v3870_v0  ;;  %580 = vst [vmem:[#allocation2 + $0x68] sm:$0xff] (!%p2559_p0), %v3870_v0 }
 0x18a   : > { %581 = vst [vmem:[#allocation2 + $0x70] sm:$0xff] %v3870_v0  ;;  %582 = vst [vmem:[#allocation2 + $0x78] sm:$0xff] %v3870_v0 }
 0x18b   : > { %583 = vst [vmem:[#allocation2 + $0x80] sm:$0xff] %v3870_v0  ;;  %584 = vst [vmem:[#allocation2 + $0x88] sm:$0xff] %v3870_v0 }
 0x18c   : > { %585 = vst [vmem:[#allocation2 + $0x90] sm:$0xff] %v3870_v0  ;;  %586 = vst [vmem:[#allocation2 + $0x98] sm:$0xff] %v3870_v0 }
 0x18d   : > { %587 = vst [vmem:[#allocation2 + $0xa0] sm:$0xff] %v3870_v0  ;;  %588 = vst [vmem:[#allocation2 + $0xa8] sm:$0xff] %v3870_v0 }
 0x18e   : > { %589 = vst [vmem:[#allocation2 + $0xb0] sm:$0xff] %v3870_v0  ;;  %590 = vst [vmem:[#allocation2 + $0xb8] sm:$0xff] %v3870_v0 }
 0x18f   : > { %591 = vst [vmem:[#allocation2 + $0xc0] sm:$0xff] %v3870_v0  ;;  %592 = vst [vmem:[#allocation2 + $0xc8] sm:$0xff] %v3870_v0 }
 0x190   : > { %593 = vst [vmem:[#allocation2 + $0xd0] sm:$0xff] %v3870_v0  ;;  %594 = vst [vmem:[#allocation2 + $0xd8] sm:$0xff] %v3870_v0 }
 0x191   : > { %595 = vst [vmem:[#allocation2 + $0xe0] sm:$0xff] %v3870_v0  ;;  %596 = vst [vmem:[#allocation2 + $0xe8] sm:$0xff] %v3870_v0 }
 0x192   : > { %597 = vst [vmem:[#allocation2 + $0xf0] sm:$0xff] %v3870_v0  ;;  %598 = vst [vmem:[#allocation2 + $0xf8] sm:$0xff] %v3870_v0 }
 0x193 PF: > { %s5317_s15 = sld [smem:[#allocation39_spill]]  ;;  %s5318_s3 = sld [smem:[#allocation38_spill]] }
 0x199   : > { %s599_s7 = sld [smem:[#allocation5 + %s5317_s15]] }
 0x19f   : > { %p2560_p7 = scmp.ge.s32.totalorder %s5318_s3, %s599_s7 }
 0x1a0   : > { %v3307_v1 = vld [vmem:[%s4440_s28 + $0x40] sm:$0xff] (!%p2560_p7)   ;;  %v3309_v3 = vld [vmem:[%s4440_s28 + $0x48] sm:$0xff] (!%p2560_p7)   ;;  %v3311_v5 = vld [vmem:[%s4440_s28 + $0x50] sm:$0xff] (!%p2560_p7)  }
 0x1a1   : > { %603 = sbr.rel (%p2560_p7) target bundleno = 725 (0x2d5), region = 92  ;;  %v3308_v2 = vld [vmem:[%s4440_s28] sm:$0xff] (!%p2560_p7)   ;;  %2621 = vmatprep.subr.bf16.mxu0 (!%p2560_p7), %v3307_v1  ;;  %3053 = vmatprep.subr.bf16.mxu1 (!%p2560_p7), %v3307_v1  ;;  %v3310_v4 = vld [vmem:[%s4440_s28 + $0x8] sm:$0xff] (!%p2560_p7)   ;;  %v3312_v6 = vld [vmem:[%s4440_s28 + $0x10] sm:$0xff] (!%p2560_p7)  }
 0x1a2   : > { %2622 = vmatpush3.bf16.msra.mxu0 (!%p2560_p7), %v3308_v2  ;;  %3061 = vmatpush3.bf16.msra.mxu1 (!%p2560_p7), %v3308_v2  ;;  %v3313_v7 = vld [vmem:[%s4440_s28 + $0x58] sm:$0xff] (!%p2560_p7)   ;;  %v3315_v9 = vld [vmem:[%s4440_s28 + $0x60] sm:$0xff] (!%p2560_p7)   ;;  %v3317_v11 = vld [vmem:[%s4440_s28 + $0x68] sm:$0xff] (!%p2560_p7)  }
 0x1a3   : > { %2623 = vmatprep.subr.bf16.mxu0 (!%p2560_p7), %v3309_v3  ;;  %3054 = vmatprep.subr.bf16.mxu1 (!%p2560_p7), %v3309_v3  ;;  %v3314_v8 = vld [vmem:[%s4440_s28 + $0x18] sm:$0xff] (!%p2560_p7)   ;;  %v3316_v10 = vld [vmem:[%s4440_s28 + $0x20] sm:$0xff] (!%p2560_p7)   ;;  %v3318_v14 = vld [vmem:[%s4440_s28 + $0x28] sm:$0xff] (!%p2560_p7)  }
 0x1a4   : > { %v3325_v12 = vld [vmem:[%s4432_s25 + $0x4] ss:$8 sps:$4 sm:$0xff] (!%p2560_p7)   ;;  %v3319_v15 = vld [vmem:[%s4440_s28 + $0x70] sm:$0xff] (!%p2560_p7)   ;;  %v3321_v17 = vld [vmem:[%s4440_s28 + $0x78] sm:$0xff] (!%p2560_p7)  }
 0x1a5   : > { %v3328_v13 = vld [vmem:[%s4432_s25 + $0x84] ss:$8 sps:$4 sm:$0xff] (!%p2560_p7)   ;;  %988 = vmatprep.mubr.bf16.mxu0 (!%p2560_p7), %v3325_v12  ;;  %v3320_v16 = vld [vmem:[%s4440_s28 + $0x30] sm:$0xff] (!%p2560_p7)   ;;  %v3322_v18 = vld [vmem:[%s4440_s28 + $0x38] sm:$0xff] (!%p2560_p7)  }
 0x1a6   : > { %2624 = vmatpush3.bf16.msra.mxu0 (!%p2560_p7), %v3310_v4  ;;  %3062 = vmatpush3.bf16.msra.mxu1 (!%p2560_p7), %v3310_v4  ;;  %v3323_v19 = vld [vmem:[%s4432_s25] ss:$8 sps:$4 sm:$0xff] (!%p2560_p7)   ;;  %v3329_v21 = vld [vmem:[%s4432_s25 + $0x14] ss:$8 sps:$4 sm:$0xff] (!%p2560_p7)   ;;  %v3333_v23 = vld [vmem:[%s4432_s25 + $0x10] ss:$8 sps:$4 sm:$0xff] (!%p2560_p7)  }
 0x1a7   : > { %2625 = vmatprep.subr.bf16.mxu0 (!%p2560_p7), %v3311_v5  ;;  %3055 = vmatprep.subr.bf16.mxu1 (!%p2560_p7), %v3311_v5  ;;  %v3326_v20 = vld [vmem:[%s4432_s25 + $0x80] ss:$8 sps:$4 sm:$0xff] (!%p2560_p7)   ;;  %v3331_v22 = vld [vmem:[%s4432_s25 + $0x94] ss:$8 sps:$4 sm:$0xff] (!%p2560_p7)   ;;  %v3334_v24 = vld [vmem:[%s4432_s25 + $0x90] ss:$8 sps:$4 sm:$0xff] (!%p2560_p7)  }
 0x1a8   : > { %1052 = vmatprep.mubr.bf16.mxu1 %v3328_v13  ;;  %v3335_v25 = vld [vmem:[%s4432_s25 + $0x24] ss:$8 sps:$4 sm:$0xff]   ;;  %v3339_v27 = vld [vmem:[%s4432_s25 + $0x20] ss:$8 sps:$4 sm:$0xff]   ;;  %v3341_v29 = vld [vmem:[%s4432_s25 + $0x34] ss:$8 sps:$4 sm:$0xff]  }
 0x1a9   : > { %v3337_v26 = vld [vmem:[%s4432_s25 + $0xa4] ss:$8 sps:$4 sm:$0xff]   ;;  %v3340_v28 = vld [vmem:[%s4432_s25 + $0xa0] ss:$8 sps:$4 sm:$0xff]   ;;  %v3343_v30 = vld [vmem:[%s4432_s25 + $0xb4] ss:$8 sps:$4 sm:$0xff]  }
 0x1aa   : > { %2626 = vmatpush3.bf16.msra.mxu0 %v3312_v6  ;;  %3063 = vmatpush3.bf16.msra.mxu1 %v3312_v6  ;;  %v3345_v31 = vld [vmem:[%s4432_s25 + $0x30] ss:$8 sps:$4 sm:$0xff]   ;;  %v3347_v33 = vld [vmem:[%s4432_s25 + $0x44] ss:$8 sps:$4 sm:$0xff]   ;;  %v3351_v35 = vld [vmem:[%s4432_s25 + $0x40] ss:$8 sps:$4 sm:$0xff]  }
 0x1ab   : > { %2627 = vmatprep.subr.bf16.mxu0 %v3313_v7  ;;  %3056 = vmatprep.subr.bf16.mxu1 %v3313_v7  ;;  %v3346_v32 = vld [vmem:[%s4432_s25 + $0xb0] ss:$8 sps:$4 sm:$0xff]   ;;  %v3349_v34 = vld [vmem:[%s4432_s25 + $0xc4] ss:$8 sps:$4 sm:$0xff]   ;;  %v3352_v36 = vld [vmem:[%s4432_s25 + $0xc0] ss:$8 sps:$4 sm:$0xff]  }
 0x1ac   : > { %v3353_v37 = vld [vmem:[%s4432_s25 + $0x54] ss:$8 sps:$4 sm:$0xff]   ;;  %v3357_v39 = vld [vmem:[%s4432_s25 + $0x50] ss:$8 sps:$4 sm:$0xff]   ;;  %v3359_v41 = vld [vmem:[%s4432_s25 + $0x64] ss:$8 sps:$4 sm:$0xff]  }
 0x1ad   : > { %v3355_v38 = vld [vmem:[%s4432_s25 + $0xd4] ss:$8 sps:$4 sm:$0xff]   ;;  %v3358_v40 = vld [vmem:[%s4432_s25 + $0xd0] ss:$8 sps:$4 sm:$0xff]   ;;  %v3361_v42 = vld [vmem:[%s4432_s25 + $0xe4] ss:$8 sps:$4 sm:$0xff]  }
 0x1ae   : > { %2628 = vmatpush3.bf16.msra.mxu0 %v3314_v8  ;;  %3064 = vmatpush3.bf16.msra.mxu1 %v3314_v8  ;;  %v3363_v43 = vld [vmem:[%s4432_s25 + $0x60] ss:$8 sps:$4 sm:$0xff]   ;;  %v3365_v45 = vld [vmem:[%s4432_s25 + $0x74] ss:$8 sps:$4 sm:$0xff]   ;;  %v3369_v47 = vld [vmem:[%s4432_s25 + $0x70] ss:$8 sps:$4 sm:$0xff]  }
 0x1af   : > { %2629 = vmatprep.subr.bf16.mxu0 %v3315_v9  ;;  %3057 = vmatprep.subr.bf16.mxu1 %v3315_v9  ;;  %v3364_v44 = vld [vmem:[%s4432_s25 + $0xe0] ss:$8 sps:$4 sm:$0xff]   ;;  %v3367_v46 = vld [vmem:[%s4432_s25 + $0xf4] ss:$8 sps:$4 sm:$0xff]   ;;  %v3370_v48 = vld [vmem:[%s4432_s25 + $0xf0] ss:$8 sps:$4 sm:$0xff]  }
 0x1b0   : > { %v604_v51 = vld [vmem:[#allocation2] sm:$0xff]  ;;  %v605_v59 = vld [vmem:[#allocation2 + $0x8] sm:$0xff]  ;;  %v606_v7 = vld [vmem:[#allocation2 + $0x10] sm:$0xff] }
 0x1b1   : > { %v620_v53 = vld [vmem:[#allocation2 + $0x80] sm:$0xff]  ;;  %v621_v61 = vld [vmem:[#allocation2 + $0x88] sm:$0xff]  ;;  %v622_v9 = vld [vmem:[#allocation2 + $0x90] sm:$0xff] }
 0x1b2   : > { %2630 = vmatpush3.bf16.msra.mxu0 %v3316_v10  ;;  %3065 = vmatpush3.bf16.msra.mxu1 %v3316_v10 }
 0x1b3   : > { %2631 = vmatprep.subr.bf16.mxu0 %v3317_v11  ;;  %3058 = vmatprep.subr.bf16.mxu1 %v3317_v11 }
 0x1b6   : > { %2632 = vmatpush3.bf16.msra.mxu0 %v3318_v14  ;;  %3066 = vmatpush3.bf16.msra.mxu1 %v3318_v14 }
 0x1b7   : > { %2633 = vmatprep.subr.bf16.mxu0 %v3319_v15  ;;  %3059 = vmatprep.subr.bf16.mxu1 %v3319_v15  ;;  %v607_v15 = vld [vmem:[#allocation2 + $0x18] sm:$0xff] }
 0x1ba   : > { %2634 = vmatpush3.bf16.msra.mxu0 %v3320_v16  ;;  %3067 = vmatpush3.bf16.msra.mxu1 %v3320_v16 }
 0x1bb   : > { %2635 = vmatprep.subr.bf16.mxu0 %v3321_v17  ;;  %3060 = vmatprep.subr.bf16.mxu1 %v3321_v17  ;;  %v623_v17 = vld [vmem:[#allocation2 + $0x98] sm:$0xff] }
 0x1be   : > { %2636 = vmatpush3.bf16.msra.mxu0 %v3322_v18  ;;  %3068 = vmatpush3.bf16.msra.mxu1 %v3322_v18 }
 0x1c1   : > { %989 = vmatmul.mubr.bf16.vlgmr.msra.gmra.mrb[0].mxu0 %v3323_v19  ;;  %1053 = vmatmul.mubr.bf16.vlgmr.msra.gmra.mrb[0].mxu1 %v3326_v20 }
 0x1c2   : > { %996 = vmatprep.mubr.bf16.mxu0 %v3329_v21  ;;  %1060 = vmatprep.mubr.bf16.mxu1 %v3331_v22 }
 0x1c9   : > { %997 = vmatmul.mubr.bf16.gmra.mrb[4].mxu0 %v3333_v23  ;;  %1061 = vmatmul.mubr.bf16.gmra.mrb[4].mxu1 %v3334_v24 }
 0x1ca   : > { %1004 = vmatprep.mubr.bf16.mxu0 %v3335_v25  ;;  %1068 = vmatprep.mubr.bf16.mxu1 %v3337_v26 }
 0x1d1   : > { %1005 = vmatmul.mubr.bf16.gmra.mrb[8].mxu0 %v3339_v27  ;;  %1069 = vmatmul.mubr.bf16.gmra.mrb[8].mxu1 %v3340_v28  ;;  %v608_v27 = vld [vmem:[#allocation2 + $0x20] sm:$0xff] }
 0x1d2   : > { %1012 = vmatprep.mubr.bf16.mxu0 %v3341_v29  ;;  %1076 = vmatprep.mubr.bf16.mxu1 %v3343_v30  ;;  %v624_v29 = vld [vmem:[#allocation2 + $0xa0] sm:$0xff] }
 0x1d9   : > { %1013 = vmatmul.mubr.bf16.gmra.mrb[12].mxu0 %v3345_v31  ;;  %1077 = vmatmul.mubr.bf16.gmra.mrb[12].mxu1 %v3346_v32 }
 0x1da   : > { %1020 = vmatprep.mubr.bf16.mxu0 %v3347_v33  ;;  %1084 = vmatprep.mubr.bf16.mxu1 %v3349_v34 }
 0x1e1   : > { %1021 = vmatmul.mubr.bf16.gmra.mrb[16].mxu0 %v3351_v35  ;;  %1085 = vmatmul.mubr.bf16.gmra.mrb[16].mxu1 %v3352_v36  ;;  %v609_v35 = vld [vmem:[#allocation2 + $0x28] sm:$0xff] }
 0x1e2   : > { %1028 = vmatprep.mubr.bf16.mxu0 %v3353_v37  ;;  %1092 = vmatprep.mubr.bf16.mxu1 %v3355_v38  ;;  %v625_v37 = vld [vmem:[#allocation2 + $0xa8] sm:$0xff] }
 0x1e9   : > { %1029 = vmatmul.mubr.bf16.gmra.mrb[20].mxu0 %v3357_v39  ;;  %1093 = vmatmul.mubr.bf16.gmra.mrb[20].mxu1 %v3358_v40 }
 0x1ea   : > { %1036 = vmatprep.mubr.bf16.mxu0 %v3359_v41  ;;  %1100 = vmatprep.mubr.bf16.mxu1 %v3361_v42 }
 0x1f1   : > { %1037 = vmatmul.mubr.bf16.gmra.mrb[24].mxu0 %v3363_v43  ;;  %1101 = vmatmul.mubr.bf16.gmra.mrb[24].mxu1 %v3364_v44 }
 0x1f2   : > { %1044 = vmatprep.mubr.bf16.mxu0 %v3365_v45  ;;  %1108 = vmatprep.mubr.bf16.mxu1 %v3367_v46 }
 0x1f9   : > { %1045 = vmatmul.mubr.bf16.gmra.mrb[28].mxu0 %v3369_v47  ;;  %1109 = vmatmul.mubr.bf16.gmra.mrb[28].mxu1 %v3370_v48  ;;  %v610_v47 = vld [vmem:[#allocation2 + $0x30] sm:$0xff] }
 0x294   : > { %v2637_v49 = vpop.f32.mrb[0].mxu0  ;;  %v2685_v50 = vpop.f32.mrb[0].mxu1 }
 0x295   : > { %v2638_v52 = vpop.f32.mrb[1].mxu0  ;;  %v2686_v54 = vpop.f32.mrb[1].mxu1 }
 0x296   : > { %v2639_v55 = vadd.f32 %v2638_v52, %v2637_v49  ;;  %v2687_v56 = vadd.f32 %v2686_v54, %v2685_v50  ;;  %v2640_v57 = vpop.f32.mrb[2].mxu0  ;;  %v2688_v58 = vpop.f32.mrb[2].mxu1  ;;  %v626_v49 = vld [vmem:[#allocation2 + $0xb0] sm:$0xff] }
 0x297   : > { %v2641_v60 = vpop.f32.mrb[3].mxu0  ;;  %v2689_v62 = vpop.f32.mrb[3].mxu1 }
 0x298   : > { %v1117_v63 = vadd.f32 %v2639_v55, %v604_v51  ;;  %v1133_v0 = vadd.f32 %v2687_v56, %v620_v53  ;;  %v2642_v1 = vadd.f32 %v2641_v60, %v2640_v57  ;;  %v2690_v2 = vadd.f32 %v2689_v62, %v2688_v58  ;;  %v611_v55 = vld [vmem:[#allocation2 + $0x38] sm:$0xff] }
 0x299   : > { %v627_v57 = vld [vmem:[#allocation2 + $0xb8] sm:$0xff] }
 0x29a   : > { %1149 = vst [vmem:[#allocation2] sm:$0xff] %v1117_v63  ;;  %1165 = vst [vmem:[#allocation2 + $0x80] sm:$0xff] %v1133_v0  ;;  %v1118_v3 = vadd.f32 %v2642_v1, %v605_v59  ;;  %v1134_v4 = vadd.f32 %v2690_v2, %v621_v61 }
 0x29c   : > { %1150 = vst [vmem:[#allocation2 + $0x8] sm:$0xff] %v1118_v3  ;;  %1166 = vst [vmem:[#allocation2 + $0x88] sm:$0xff] %v1134_v4  ;;  %v2643_v5 = vpop.f32.mrb[4].mxu0  ;;  %v2691_v6 = vpop.f32.mrb[4].mxu1  ;;  %v612_v3 = vld [vmem:[#allocation2 + $0x40] sm:$0xff] }
 0x29d   : > { %v2644_v8 = vpop.f32.mrb[5].mxu0  ;;  %v2692_v10 = vpop.f32.mrb[5].mxu1 }
 0x29e   : > { %v2645_v11 = vadd.f32 %v2644_v8, %v2643_v5  ;;  %v2693_v12 = vadd.f32 %v2692_v10, %v2691_v6  ;;  %v2646_v13 = vpop.f32.mrb[6].mxu0  ;;  %v2694_v14 = vpop.f32.mrb[6].mxu1  ;;  %v628_v5 = vld [vmem:[#allocation2 + $0xc0] sm:$0xff] }
 0x29f   : > { %v2647_v16 = vpop.f32.mrb[7].mxu0  ;;  %v2695_v18 = vpop.f32.mrb[7].mxu1 }
 0x2a0   : > { %v1119_v19 = vadd.f32 %v2645_v11, %v606_v7  ;;  %v1135_v20 = vadd.f32 %v2693_v12, %v622_v9  ;;  %v2648_v21 = vadd.f32 %v2647_v16, %v2646_v13  ;;  %v2696_v22 = vadd.f32 %v2695_v18, %v2694_v14  ;;  %v613_v11 = vld [vmem:[#allocation2 + $0x48] sm:$0xff] }
 0x2a1   : > { %v629_v13 = vld [vmem:[#allocation2 + $0xc8] sm:$0xff] }
 0x2a2   : > { %1151 = vst [vmem:[#allocation2 + $0x10] sm:$0xff] %v1119_v19  ;;  %1167 = vst [vmem:[#allocation2 + $0x90] sm:$0xff] %v1135_v20  ;;  %v1120_v23 = vadd.f32 %v2648_v21, %v607_v15  ;;  %v1136_v24 = vadd.f32 %v2696_v22, %v623_v17 }
 0x2a4   : > { %1152 = vst [vmem:[#allocation2 + $0x18] sm:$0xff] %v1120_v23  ;;  %1168 = vst [vmem:[#allocation2 + $0x98] sm:$0xff] %v1136_v24  ;;  %v2649_v25 = vpop.f32.mrb[8].mxu0  ;;  %v2697_v26 = vpop.f32.mrb[8].mxu1  ;;  %v614_v23 = vld [vmem:[#allocation2 + $0x50] sm:$0xff] }
 0x2a5   : > { %v2650_v28 = vpop.f32.mrb[9].mxu0  ;;  %v2698_v30 = vpop.f32.mrb[9].mxu1 }
 0x2a6   : > { %v2651_v31 = vadd.f32 %v2650_v28, %v2649_v25  ;;  %v2699_v32 = vadd.f32 %v2698_v30, %v2697_v26  ;;  %v2652_v33 = vpop.f32.mrb[10].mxu0  ;;  %v2700_v34 = vpop.f32.mrb[10].mxu1  ;;  %v630_v25 = vld [vmem:[#allocation2 + $0xd0] sm:$0xff] }
 0x2a7   : > { %v2653_v36 = vpop.f32.mrb[11].mxu0  ;;  %v2701_v38 = vpop.f32.mrb[11].mxu1 }
 0x2a8   : > { %v1121_v39 = vadd.f32 %v2651_v31, %v608_v27  ;;  %v1137_v40 = vadd.f32 %v2699_v32, %v624_v29  ;;  %v2654_v41 = vadd.f32 %v2653_v36, %v2652_v33  ;;  %v2702_v42 = vadd.f32 %v2701_v38, %v2700_v34  ;;  %v615_v31 = vld [vmem:[#allocation2 + $0x58] sm:$0xff] }
 0x2a9   : > { %v631_v33 = vld [vmem:[#allocation2 + $0xd8] sm:$0xff] }
 0x2aa   : > { %1153 = vst [vmem:[#allocation2 + $0x20] sm:$0xff] %v1121_v39  ;;  %1169 = vst [vmem:[#allocation2 + $0xa0] sm:$0xff] %v1137_v40  ;;  %v1122_v43 = vadd.f32 %v2654_v41, %v609_v35  ;;  %v1138_v44 = vadd.f32 %v2702_v42, %v625_v37 }
 0x2ac   : > { %1154 = vst [vmem:[#allocation2 + $0x28] sm:$0xff] %v1122_v43  ;;  %1170 = vst [vmem:[#allocation2 + $0xa8] sm:$0xff] %v1138_v44  ;;  %v2655_v45 = vpop.f32.mrb[12].mxu0  ;;  %v2703_v46 = vpop.f32.mrb[12].mxu1  ;;  %v616_v43 = vld [vmem:[#allocation2 + $0x60] sm:$0xff] }
 0x2ad   : > { %v2656_v48 = vpop.f32.mrb[13].mxu0  ;;  %v2704_v50 = vpop.f32.mrb[13].mxu1 }
 0x2ae   : > { %v2657_v51 = vadd.f32 %v2656_v48, %v2655_v45  ;;  %v2705_v52 = vadd.f32 %v2704_v50, %v2703_v46  ;;  %v2658_v53 = vpop.f32.mrb[14].mxu0  ;;  %v2706_v54 = vpop.f32.mrb[14].mxu1  ;;  %v632_v45 = vld [vmem:[#allocation2 + $0xe0] sm:$0xff] }
 0x2af   : > { %v2659_v56 = vpop.f32.mrb[15].mxu0  ;;  %v2707_v58 = vpop.f32.mrb[15].mxu1 }
 0x2b0   : > { %v1123_v59 = vadd.f32 %v2657_v51, %v610_v47  ;;  %v1139_v60 = vadd.f32 %v2705_v52, %v626_v49  ;;  %v2660_v61 = vadd.f32 %v2659_v56, %v2658_v53  ;;  %v2708_v62 = vadd.f32 %v2707_v58, %v2706_v54  ;;  %v617_v51 = vld [vmem:[#allocation2 + $0x68] sm:$0xff] }
 0x2b1   : > { %v633_v53 = vld [vmem:[#allocation2 + $0xe8] sm:$0xff] }
 0x2b2   : > { %1155 = vst [vmem:[#allocation2 + $0x30] sm:$0xff] %v1123_v59  ;;  %1171 = vst [vmem:[#allocation2 + $0xb0] sm:$0xff] %v1139_v60  ;;  %v1124_v63 = vadd.f32 %v2660_v61, %v611_v55  ;;  %v1140_v0 = vadd.f32 %v2708_v62, %v627_v57 }
 0x2b4   : > { %1156 = vst [vmem:[#allocation2 + $0x38] sm:$0xff] %v1124_v63  ;;  %1172 = vst [vmem:[#allocation2 + $0xb8] sm:$0xff] %v1140_v0  ;;  %v2661_v1 = vpop.f32.mrb[16].mxu0  ;;  %v2709_v2 = vpop.f32.mrb[16].mxu1  ;;  %v618_v63 = vld [vmem:[#allocation2 + $0x70] sm:$0xff] }
 0x2b5   : > { %v2662_v4 = vpop.f32.mrb[17].mxu0  ;;  %v2710_v6 = vpop.f32.mrb[17].mxu1 }
 0x2b6   : > { %v2663_v7 = vadd.f32 %v2662_v4, %v2661_v1  ;;  %v2711_v8 = vadd.f32 %v2710_v6, %v2709_v2  ;;  %v2664_v9 = vpop.f32.mrb[18].mxu0  ;;  %v2712_v10 = vpop.f32.mrb[18].mxu1  ;;  %v634_v1 = vld [vmem:[#allocation2 + $0xf0] sm:$0xff] }
 0x2b7   : > { %v2665_v12 = vpop.f32.mrb[19].mxu0  ;;  %v2713_v14 = vpop.f32.mrb[19].mxu1 }
 0x2b8   : > { %v1125_v15 = vadd.f32 %v2663_v7, %v612_v3  ;;  %v1141_v16 = vadd.f32 %v2711_v8, %v628_v5  ;;  %v2666_v17 = vadd.f32 %v2665_v12, %v2664_v9  ;;  %v2714_v18 = vadd.f32 %v2713_v14, %v2712_v10  ;;  %v619_v7 = vld [vmem:[#allocation2 + $0x78] sm:$0xff] }
 0x2b9   : > { %v635_v9 = vld [vmem:[#allocation2 + $0xf8] sm:$0xff] }
 0x2ba   : > { %1157 = vst [vmem:[#allocation2 + $0x40] sm:$0xff] %v1125_v15  ;;  %1173 = vst [vmem:[#allocation2 + $0xc0] sm:$0xff] %v1141_v16  ;;  %v1126_v19 = vadd.f32 %v2666_v17, %v613_v11  ;;  %v1142_v20 = vadd.f32 %v2714_v18, %v629_v13 }
 0x2bc   : > { %1158 = vst [vmem:[#allocation2 + $0x48] sm:$0xff] %v1126_v19  ;;  %1174 = vst [vmem:[#allocation2 + $0xc8] sm:$0xff] %v1142_v20  ;;  %v2667_v21 = vpop.f32.mrb[20].mxu0  ;;  %v2715_v22 = vpop.f32.mrb[20].mxu1 }
 0x2bd   : > { %v2668_v24 = vpop.f32.mrb[21].mxu0  ;;  %v2716_v26 = vpop.f32.mrb[21].mxu1 }
 0x2be   : > { %v2669_v27 = vadd.f32 %v2668_v24, %v2667_v21  ;;  %v2717_v28 = vadd.f32 %v2716_v26, %v2715_v22  ;;  %v2670_v29 = vpop.f32.mrb[22].mxu0  ;;  %v2718_v30 = vpop.f32.mrb[22].mxu1 }
 0x2bf   : > { %v2671_v32 = vpop.f32.mrb[23].mxu0  ;;  %v2719_v34 = vpop.f32.mrb[23].mxu1 }
 0x2c0   : > { %v1127_v35 = vadd.f32 %v2669_v27, %v614_v23  ;;  %v1143_v36 = vadd.f32 %v2717_v28, %v630_v25  ;;  %v2672_v37 = vadd.f32 %v2671_v32, %v2670_v29  ;;  %v2720_v38 = vadd.f32 %v2719_v34, %v2718_v30 }
 0x2c2   : > { %1159 = vst [vmem:[#allocation2 + $0x50] sm:$0xff] %v1127_v35  ;;  %1175 = vst [vmem:[#allocation2 + $0xd0] sm:$0xff] %v1143_v36  ;;  %v1128_v39 = vadd.f32 %v2672_v37, %v615_v31  ;;  %v1144_v40 = vadd.f32 %v2720_v38, %v631_v33 }
 0x2c4   : > { %1160 = vst [vmem:[#allocation2 + $0x58] sm:$0xff] %v1128_v39  ;;  %1176 = vst [vmem:[#allocation2 + $0xd8] sm:$0xff] %v1144_v40  ;;  %v2673_v41 = vpop.f32.mrb[24].mxu0  ;;  %v2721_v42 = vpop.f32.mrb[24].mxu1 }
 0x2c5   : > { %v2674_v44 = vpop.f32.mrb[25].mxu0  ;;  %v2722_v46 = vpop.f32.mrb[25].mxu1 }
 0x2c6   : > { %v2675_v47 = vadd.f32 %v2674_v44, %v2673_v41  ;;  %v2723_v48 = vadd.f32 %v2722_v46, %v2721_v42  ;;  %v2676_v49 = vpop.f32.mrb[26].mxu0  ;;  %v2724_v50 = vpop.f32.mrb[26].mxu1 }
 0x2c7   : > { %v2677_v52 = vpop.f32.mrb[27].mxu0  ;;  %v2725_v54 = vpop.f32.mrb[27].mxu1 }
 0x2c8   : > { %v1129_v55 = vadd.f32 %v2675_v47, %v616_v43  ;;  %v1145_v56 = vadd.f32 %v2723_v48, %v632_v45  ;;  %v2678_v57 = vadd.f32 %v2677_v52, %v2676_v49  ;;  %v2726_v58 = vadd.f32 %v2725_v54, %v2724_v50 }
 0x2ca   : > { %1161 = vst [vmem:[#allocation2 + $0x60] sm:$0xff] %v1129_v55  ;;  %1177 = vst [vmem:[#allocation2 + $0xe0] sm:$0xff] %v1145_v56  ;;  %v1130_v59 = vadd.f32 %v2678_v57, %v617_v51  ;;  %v1146_v60 = vadd.f32 %v2726_v58, %v633_v53 }
 0x2cc   : > { %1162 = vst [vmem:[#allocation2 + $0x68] sm:$0xff] %v1130_v59  ;;  %1178 = vst [vmem:[#allocation2 + $0xe8] sm:$0xff] %v1146_v60  ;;  %v2679_v61 = vpop.f32.mrb[28].mxu0  ;;  %v2727_v62 = vpop.f32.mrb[28].mxu1 }
 0x2cd   : > { %v2680_v0 = vpop.f32.mrb[29].mxu0  ;;  %v2728_v2 = vpop.f32.mrb[29].mxu1 }
 0x2ce   : > { %v2681_v3 = vadd.f32 %v2680_v0, %v2679_v61  ;;  %v2729_v4 = vadd.f32 %v2728_v2, %v2727_v62  ;;  %v2682_v5 = vpop.f32.mrb[30].mxu0  ;;  %v2730_v6 = vpop.f32.mrb[30].mxu1 }
 0x2cf   : > { %v2683_v8 = vpop.f32.mrb[31].mxu0  ;;  %v2731_v10 = vpop.f32.mrb[31].mxu1 }
 0x2d0   : > { %v1131_v11 = vadd.f32 %v2681_v3, %v618_v63  ;;  %v1147_v12 = vadd.f32 %v2729_v4, %v634_v1  ;;  %v2684_v13 = vadd.f32 %v2683_v8, %v2682_v5  ;;  %v2732_v14 = vadd.f32 %v2731_v10, %v2730_v6 }
 0x2d2   : > { %1163 = vst [vmem:[#allocation2 + $0x70] sm:$0xff] %v1131_v11  ;;  %1179 = vst [vmem:[#allocation2 + $0xf0] sm:$0xff] %v1147_v12  ;;  %v1132_v15 = vadd.f32 %v2684_v13, %v619_v7  ;;  %v1148_v16 = vadd.f32 %v2732_v14, %v635_v9 }
 0x2d4   : > { %1164 = vst [vmem:[#allocation2 + $0x78] sm:$0xff] %v1132_v15  ;;  %1180 = vst [vmem:[#allocation2 + $0xf8] sm:$0xff] %v1148_v16 }
 0x2d5 PF: > { %s5319_s10 = sld [smem:[#allocation38_spill]] }
 0x2db   : > { %p2609_p5 = scmp.ne.s32.totalorder %s5319_s10, 2 }
 0x2dc   : > { %v1265_v17 = vld [vmem:[#allocation14] sm:$0xff] (!%p2609_p5)  ;;  %v1266_v18 = vld [vmem:[#allocation14 + $0x8] sm:$0xff] (!%p2609_p5)  ;;  %v1267_v22 = vld [vmem:[#allocation14 + $0x10] sm:$0xff] (!%p2609_p5) }
 0x2dd   : > { %1184 = sbr.rel (%p2609_p5) target bundleno = 1365 (0x555), region = 96  ;;  %v1249_v19 = vld [vmem:[#allocation12] sm:$0xff] (!%p2609_p5)  ;;  %v2989_v20 = vpack.c.bf16 (!%p2609_p5), %v1266_v18, %v1265_v17  ;;  %v1250_v21 = vld [vmem:[#allocation12 + $0x8] sm:$0xff] (!%p2609_p5)  ;;  %v1268_v23 = vld [vmem:[#allocation14 + $0x18] sm:$0xff] (!%p2609_p5) }
 0x2de   : > { %v3021_v24 = vpack.c.bf16 (!%p2609_p5), %v1250_v21, %v1249_v19  ;;  %v2993_v25 = vpack.c.bf16 (!%p2609_p5), %v1268_v23, %v1267_v22  ;;  %v1251_v26 = vld [vmem:[#allocation12 + $0x10] sm:$0xff] (!%p2609_p5)  ;;  %v1252_v27 = vld [vmem:[#allocation12 + $0x18] sm:$0xff] (!%p2609_p5)  ;;  %v1269_v28 = vld [vmem:[#allocation14 + $0x20] sm:$0xff] (!%p2609_p5) }
 0x2df   : > { %2990 = vmatprep.subr.bf16.mxu1 (!%p2609_p5), %v2989_v20  ;;  %v3025_v29 = vpack.c.bf16 (!%p2609_p5), %v1252_v27, %v1251_v26  ;;  %v1270_v30 = vld [vmem:[#allocation14 + $0x28] sm:$0xff] (!%p2609_p5)  ;;  %v1253_v31 = vld [vmem:[#allocation12 + $0x20] sm:$0xff] (!%p2609_p5)  ;;  %v1271_v35 = vld [vmem:[#allocation14 + $0x30] sm:$0xff] (!%p2609_p5) }
 0x2e0   : > { %v1254_v32 = vld [vmem:[#allocation12 + $0x28] sm:$0xff] (!%p2609_p5)  ;;  %3022 = vmatprep.subr.bf16.mxu0 (!%p2609_p5), %v3021_v24  ;;  %2992 = vmatpush3.bf16.msra.mxu1 (!%p2609_p5), %v2989_v20  ;;  %v2997_v33 = vpack.c.bf16 (!%p2609_p5), %v1270_v30, %v1269_v28  ;;  %v1272_v36 = vld [vmem:[#allocation14 + $0x38] sm:$0xff] (!%p2609_p5)  ;;  %v1255_v37 = vld [vmem:[#allocation12 + $0x30] sm:$0xff] (!%p2609_p5) }
 0x2e1   : > { %3024 = vmatpush3.bf16.msra.mxu0 (!%p2609_p5), %v3021_v24  ;;  %2994 = vmatprep.subr.bf16.mxu1 (!%p2609_p5), %v2993_v25  ;;  %v3029_v34 = vpack.c.bf16 (!%p2609_p5), %v1254_v32, %v1253_v31  ;;  %v1256_v38 = vld [vmem:[#allocation12 + $0x38] sm:$0xff] (!%p2609_p5)  ;;  %v3001_v39 = vpack.c.bf16 (!%p2609_p5), %v1272_v36, %v1271_v35  ;;  %v1273_v41 = vld [vmem:[#allocation14 + $0x40] sm:$0xff] (!%p2609_p5)  ;;  %v1274_v42 = vld [vmem:[#allocation14 + $0x48] sm:$0xff] (!%p2609_p5) }
 0x2e2   : > { %3026 = vmatprep.subr.bf16.mxu0 (!%p2609_p5), %v3025_v29  ;;  %v3033_v40 = vpack.c.bf16 (!%p2609_p5), %v1256_v38, %v1255_v37  ;;  %v1217_v43 = vld [vmem:[%s4449_s21] sm:$0xff] (!%p2609_p5)  ;;  %v1258_v45 = vld [vmem:[#allocation12 + $0x48] sm:$0xff] (!%p2609_p5)  ;;  %v3005_v47 = vpack.c.bf16 (!%p2609_p5), %v1274_v42, %v1273_v41  ;;  %v1275_v49 = vld [vmem:[#allocation14 + $0x50] sm:$0xff] (!%p2609_p5) }
 0x2e3   : > { %v1257_v44 = vld [vmem:[#allocation12 + $0x40] sm:$0xff] (!%p2609_p5)  ;;  %2861 = vmatprep.mubr.f32.mxu1 (!%p2609_p5), %v1217_v43  ;;  %v1276_v50 = vld [vmem:[#allocation14 + $0x58] sm:$0xff] (!%p2609_p5)  ;;  %v1259_v51 = vld [vmem:[#allocation12 + $0x50] sm:$0xff] (!%p2609_p5) }
 0x2e4   : > { %2996 = vmatpush3.bf16.msra.mxu1 %v2993_v25  ;;  %v1185_v46 = vld [vmem:[#allocation2] sm:$0xff]  ;;  %v3037_v48 = vpack.c.bf16 %v1258_v45, %v1257_v44  ;;  %v1260_v52 = vld [vmem:[#allocation12 + $0x58] sm:$0xff]  ;;  %v3009_v53 = vpack.c.bf16 %v1276_v50, %v1275_v49  ;;  %v1278_v56 = vld [vmem:[#allocation14 + $0x68] sm:$0xff] }
 0x2e5   : > { %3028 = vmatpush3.bf16.msra.mxu0 %v3025_v29  ;;  %2998 = vmatprep.subr.bf16.mxu1 %v2997_v33  ;;  %v3041_v54 = vpack.c.bf16 %v1260_v52, %v1259_v51  ;;  %v1277_v55 = vld [vmem:[#allocation14 + $0x60] sm:$0xff]  ;;  %v1262_v58 = vld [vmem:[#allocation12 + $0x68] sm:$0xff]  ;;  %v1279_v61 = vld [vmem:[#allocation14 + $0x70] sm:$0xff] }
 0x2e6   : > { %3030 = vmatprep.subr.bf16.mxu0 %v3029_v34  ;;  %2941 = vmatprep.mubr.f32.mxu0 %v1185_v46  ;;  %v1261_v57 = vld [vmem:[#allocation12 + $0x60] sm:$0xff]  ;;  %v3013_v59 = vpack.c.bf16 %v1278_v56, %v1277_v55  ;;  %v1280_v62 = vld [vmem:[#allocation14 + $0x78] sm:$0xff]  ;;  %v1263_v63 = vld [vmem:[#allocation12 + $0x70] sm:$0xff] }
 0x2e7   : > { %v3045_v60 = vpack.c.bf16 %v1262_v58, %v1261_v57  ;;  %v1264_v0 = vld [vmem:[#allocation12 + $0x78] sm:$0xff]  ;;  %v3017_v1 = vpack.c.bf16 %v1280_v62, %v1279_v61  ;;  %v1218_v3 = vld [vmem:[%s4449_s21 + $0x8] sm:$0xff]  ;;  %v1219_v5 = vld [vmem:[%s4449_s21 + $0x10] sm:$0xff] }
 0x2e8   : > { %3000 = vmatpush3.bf16.msra.mxu1 %v2997_v33  ;;  %v3049_v2 = vpack.c.bf16 %v1264_v0, %v1263_v63  ;;  %v1186_v4 = vld [vmem:[#allocation2 + $0x8] sm:$0xff]  ;;  %v1187_v6 = vld [vmem:[#allocation2 + $0x10] sm:$0xff]  ;;  %v1220_v7 = vld [vmem:[%s4449_s21 + $0x18] sm:$0xff] }
 0x2e9   : > { %3032 = vmatpush3.bf16.msra.mxu0 %v3029_v34  ;;  %3002 = vmatprep.subr.bf16.mxu1 %v3001_v39  ;;  %v1188_v8 = vld [vmem:[#allocation2 + $0x18] sm:$0xff]  ;;  %v1221_v9 = vld [vmem:[%s4449_s21 + $0x20] sm:$0xff]  ;;  %v1222_v11 = vld [vmem:[%s4449_s21 + $0x28] sm:$0xff] }
 0x2ea   : > { %3034 = vmatprep.subr.bf16.mxu0 %v3033_v40  ;;  %v1189_v10 = vld [vmem:[#allocation2 + $0x20] sm:$0xff]  ;;  %v1190_v12 = vld [vmem:[#allocation2 + $0x28] sm:$0xff]  ;;  %v1223_v13 = vld [vmem:[%s4449_s21 + $0x30] sm:$0xff] }
 0x2eb   : > { %v1191_v14 = vld [vmem:[#allocation2 + $0x30] sm:$0xff]  ;;  %v1224_v15 = vld [vmem:[%s4449_s21 + $0x38] sm:$0xff]  ;;  %v1225_v17 = vld [vmem:[%s4449_s21 + $0x40] sm:$0xff] }
 0x2ec   : > { %3004 = vmatpush3.bf16.msra.mxu1 %v3001_v39  ;;  %v1192_v16 = vld [vmem:[#allocation2 + $0x38] sm:$0xff]  ;;  %v1193_v18 = vld [vmem:[#allocation2 + $0x40] sm:$0xff]  ;;  %v1226_v19 = vld [vmem:[%s4449_s21 + $0x48] sm:$0xff] }
 0x2ed   : > { %3036 = vmatpush3.bf16.msra.mxu0 %v3033_v40  ;;  %3006 = vmatprep.subr.bf16.mxu1 %v3005_v47  ;;  %v1194_v20 = vld [vmem:[#allocation2 + $0x48] sm:$0xff]  ;;  %v1227_v21 = vld [vmem:[%s4449_s21 + $0x50] sm:$0xff]  ;;  %v1228_v23 = vld [vmem:[%s4449_s21 + $0x58] sm:$0xff] }
 0x2ee   : > { %3038 = vmatprep.subr.bf16.mxu0 %v3037_v48  ;;  %v1195_v22 = vld [vmem:[#allocation2 + $0x50] sm:$0xff]  ;;  %v1196_v24 = vld [vmem:[#allocation2 + $0x58] sm:$0xff]  ;;  %v1229_v25 = vld [vmem:[%s4449_s21 + $0x60] sm:$0xff] }
 0x2ef   : > { %v1197_v26 = vld [vmem:[#allocation2 + $0x60] sm:$0xff]  ;;  %v1230_v27 = vld [vmem:[%s4449_s21 + $0x68] sm:$0xff]  ;;  %v1231_v29 = vld [vmem:[%s4449_s21 + $0x70] sm:$0xff] }
 0x2f0   : > { %3008 = vmatpush3.bf16.msra.mxu1 %v3005_v47  ;;  %v1198_v28 = vld [vmem:[#allocation2 + $0x68] sm:$0xff]  ;;  %v1199_v30 = vld [vmem:[#allocation2 + $0x70] sm:$0xff]  ;;  %v1232_v31 = vld [vmem:[%s4449_s21 + $0x78] sm:$0xff] }
 0x2f1   : > { %3040 = vmatpush3.bf16.msra.mxu0 %v3037_v48  ;;  %3010 = vmatprep.subr.bf16.mxu1 %v3009_v53  ;;  %v1200_v32 = vld [vmem:[#allocation2 + $0x78] sm:$0xff]  ;;  %v1233_v33 = vld [vmem:[%s4449_s21 + $0x80] sm:$0xff]  ;;  %v1234_v35 = vld [vmem:[%s4449_s21 + $0x88] sm:$0xff] }
 0x2f2   : > { %3042 = vmatprep.subr.bf16.mxu0 %v3041_v54  ;;  %v1201_v34 = vld [vmem:[#allocation2 + $0x80] sm:$0xff]  ;;  %v1202_v36 = vld [vmem:[#allocation2 + $0x88] sm:$0xff]  ;;  %v1235_v37 = vld [vmem:[%s4449_s21 + $0x90] sm:$0xff] }
 0x2f3   : > { %v1203_v38 = vld [vmem:[#allocation2 + $0x90] sm:$0xff]  ;;  %v1236_v39 = vld [vmem:[%s4449_s21 + $0x98] sm:$0xff]  ;;  %v1237_v41 = vld [vmem:[%s4449_s21 + $0xa0] sm:$0xff] }
 0x2f4   : > { %3012 = vmatpush3.bf16.msra.mxu1 %v3009_v53  ;;  %v1204_v40 = vld [vmem:[#allocation2 + $0x98] sm:$0xff]  ;;  %v1205_v42 = vld [vmem:[#allocation2 + $0xa0] sm:$0xff]  ;;  %v1238_v43 = vld [vmem:[%s4449_s21 + $0xa8] sm:$0xff] }
 0x2f5   : > { %3044 = vmatpush3.bf16.msra.mxu0 %v3041_v54  ;;  %3014 = vmatprep.subr.bf16.mxu1 %v3013_v59  ;;  %v1206_v44 = vld [vmem:[#allocation2 + $0xa8] sm:$0xff]  ;;  %v1239_v45 = vld [vmem:[%s4449_s21 + $0xb0] sm:$0xff]  ;;  %v1240_v47 = vld [vmem:[%s4449_s21 + $0xb8] sm:$0xff] }
 0x2f6   : > { %3046 = vmatprep.subr.bf16.mxu0 %v3045_v60  ;;  %v1207_v46 = vld [vmem:[#allocation2 + $0xb0] sm:$0xff]  ;;  %v1208_v48 = vld [vmem:[#allocation2 + $0xb8] sm:$0xff]  ;;  %v1241_v49 = vld [vmem:[%s4449_s21 + $0xc0] sm:$0xff] }
 0x2f7   : > { %v1209_v50 = vld [vmem:[#allocation2 + $0xc0] sm:$0xff]  ;;  %v1242_v51 = vld [vmem:[%s4449_s21 + $0xc8] sm:$0xff]  ;;  %v1243_v53 = vld [vmem:[%s4449_s21 + $0xd0] sm:$0xff] }
 0x2f8   : > { %3016 = vmatpush3.bf16.msra.mxu1 %v3013_v59  ;;  %v1210_v52 = vld [vmem:[#allocation2 + $0xc8] sm:$0xff]  ;;  %v1211_v54 = vld [vmem:[#allocation2 + $0xd0] sm:$0xff]  ;;  %v1244_v55 = vld [vmem:[%s4449_s21 + $0xd8] sm:$0xff] }
 0x2f9   : > { %3048 = vmatpush3.bf16.msra.mxu0 %v3045_v60  ;;  %3018 = vmatprep.subr.bf16.mxu1 %v3017_v1  ;;  %v1212_v56 = vld [vmem:[#allocation2 + $0xd8] sm:$0xff]  ;;  %v1245_v57 = vld [vmem:[%s4449_s21 + $0xe0] sm:$0xff]  ;;  %v1246_v59 = vld [vmem:[%s4449_s21 + $0xe8] sm:$0xff] }
 0x2fa   : > { %3050 = vmatprep.subr.bf16.mxu0 %v3049_v2  ;;  %v1213_v58 = vld [vmem:[#allocation2 + $0xe0] sm:$0xff]  ;;  %v1214_v60 = vld [vmem:[#allocation2 + $0xe8] sm:$0xff]  ;;  %v1247_v61 = vld [vmem:[%s4449_s21 + $0xf0] sm:$0xff] }
 0x2fb   : > { %v1215_v62 = vld [vmem:[#allocation2 + $0xf0] sm:$0xff]  ;;  %v1248_v63 = vld [vmem:[%s4449_s21 + $0xf8] sm:$0xff] }
 0x2fc   : > { %3020 = vmatpush3.bf16.msra.mxu1 %v3017_v1  ;;  %v1216_v0 = vld [vmem:[#allocation2 + $0xf8] sm:$0xff]  ;;  %v1770_v1 = vlaneseq }
 0x2fd   : > { %3052 = vmatpush3.bf16.msra.mxu0 %v3049_v2 }
 0x2fe   : > { %v4553_v2 = vand.u32 127, %v1770_v1 }
 0x2ff   : > { %2862 = vmatmul.mubr.f32.vlgmr.msra.gmra.mrb[0].mxu1 %v1218_v3 }
 0x300   : > { %2942 = vmatmul.mubr.f32.vlgmr.msra.gmra.mrb[0].mxu0 %v1186_v4  ;;  %2864 = vmatprep.mubr.f32.mxu1 %v1219_v5  ;;  %vm1772_vm0 = vcmp.lt.s32.totalorder %v4553_v2, 32 }
 0x301   : > { %2944 = vmatprep.mubr.f32.mxu0 %v1187_v6  ;;  %v4555_v6 = vld [vmem:[#allocation15] ss:$0 sm:$0xff] }
 0x303   : > { %2865 = vmatmul.mubr.f32.gmra.mrb[2].mxu1 %v1220_v7 }
 0x304   : > { %2945 = vmatmul.mubr.f32.gmra.mrb[2].mxu0 %v1188_v8  ;;  %2867 = vmatprep.mubr.f32.mxu1 %v1221_v9 }
 0x305   : > { %2947 = vmatprep.mubr.f32.mxu0 %v1189_v10 }
 0x307   : > { %2868 = vmatmul.mubr.f32.gmra.mrb[4].mxu1 %v1222_v11 }
 0x308   : > { %2948 = vmatmul.mubr.f32.gmra.mrb[4].mxu0 %v1190_v12  ;;  %2870 = vmatprep.mubr.f32.mxu1 %v1223_v13 }
 0x309   : > { %2950 = vmatprep.mubr.f32.mxu0 %v1191_v14 }
 0x30b   : > { %2871 = vmatmul.mubr.f32.gmra.mrb[6].mxu1 %v1224_v15 }
 0x30c   : > { %2951 = vmatmul.mubr.f32.gmra.mrb[6].mxu0 %v1192_v16  ;;  %2873 = vmatprep.mubr.f32.mxu1 %v1225_v17 }
 0x30d   : > { %2953 = vmatprep.mubr.f32.mxu0 %v1193_v18 }
 0x30f   : > { %2874 = vmatmul.mubr.f32.gmra.mrb[8].mxu1 %v1226_v19 }
 0x310   : > { %2954 = vmatmul.mubr.f32.gmra.mrb[8].mxu0 %v1194_v20  ;;  %2876 = vmatprep.mubr.f32.mxu1 %v1227_v21 }
 0x311   : > { %2956 = vmatprep.mubr.f32.mxu0 %v1195_v22 }
 0x313   : > { %2877 = vmatmul.mubr.f32.gmra.mrb[10].mxu1 %v1228_v23 }
 0x314   : > { %2957 = vmatmul.mubr.f32.gmra.mrb[10].mxu0 %v1196_v24  ;;  %2879 = vmatprep.mubr.f32.mxu1 %v1229_v25 }
 0x315   : > { %2959 = vmatprep.mubr.f32.mxu0 %v1197_v26 }
 0x317   : > { %2880 = vmatmul.mubr.f32.gmra.mrb[12].mxu1 %v1230_v27 }
 0x318   : > { %2960 = vmatmul.mubr.f32.gmra.mrb[12].mxu0 %v1198_v28  ;;  %2882 = vmatprep.mubr.f32.mxu1 %v1231_v29 }
 0x319   : > { %2962 = vmatprep.mubr.f32.mxu0 %v1199_v30 }
 0x31b   : > { %2883 = vmatmul.mubr.f32.gmra.mrb[14].mxu1 %v1232_v31 }
 0x31c   : > { %2963 = vmatmul.mubr.f32.gmra.mrb[14].mxu0 %v1200_v32  ;;  %2885 = vmatprep.mubr.f32.mxu1 %v1233_v33 }
 0x31d   : > { %2965 = vmatprep.mubr.f32.mxu0 %v1201_v34 }
 0x31f   : > { %2886 = vmatmul.mubr.f32.gmra.mrb[16].mxu1 %v1234_v35 }
 0x320   : > { %2966 = vmatmul.mubr.f32.gmra.mrb[16].mxu0 %v1202_v36  ;;  %2888 = vmatprep.mubr.f32.mxu1 %v1235_v37 }
 0x321   : > { %2968 = vmatprep.mubr.f32.mxu0 %v1203_v38 }
 0x323   : > { %2889 = vmatmul.mubr.f32.gmra.mrb[18].mxu1 %v1236_v39 }
 0x324   : > { %2969 = vmatmul.mubr.f32.gmra.mrb[18].mxu0 %v1204_v40  ;;  %2891 = vmatprep.mubr.f32.mxu1 %v1237_v41 }
 0x325   : > { %2971 = vmatprep.mubr.f32.mxu0 %v1205_v42 }
 0x327   : > { %2892 = vmatmul.mubr.f32.gmra.mrb[20].mxu1 %v1238_v43 }
 0x328   : > { %2972 = vmatmul.mubr.f32.gmra.mrb[20].mxu0 %v1206_v44  ;;  %2894 = vmatprep.mubr.f32.mxu1 %v1239_v45 }
 0x329   : > { %2974 = vmatprep.mubr.f32.mxu0 %v1207_v46 }
 0x32b   : > { %2895 = vmatmul.mubr.f32.gmra.mrb[22].mxu1 %v1240_v47 }
 0x32c   : > { %2975 = vmatmul.mubr.f32.gmra.mrb[22].mxu0 %v1208_v48  ;;  %2897 = vmatprep.mubr.f32.mxu1 %v1241_v49 }
 0x32d   : > { %2977 = vmatprep.mubr.f32.mxu0 %v1209_v50 }
 0x32f   : > { %2898 = vmatmul.mubr.f32.gmra.mrb[24].mxu1 %v1242_v51 }
 0x330   : > { %2978 = vmatmul.mubr.f32.gmra.mrb[24].mxu0 %v1210_v52  ;;  %2900 = vmatprep.mubr.f32.mxu1 %v1243_v53 }
 0x331   : > { %2980 = vmatprep.mubr.f32.mxu0 %v1211_v54 }
 0x333   : > { %2901 = vmatmul.mubr.f32.gmra.mrb[26].mxu1 %v1244_v55 }
 0x334   : > { %2981 = vmatmul.mubr.f32.gmra.mrb[26].mxu0 %v1212_v56  ;;  %2903 = vmatprep.mubr.f32.mxu1 %v1245_v57 }
 0x335   : > { %2983 = vmatprep.mubr.f32.mxu0 %v1213_v58 }
 0x337   : > { %2904 = vmatmul.mubr.f32.gmra.mrb[28].mxu1 %v1246_v59 }
 0x338   : > { %2984 = vmatmul.mubr.f32.gmra.mrb[28].mxu0 %v1214_v60  ;;  %2906 = vmatprep.mubr.f32.mxu1 %v1247_v61 }
 0x339   : > { %2986 = vmatprep.mubr.f32.mxu0 %v1215_v62 }
 0x33b   : > { %2907 = vmatmul.mubr.f32.gmra.mrb[30].mxu1 %v1248_v63 }
 0x33c   : > { %2987 = vmatmul.mubr.f32.gmra.mrb[30].mxu0 %v1216_v0 }
 0x3d2   : > { %v2863_v3 = vpop.f32.mrb[0].mxu1 }
 0x3d3   : > { %v2943_v4 = vpop.f32.mrb[0].mxu0  ;;  %v1347_v5 = vpop.f32.mrb[1].mxu1 }
 0x3d4   : > { %v1578_v7 = vadd.f32 %v2943_v4, %v2863_v3  ;;  %v1572_v8 = vpop.f32.mrb[1].mxu0 }
 0x3d5   : > { %v1573_v9 = vadd.f32 %v1572_v8, %v1347_v5 }
 0x3d6   : > { %v2866_v10 = vpop.f32.mrb[2].mxu1  ;;  %v1739_v11 = vadd.f32 %v4555_v6, %v1578_v7 }
 0x3d7   : > { %v2946_v12 = vpop.f32.mrb[2].mxu0  ;;  %v1357_v13 = vpop.f32.mrb[3].mxu1  ;;  %v1738_v17 = vadd.f32 %v4555_v6, %v1573_v9 }
 0x3d8   : > { %v1588_v14 = vadd.f32 %v2946_v12, %v2866_v10  ;;  %v1582_v15 = vpop.f32.mrb[3].mxu0  ;;  %v4561_v16 = vsel %vm1772_vm0, %v1739_v11, 0.0 }
 0x3d9   : > { %v1583_v18 = vadd.f32 %v1582_v15, %v1357_v13  ;;  %1807 = vadd.xlane.f32.xlu0 %v4561_v16  ;;  %v4572_v26 = vsel %vm1772_vm0, %v1738_v17, 0.0 }
 0x3da   : > { %v2869_v19 = vpop.f32.mrb[4].mxu1  ;;  %v1741_v20 = vadd.f32 %v4555_v6, %v1588_v14 }
 0x3db   : > { %v2949_v21 = vpop.f32.mrb[4].mxu0  ;;  %v1367_v22 = vpop.f32.mrb[5].mxu1  ;;  %v1740_v27 = vadd.f32 %v4555_v6, %v1583_v18 }
 0x3dc   : > { %v1598_v23 = vadd.f32 %v2949_v21, %v2869_v19  ;;  %v1592_v24 = vpop.f32.mrb[5].mxu0  ;;  %v4568_v25 = vsel %vm1772_vm0, %v1741_v20, 0.0 }
 0x3dd   : > { %v1593_v28 = vadd.f32 %v1592_v24, %v1367_v22  ;;  %1811 = vadd.xlane.f32.xlu1 %v4568_v25  ;;  %1805 = vadd.xlane.f32.xlu0 %v4572_v26  ;;  %v4581_v36 = vsel %vm1772_vm0, %v1740_v27, 0.0 }
 0x3de   : > { %v2872_v29 = vpop.f32.mrb[6].mxu1  ;;  %v1743_v30 = vadd.f32 %v4555_v6, %v1598_v23 }
 0x3df   : > { %v2952_v31 = vpop.f32.mrb[6].mxu0  ;;  %v1377_v32 = vpop.f32.mrb[7].mxu1  ;;  %v1742_v33 = vadd.f32 %v4555_v6, %v1593_v28 }
 0x3e0   : > { %v1608_v34 = vadd.f32 %v2952_v31, %v2872_v29  ;;  %v1602_v35 = vpop.f32.mrb[7].mxu0  ;;  %v4591_v40 = vsel %vm1772_vm0, %v1743_v30, 0.0 }
 0x3e1   : > { %v1603_v37 = vadd.f32 %v1602_v35, %v1377_v32  ;;  %1809 = vadd.xlane.f32.xlu1 %v4581_v36  ;;  %v4586_v38 = vsel %vm1772_vm0, %v1742_v33, 0.0 }
 0x3e2   : > { %1813 = vadd.xlane.f32.xlu0 %v4586_v38  ;;  %v2875_v39 = vpop.f32.mrb[8].mxu1  ;;  %v1745_v41 = vadd.f32 %v4555_v6, %v1608_v34 }
 0x3e3   : > { %v2955_v42 = vpop.f32.mrb[8].mxu0  ;;  %v1387_v43 = vpop.f32.mrb[9].mxu1  ;;  %v1744_v44 = vadd.f32 %v4555_v6, %v1603_v37 }
 0x3e4   : > { %v1618_v45 = vadd.f32 %v2955_v42, %v2875_v39  ;;  %v1612_v46 = vpop.f32.mrb[9].mxu0  ;;  %v4603_v50 = vsel %vm1772_vm0, %v1745_v41, 0.0 }
 0x3e5   : > { %v1613_v47 = vadd.f32 %v1612_v46, %v1387_v43  ;;  %1815 = vadd.xlane.f32.xlu1 %v4591_v40  ;;  %v4598_v48 = vsel %vm1772_vm0, %v1744_v44, 0.0 }
 0x3e6   : > { %1817 = vadd.xlane.f32.xlu0 %v4598_v48  ;;  %v2878_v49 = vpop.f32.mrb[10].mxu1  ;;  %v1747_v51 = vadd.f32 %v4555_v6, %v1618_v45 }
 0x3e7   : > { %v2958_v52 = vpop.f32.mrb[10].mxu0  ;;  %v1397_v53 = vpop.f32.mrb[11].mxu1  ;;  %v1746_v54 = vadd.f32 %v4555_v6, %v1613_v47 }
 0x3e8   : > { %v1628_v55 = vadd.f32 %v2958_v52, %v2878_v49  ;;  %v1622_v56 = vpop.f32.mrb[11].mxu0  ;;  %v4615_v60 = vsel %vm1772_vm0, %v1747_v51, 0.0 }
 0x3e9   : > { %v1623_v57 = vadd.f32 %v1622_v56, %v1397_v53  ;;  %1819 = vadd.xlane.f32.xlu1 %v4603_v50  ;;  %v4610_v58 = vsel %vm1772_vm0, %v1746_v54, 0.0 }
 0x3ea   : > { %1821 = vadd.xlane.f32.xlu0 %v4610_v58  ;;  %v2881_v59 = vpop.f32.mrb[12].mxu1  ;;  %v1749_v61 = vadd.f32 %v4555_v6, %v1628_v55 }
 0x3eb   : > { %v2961_v62 = vpop.f32.mrb[12].mxu0  ;;  %v1407_v63 = vpop.f32.mrb[13].mxu1  ;;  %v1748_v0 = vadd.f32 %v4555_v6, %v1623_v57 }
 0x3ec   : > { %v1638_v1 = vadd.f32 %v2961_v62, %v2881_v59  ;;  %v1632_v3 = vpop.f32.mrb[13].mxu0  ;;  %v4627_v8 = vsel %vm1772_vm0, %v1749_v61, 0.0 }
 0x3ed   : > { %v1633_v4 = vadd.f32 %v1632_v3, %v1407_v63  ;;  %1823 = vadd.xlane.f32.xlu1 %v4615_v60  ;;  %v4622_v5 = vsel %vm1772_vm0, %v1748_v0, 0.0 }
 0x3ee   : > { %1825 = vadd.xlane.f32.xlu0 %v4622_v5  ;;  %v2884_v7 = vpop.f32.mrb[14].mxu1  ;;  %v1751_v9 = vadd.f32 %v4555_v6, %v1638_v1 }
 0x3ef   : > { %v2964_v10 = vpop.f32.mrb[14].mxu0  ;;  %v1417_v11 = vpop.f32.mrb[15].mxu1  ;;  %v1750_v12 = vadd.f32 %v4555_v6, %v1633_v4 }
 0x3f0   : > { %v1648_v13 = vadd.f32 %v2964_v10, %v2884_v7  ;;  %v1642_v14 = vpop.f32.mrb[15].mxu0  ;;  %v4639_v19 = vsel %vm1772_vm0, %v1751_v9, 0.0 }
 0x3f1   : > { %v1643_v15 = vadd.f32 %v1642_v14, %v1417_v11  ;;  %1827 = vadd.xlane.f32.xlu1 %v4627_v8  ;;  %v4634_v17 = vsel %vm1772_vm0, %v1750_v12, 0.0 }
 0x3f2   : > { %1829 = vadd.xlane.f32.xlu0 %v4634_v17  ;;  %v2887_v18 = vpop.f32.mrb[16].mxu1  ;;  %v1753_v20 = vadd.f32 %v4555_v6, %v1648_v13 }
 0x3f3   : > { %v2967_v21 = vpop.f32.mrb[16].mxu0  ;;  %v1427_v22 = vpop.f32.mrb[17].mxu1  ;;  %v1752_v23 = vadd.f32 %v4555_v6, %v1643_v15 }
 0x3f4   : > { %v1658_v24 = vadd.f32 %v2967_v21, %v2887_v18  ;;  %v1652_v27 = vpop.f32.mrb[17].mxu0  ;;  %v4651_v31 = vsel %vm1772_vm0, %v1753_v20, 0.0 }
 0x3f5   : > { %v1653_v28 = vadd.f32 %v1652_v27, %v1427_v22  ;;  %1831 = vadd.xlane.f32.xlu1 %v4639_v19  ;;  %v4646_v29 = vsel %vm1772_vm0, %v1752_v23, 0.0 }
 0x3f6   : > { %1833 = vadd.xlane.f32.xlu0 %v4646_v29  ;;  %v2890_v30 = vpop.f32.mrb[18].mxu1  ;;  %v1755_v32 = vadd.f32 %v4555_v6, %v1658_v24 }
 0x3f7   : > { %v2970_v33 = vpop.f32.mrb[18].mxu0  ;;  %v1437_v34 = vpop.f32.mrb[19].mxu1  ;;  %v1754_v35 = vadd.f32 %v4555_v6, %v1653_v28 }
 0x3f8   : > { %v1668_v37 = vadd.f32 %v2970_v33, %v2890_v30  ;;  %v1662_v39 = vpop.f32.mrb[19].mxu0  ;;  %v4663_v44 = vsel %vm1772_vm0, %v1755_v32, 0.0 }
 0x3f9   : > { %v1663_v41 = vadd.f32 %v1662_v39, %v1437_v34  ;;  %1835 = vadd.xlane.f32.xlu1 %v4651_v31  ;;  %v4658_v42 = vsel %vm1772_vm0, %v1754_v35, 0.0 }
 0x3fa   : > { %1837 = vadd.xlane.f32.xlu0 %v4658_v42  ;;  %v2893_v43 = vpop.f32.mrb[20].mxu1  ;;  %v1757_v45 = vadd.f32 %v4555_v6, %v1668_v37 }
 0x3fb   : > { %v2973_v46 = vpop.f32.mrb[20].mxu0  ;;  %v1447_v47 = vpop.f32.mrb[21].mxu1  ;;  %v1756_v49 = vadd.f32 %v4555_v6, %v1663_v41 }
 0x3fc   : > { %v1678_v51 = vadd.f32 %v2973_v46, %v2893_v43  ;;  %v1672_v52 = vpop.f32.mrb[21].mxu0  ;;  %v4675_v56 = vsel %vm1772_vm0, %v1757_v45, 0.0 }
 0x3fd   : > { %v1673_v53 = vadd.f32 %v1672_v52, %v1447_v47  ;;  %1839 = vadd.xlane.f32.xlu1 %v4663_v44  ;;  %v4670_v54 = vsel %vm1772_vm0, %v1756_v49, 0.0 }
 0x3fe   : > { %1841 = vadd.xlane.f32.xlu0 %v4670_v54  ;;  %v2896_v55 = vpop.f32.mrb[22].mxu1  ;;  %v1759_v57 = vadd.f32 %v4555_v6, %v1678_v51 }
 0x3ff   : > { %v2976_v59 = vpop.f32.mrb[22].mxu0  ;;  %v1457_v61 = vpop.f32.mrb[23].mxu1  ;;  %v1758_v62 = vadd.f32 %v4555_v6, %v1673_v53 }
 0x400   : > { %v1688_v63 = vadd.f32 %v2976_v59, %v2896_v55  ;;  %v1682_v0 = vpop.f32.mrb[23].mxu0  ;;  %v4687_v7 = vsel %vm1772_vm0, %v1759_v57, 0.0 }
 0x401   : > { %v1683_v1 = vadd.f32 %v1682_v0, %v1457_v61  ;;  %1843 = vadd.xlane.f32.xlu1 %v4675_v56  ;;  %v4682_v3 = vsel %vm1772_vm0, %v1758_v62, 0.0 }
 0x402   : > { %1845 = vadd.xlane.f32.xlu0 %v4682_v3  ;;  %v2899_v4 = vpop.f32.mrb[24].mxu1  ;;  %v1761_v9 = vadd.f32 %v4555_v6, %v1688_v63 }
 0x403   : > { %v2979_v10 = vpop.f32.mrb[24].mxu0  ;;  %v1467_v11 = vpop.f32.mrb[25].mxu1  ;;  %v1760_v12 = vadd.f32 %v4555_v6, %v1683_v1 }
 0x404   : > { %v1698_v13 = vadd.f32 %v2979_v10, %v2899_v4  ;;  %v1692_v14 = vpop.f32.mrb[25].mxu0  ;;  %v4699_v21 = vsel %vm1772_vm0, %v1761_v9, 0.0 }
 0x405   : > { %v1693_v15 = vadd.f32 %v1692_v14, %v1467_v11  ;;  %1847 = vadd.xlane.f32.xlu1 %v4687_v7  ;;  %v4694_v18 = vsel %vm1772_vm0, %v1760_v12, 0.0 }
 0x406   : > { %1849 = vadd.xlane.f32.xlu0 %v4694_v18  ;;  %v2902_v20 = vpop.f32.mrb[26].mxu1  ;;  %v1763_v22 = vadd.f32 %v4555_v6, %v1698_v13 }
 0x407   : > { %v2982_v23 = vpop.f32.mrb[26].mxu0  ;;  %v1477_v24 = vpop.f32.mrb[27].mxu1  ;;  %v1762_v27 = vadd.f32 %v4555_v6, %v1693_v15 }
 0x408   : > { %v1708_v28 = vadd.f32 %v2982_v23, %v2902_v20  ;;  %v1702_v30 = vpop.f32.mrb[27].mxu0  ;;  %v4711_v35 = vsel %vm1772_vm0, %v1763_v22, 0.0 }
 0x409   : > { %v1703_v32 = vadd.f32 %v1702_v30, %v1477_v24  ;;  %1851 = vadd.xlane.f32.xlu1 %v4699_v21  ;;  %v4706_v33 = vsel %vm1772_vm0, %v1762_v27, 0.0 }
 0x40a   : > { %1853 = vadd.xlane.f32.xlu0 %v4706_v33  ;;  %v2905_v34 = vpop.f32.mrb[28].mxu1  ;;  %v1765_v37 = vadd.f32 %v4555_v6, %v1708_v28 }
 0x40b   : > { %v2985_v39 = vpop.f32.mrb[28].mxu0  ;;  %v1487_v41 = vpop.f32.mrb[29].mxu1  ;;  %v1764_v43 = vadd.f32 %v4555_v6, %v1703_v32 }
 0x40c   : > { %v1718_v45 = vadd.f32 %v2985_v39, %v2905_v34  ;;  %v1712_v46 = vpop.f32.mrb[29].mxu0  ;;  %v4723_v52 = vsel %vm1772_vm0, %v1765_v37, 0.0 }
 0x40d   : > { %v1713_v47 = vadd.f32 %v1712_v46, %v1487_v41  ;;  %1855 = vadd.xlane.f32.xlu1 %v4711_v35  ;;  %v4718_v49 = vsel %vm1772_vm0, %v1764_v43, 0.0 }
 0x40e   : > { %1857 = vadd.xlane.f32.xlu0 %v4718_v49  ;;  %v2908_v51 = vpop.f32.mrb[30].mxu1  ;;  %v1767_v53 = vadd.f32 %v4555_v6, %v1718_v45 }
 0x40f   : > { %v2988_v55 = vpop.f32.mrb[30].mxu0  ;;  %v1497_v57 = vpop.f32.mrb[31].mxu1  ;;  %v1766_v59 = vadd.f32 %v4555_v6, %v1713_v47 }
 0x410   : > { %v1728_v61 = vadd.f32 %v2988_v55, %v2908_v51  ;;  %v1722_v62 = vpop.f32.mrb[31].mxu0  ;;  %v4735_v1 = vsel %vm1772_vm0, %v1767_v53, 0.0 }
 0x411   : > { %v1723_v63 = vadd.f32 %v1722_v62, %v1497_v57  ;;  %1859 = vadd.xlane.f32.xlu1 %v4723_v52  ;;  %v4730_v0 = vsel %vm1772_vm0, %v1766_v59, 0.0 }
 0x412   : > { %1861 = vadd.xlane.f32.xlu0 %v4730_v0  ;;  %v1769_v4 = vadd.f32 %v4555_v6, %v1728_v61 }
 0x413   : > { %v1768_v9 = vadd.f32 %v4555_v6, %v1723_v63 }
 0x414   : > { %v4747_v11 = vsel %vm1772_vm0, %v1769_v4, 0.0 }
 0x415   : > { %1863 = vadd.xlane.f32.xlu1 %v4735_v1  ;;  %v4742_v10 = vsel %vm1772_vm0, %v1768_v9, 0.0 }
 0x416   : > { %1865 = vadd.xlane.f32.xlu0 %v4742_v10 }
 0x419   : > { %1867 = vadd.xlane.f32.xlu1 %v4747_v11 }
 0x466   : > { %v1808_v12 = vpop.xlane.xlu0 %1807 }
 0x467   : > { %v1870_v13 = vmul.f32 0.03125, %v1808_v12 }
 0x469   : > { %v1902_v14 = vsub.f32 %v4561_v16, %v1870_v13 }
 0x46a   : > { %v1812_v15 = vpop.xlane.xlu1 %1811  ;;  %v1806_v6 = vpop.xlane.xlu0 %1805 }
 0x46b   : > { %v1872_v20 = vmul.f32 0.03125, %v1812_v15  ;;  %v1869_v22 = vmul.f32 0.03125, %v1806_v6  ;;  %v4753_v23 = vsel %vm1772_vm0, %v1902_v14, 0.0 }
 0x46c   : > { %v1966_v24 = vmul.f32 %v4753_v23, %v4753_v23 }
 0x46d   : > { %v1904_v27 = vsub.f32 %v4568_v25, %v1872_v20  ;;  %v1901_v28 = vsub.f32 %v4572_v26, %v1869_v22 }
 0x46e   : > { %1999 = vadd.xlane.f32.xlu1 %v1966_v24  ;;  %v1810_v30 = vpop.xlane.xlu1 %1809 }
 0x46f   : > { %v1871_v32 = vmul.f32 0.03125, %v1810_v30  ;;  %v1814_v34 = vpop.xlane.xlu0 %1813  ;;  %v4761_v16 = vsel %vm1772_vm0, %v1904_v27, 0.0  ;;  %v4765_v37 = vsel %vm1772_vm0, %v1901_v28, 0.0 }
 0x470   : > { %v1873_v39 = vmul.f32 0.03125, %v1814_v34  ;;  %v1968_v41 = vmul.f32 %v4761_v16, %v4761_v16  ;;  %v1965_v25 = vmul.f32 %v4765_v37, %v4765_v37 }
 0x471   : > { %v1903_v26 = vsub.f32 %v4581_v36, %v1871_v32 }
 0x472   : > { %v1905_v43 = vsub.f32 %v4586_v38, %v1873_v39  ;;  %2003 = vadd.xlane.f32.xlu1 %v1968_v41  ;;  %v1816_v45 = vpop.xlane.xlu1 %1815  ;;  %1997 = vadd.xlane.f32.xlu0 %v1965_v25 }
 0x473   : > { %v1874_v46 = vmul.f32 0.03125, %v1816_v45  ;;  %v1818_v47 = vpop.xlane.xlu0 %1817  ;;  %v4775_v51 = vsel %vm1772_vm0, %v1903_v26, 0.0 }
 0x474   : > { %v1875_v53 = vmul.f32 0.03125, %v1818_v47  ;;  %v1967_v55 = vmul.f32 %v4775_v51, %v4775_v51  ;;  %v4782_v36 = vsel %vm1772_vm0, %v1905_v43, 0.0 }
 0x475   : > { %v1906_v57 = vsub.f32 %v4591_v40, %v1874_v46  ;;  %v1969_v40 = vmul.f32 %v4782_v36, %v4782_v36 }
 0x476   : > { %v1907_v38 = vsub.f32 %v4598_v48, %v1875_v53  ;;  %v1820_v59 = vpop.xlane.xlu1 %1819  ;;  %2001 = vadd.xlane.f32.xlu0 %v1967_v55 }
 0x477   : > { %v1876_v61 = vmul.f32 0.03125, %v1820_v59  ;;  %v1822_v62 = vpop.xlane.xlu0 %1821  ;;  %v4787_v63 = vsel %vm1772_vm0, %v1906_v57, 0.0 }
 0x478   : > { %v1877_v4 = vmul.f32 0.03125, %v1822_v62  ;;  %v1970_v9 = vmul.f32 %v4787_v63, %v4787_v63  ;;  %v4796_v48 = vsel %vm1772_vm0, %v1907_v38, 0.0 }
 0x479   : > { %v1908_v12 = vsub.f32 %v4603_v50, %v1876_v61  ;;  %v1971_v50 = vmul.f32 %v4796_v48, %v4796_v48 }
 0x47a   : > { %v1909_v13 = vsub.f32 %v4610_v58, %v1877_v4  ;;  %2007 = vadd.xlane.f32.xlu1 %v1970_v9  ;;  %v1824_v14 = vpop.xlane.xlu1 %1823  ;;  %2005 = vadd.xlane.f32.xlu0 %v1969_v40 }
 0x47b   : > { %v1878_v15 = vmul.f32 0.03125, %v1824_v14  ;;  %v1826_v6 = vpop.xlane.xlu0 %1825  ;;  %v4801_v20 = vsel %vm1772_vm0, %v1908_v12, 0.0 }
 0x47c   : > { %v1879_v22 = vmul.f32 0.03125, %v1826_v6  ;;  %v1972_v24 = vmul.f32 %v4801_v20, %v4801_v20  ;;  %v4810_v58 = vsel %vm1772_vm0, %v1909_v13, 0.0 }
 0x47d   : > { %v1910_v27 = vsub.f32 %v4615_v60, %v1878_v15  ;;  %v1973_v60 = vmul.f32 %v4810_v58, %v4810_v58 }
 0x47e   : > { %v1911_v28 = vsub.f32 %v4622_v5, %v1879_v22  ;;  %2011 = vadd.xlane.f32.xlu1 %v1972_v24  ;;  %v1828_v30 = vpop.xlane.xlu1 %1827  ;;  %2009 = vadd.xlane.f32.xlu0 %v1971_v50 }
 0x47f   : > { %v1880_v32 = vmul.f32 0.03125, %v1828_v30  ;;  %v1830_v34 = vpop.xlane.xlu0 %1829  ;;  %v4815_v39 = vsel %vm1772_vm0, %v1910_v27, 0.0 }
 0x480   : > { %v1881_v41 = vmul.f32 0.03125, %v1830_v34  ;;  %v1974_v25 = vmul.f32 %v4815_v39, %v4815_v39  ;;  %v4824_v5 = vsel %vm1772_vm0, %v1911_v28, 0.0 }
 0x481   : > { %v1912_v26 = vsub.f32 %v4627_v8, %v1880_v32  ;;  %v1975_v8 = vmul.f32 %v4824_v5, %v4824_v5 }
 0x482   : > { %v1913_v43 = vsub.f32 %v4634_v17, %v1881_v41  ;;  %2015 = vadd.xlane.f32.xlu1 %v1974_v25  ;;  %v1832_v45 = vpop.xlane.xlu1 %1831  ;;  %2013 = vadd.xlane.f32.xlu0 %v1973_v60 }
 0x483   : > { %v1882_v46 = vmul.f32 0.03125, %v1832_v45  ;;  %v1834_v47 = vpop.xlane.xlu0 %1833  ;;  %v4829_v53 = vsel %vm1772_vm0, %v1912_v26, 0.0 }
 0x484   : > { %v1883_v55 = vmul.f32 0.03125, %v1834_v47  ;;  %v1976_v57 = vmul.f32 %v4829_v53, %v4829_v53  ;;  %v4838_v17 = vsel %vm1772_vm0, %v1913_v43, 0.0 }
 0x485   : > { %v1914_v38 = vsub.f32 %v4639_v19, %v1882_v46  ;;  %v1977_v19 = vmul.f32 %v4838_v17, %v4838_v17 }
 0x486   : > { %v1915_v59 = vsub.f32 %v4646_v29, %v1883_v55  ;;  %2019 = vadd.xlane.f32.xlu1 %v1976_v57  ;;  %v1836_v61 = vpop.xlane.xlu1 %1835  ;;  %2017 = vadd.xlane.f32.xlu0 %v1975_v8 }
 0x487   : > { %v1884_v62 = vmul.f32 0.03125, %v1836_v61  ;;  %v1838_v4 = vpop.xlane.xlu0 %1837  ;;  %v4843_v9 = vsel %vm1772_vm0, %v1914_v38, 0.0 }
 0x488   : > { %v1885_v40 = vmul.f32 0.03125, %v1838_v4  ;;  %v1978_v12 = vmul.f32 %v4843_v9, %v4843_v9  ;;  %v4852_v29 = vsel %vm1772_vm0, %v1915_v59, 0.0 }
 0x489   : > { %v1916_v13 = vsub.f32 %v4651_v31, %v1884_v62  ;;  %v1979_v31 = vmul.f32 %v4852_v29, %v4852_v29 }
 0x48a   : > { %v1917_v14 = vsub.f32 %v4658_v42, %v1885_v40  ;;  %2023 = vadd.xlane.f32.xlu1 %v1978_v12  ;;  %v1840_v15 = vpop.xlane.xlu1 %1839  ;;  %2021 = vadd.xlane.f32.xlu0 %v1977_v19 }
 0x48b   : > { %v1886_v6 = vmul.f32 0.03125, %v1840_v15  ;;  %v1842_v22 = vpop.xlane.xlu0 %1841  ;;  %v4857_v24 = vsel %vm1772_vm0, %v1916_v13, 0.0 }
 0x48c   : > { %v1887_v50 = vmul.f32 0.03125, %v1842_v22  ;;  %v1980_v27 = vmul.f32 %v4857_v24, %v4857_v24  ;;  %v4866_v42 = vsel %vm1772_vm0, %v1917_v14, 0.0 }
 0x48d   : > { %v1918_v28 = vsub.f32 %v4663_v44, %v1886_v6  ;;  %v1981_v44 = vmul.f32 %v4866_v42, %v4866_v42 }
 0x48e   : > { %v1919_v30 = vsub.f32 %v4670_v54, %v1887_v50  ;;  %2027 = vadd.xlane.f32.xlu1 %v1980_v27  ;;  %v1844_v32 = vpop.xlane.xlu1 %1843  ;;  %2025 = vadd.xlane.f32.xlu0 %v1979_v31 }
 0x48f   : > { %v1888_v34 = vmul.f32 0.03125, %v1844_v32  ;;  %v1846_v41 = vpop.xlane.xlu0 %1845  ;;  %v4871_v25 = vsel %vm1772_vm0, %v1918_v28, 0.0 }
 0x490   : > { %v1889_v60 = vmul.f32 0.03125, %v1846_v41  ;;  %v1982_v26 = vmul.f32 %v4871_v25, %v4871_v25  ;;  %v4880_v54 = vsel %vm1772_vm0, %v1919_v30, 0.0 }
 0x491   : > { %v1920_v43 = vsub.f32 %v4675_v56, %v1888_v34  ;;  %v1983_v56 = vmul.f32 %v4880_v54, %v4880_v54 }
 0x492   : > { %v1921_v45 = vsub.f32 %v4682_v3, %v1889_v60  ;;  %2031 = vadd.xlane.f32.xlu1 %v1982_v26  ;;  %v1848_v46 = vpop.xlane.xlu1 %1847  ;;  %2029 = vadd.xlane.f32.xlu0 %v1981_v44 }
 0x493   : > { %v1890_v47 = vmul.f32 0.03125, %v1848_v46  ;;  %v1850_v55 = vpop.xlane.xlu0 %1849  ;;  %v4885_v57 = vsel %vm1772_vm0, %v1920_v43, 0.0 }
 0x494   : > { %v1891_v8 = vmul.f32 0.03125, %v1850_v55  ;;  %v1984_v38 = vmul.f32 %v4885_v57, %v4885_v57  ;;  %v4894_v3 = vsel %vm1772_vm0, %v1921_v45, 0.0 }
 0x495   : > { %v1922_v59 = vsub.f32 %v4687_v7, %v1890_v47  ;;  %v1985_v7 = vmul.f32 %v4894_v3, %v4894_v3 }
 0x496   : > { %v1923_v61 = vsub.f32 %v4694_v18, %v1891_v8  ;;  %2035 = vadd.xlane.f32.xlu1 %v1984_v38  ;;  %v1852_v62 = vpop.xlane.xlu1 %1851  ;;  %2033 = vadd.xlane.f32.xlu0 %v1983_v56 }
 0x497   : > { %v1892_v4 = vmul.f32 0.03125, %v1852_v62  ;;  %v1854_v40 = vpop.xlane.xlu0 %1853  ;;  %v4899_v12 = vsel %vm1772_vm0, %v1922_v59, 0.0 }
 0x498   : > { %v1893_v19 = vmul.f32 0.03125, %v1854_v40  ;;  %v1986_v13 = vmul.f32 %v4899_v12, %v4899_v12  ;;  %v4908_v18 = vsel %vm1772_vm0, %v1923_v61, 0.0 }
 0x499   : > { %v1924_v14 = vsub.f32 %v4699_v21, %v1892_v4  ;;  %v1987_v21 = vmul.f32 %v4908_v18, %v4908_v18 }
 0x49a   : > { %v1925_v15 = vsub.f32 %v4706_v33, %v1893_v19  ;;  %2039 = vadd.xlane.f32.xlu1 %v1986_v13  ;;  %v1856_v6 = vpop.xlane.xlu1 %1855  ;;  %2037 = vadd.xlane.f32.xlu0 %v1985_v7 }
 0x49b   : > { %v1894_v22 = vmul.f32 0.03125, %v1856_v6  ;;  %v1858_v50 = vpop.xlane.xlu0 %1857  ;;  %v4913_v27 = vsel %vm1772_vm0, %v1924_v14, 0.0 }
 0x49c   : > { %v1895_v31 = vmul.f32 0.03125, %v1858_v50  ;;  %v1988_v28 = vmul.f32 %v4913_v27, %v4913_v27  ;;  %v4922_v33 = vsel %vm1772_vm0, %v1925_v15, 0.0 }
 0x49d   : > { %v1926_v30 = vsub.f32 %v4711_v35, %v1894_v22  ;;  %v1989_v35 = vmul.f32 %v4922_v33, %v4922_v33 }
 0x49e   : > { %v1927_v32 = vsub.f32 %v4718_v49, %v1895_v31  ;;  %2043 = vadd.xlane.f32.xlu1 %v1988_v28  ;;  %v1860_v34 = vpop.xlane.xlu1 %1859  ;;  %2041 = vadd.xlane.f32.xlu0 %v1987_v21 }
 0x49f   : > { %v1896_v41 = vmul.f32 0.03125, %v1860_v34  ;;  %v1862_v60 = vpop.xlane.xlu0 %1861  ;;  %v4927_v26 = vsel %vm1772_vm0, %v1926_v30, 0.0 }
 0x4a0   : > { %v1897_v44 = vmul.f32 0.03125, %v1862_v60  ;;  %v1990_v43 = vmul.f32 %v4927_v26, %v4927_v26  ;;  %v4936_v49 = vsel %vm1772_vm0, %v1927_v32, 0.0 }
 0x4a1   : > { %v1928_v45 = vsub.f32 %v4723_v52, %v1896_v41  ;;  %v1991_v52 = vmul.f32 %v4936_v49, %v4936_v49 }
 0x4a2   : > { %v1929_v46 = vsub.f32 %v4730_v0, %v1897_v44  ;;  %2047 = vadd.xlane.f32.xlu1 %v1990_v43  ;;  %v1864_v47 = vpop.xlane.xlu1 %1863  ;;  %2045 = vadd.xlane.f32.xlu0 %v1989_v35 }
 0x4a3   : > { %v1898_v55 = vmul.f32 0.03125, %v1864_v47  ;;  %v1866_v8 = vpop.xlane.xlu0 %1865  ;;  %v4941_v38 = vsel %vm1772_vm0, %v1928_v45, 0.0  ;;  %v4974_v47 = vld [vmem:[#allocation17] ss:$0 sm:$0xff] }
 0x4a4   : > { %v1899_v56 = vmul.f32 0.03125, %v1866_v8  ;;  %v1992_v59 = vmul.f32 %v4941_v38, %v4941_v38  ;;  %v4950_v0 = vsel %vm1772_vm0, %v1929_v46, 0.0 }
 0x4a5   : > { %v1930_v61 = vsub.f32 %v4735_v1, %v1898_v55  ;;  %v1993_v1 = vmul.f32 %v4950_v0, %v4950_v0 }
 0x4a6   : > { %v1931_v62 = vsub.f32 %v4742_v10, %v1899_v56  ;;  %2051 = vadd.xlane.f32.xlu1 %v1992_v59  ;;  %v1868_v4 = vpop.xlane.xlu1 %1867  ;;  %2049 = vadd.xlane.f32.xlu0 %v1991_v52 }
 0x4a7   : > { %v1900_v40 = vmul.f32 0.03125, %v1868_v4  ;;  %v4955_v19 = vsel %vm1772_vm0, %v1930_v61, 0.0  ;;  %v4977_v61 = vld [vmem:[#allocation18] ss:$0 sm:$0xff] }
 0x4a8   : > { %v1994_v13 = vmul.f32 %v4955_v19, %v4955_v19  ;;  %v4964_v14 = vsel %vm1772_vm0, %v1931_v62, 0.0 }
 0x4a9   : > { %v1932_v7 = vsub.f32 %v4747_v11, %v1900_v40  ;;  %v1995_v6 = vmul.f32 %v4964_v14, %v4964_v14 }
 0x4aa   : > { %2055 = vadd.xlane.f32.xlu1 %v1994_v13  ;;  %2053 = vadd.xlane.f32.xlu0 %v1993_v1 }
 0x4ab   : > { %v4968_v10 = vsel %vm1772_vm0, %v1932_v7, 0.0 }
 0x4ac   : > { %v1996_v15 = vmul.f32 %v4968_v10, %v4968_v10 }
 0x4ae   : > { %2059 = vadd.xlane.f32.xlu1 %v1996_v15  ;;  %2057 = vadd.xlane.f32.xlu0 %v1995_v6 }
 0x4fb   : > { %v2000_v22 = vpop.xlane.xlu1 %1999 }
 0x4fc   : > { %v2062_v11 = vmul.f32 0.03125, %v2000_v22 }
 0x4fe   : > { %v2094_v50 = vadd.f32 1e-05, %v2062_v11 }
 0x4ff   : > { %v2004_v31 = vpop.xlane.xlu1 %2003  ;;  %v1998_v28 = vpop.xlane.xlu0 %1997 }
 0x500   : > { %3371 = vrsqrt.f32 %v2094_v50  ;;  %v2064_v21 = vmul.f32 0.03125, %v2004_v31  ;;  %v2061_v30 = vmul.f32 0.03125, %v1998_v28 }
 0x502   : > { %v2096_v32 = vadd.f32 1e-05, %v2064_v21  ;;  %v2093_v2 = vadd.f32 1e-05, %v2061_v30 }
 0x503   : > { %v2002_v34 = vpop.xlane.xlu0 %2001 }
 0x504   : > { %3373 = vrsqrt.f32 %v2096_v32  ;;  %v2063_v41 = vmul.f32 0.03125, %v2002_v34 }
 0x505   : > { %3375 = vrsqrt.f32 %v2093_v2 }
 0x506   : > { %v2095_v60 = vadd.f32 1e-05, %v2063_v41 }
 0x507   : > { %v2008_v44 = vpop.xlane.xlu1 %2007  ;;  %v2006_v43 = vpop.xlane.xlu0 %2005 }
 0x508   : > { %3377 = vrsqrt.f32 %v2095_v60  ;;  %v2066_v35 = vmul.f32 0.03125, %v2008_v44  ;;  %v2065_v45 = vmul.f32 0.03125, %v2006_v43 }
 0x50a   : > { %v3372_v46 = vpop.eup %3371  ;;  %v2098_v55 = vadd.f32 1e-05, %v2066_v35  ;;  %v2097_v8 = vadd.f32 1e-05, %v2065_v45 }
 0x50b   : > { %v2158_v56 = vmul.f32 %v3372_v46, %v4753_v23  ;;  %v2012_v59 = vpop.xlane.xlu1 %2011  ;;  %v2010_v52 = vpop.xlane.xlu0 %2009 }
 0x50c   : > { %3379 = vrsqrt.f32 %v2098_v55  ;;  %v2068_v62 = vmul.f32 0.03125, %v2012_v59  ;;  %v2067_v4 = vmul.f32 0.03125, %v2010_v52 }
 0x50d   : > { %v2197_v40 = vmul.f32 %v4974_v47, %v2158_v56  ;;  %3381 = vrsqrt.f32 %v2097_v8 }
 0x50e   : > { %v3374_v13 = vpop.eup %3373  ;;  %v2100_v1 = vadd.f32 1e-05, %v2068_v62  ;;  %v2099_v7 = vadd.f32 1e-05, %v2067_v4 }
 0x50f   : > { %v3376_v15 = vpop.eup %3375  ;;  %v2236_v6 = vadd.f32 %v4977_v61, %v2197_v40  ;;  %v2160_v22 = vmul.f32 %v3374_v13, %v4761_v16  ;;  %v2016_v23 = vpop.xlane.xlu1 %2015 }
 0x510   : > { %v2014_v11 = vpop.xlane.xlu0 %2013  ;;  %v2157_v50 = vmul.f32 %v3376_v15, %v4765_v37  ;;  %3383 = vrsqrt.f32 %v2100_v1  ;;  %v2070_v31 = vmul.f32 0.03125, %v2016_v23 }
 0x511   : > { %v2069_v28 = vmul.f32 0.03125, %v2014_v11  ;;  %v2268_v21 = vmax.f32 %v2236_v6, 0.0  ;;  %v2199_v30 = vmul.f32 %v4974_v47, %v2160_v22  ;;  %3385 = vrsqrt.f32 %v2099_v7 }
 0x512   : > { %v3378_v32 = vpop.eup %3377  ;;  %v2196_v2 = vmul.f32 %v4974_v47, %v2157_v50  ;;  %v2102_v34 = vadd.f32 1e-05, %v2070_v31 }
 0x513   : > { %v2101_v41 = vadd.f32 1e-05, %v2069_v28  ;;  %2300 = vst [vmem:[%s4467_s27 + $0x8] sm:$0xff] %v2268_v21  ;;  %v2238_v60 = vadd.f32 %v4977_v61, %v2199_v30  ;;  %v2159_v16 = vmul.f32 %v3378_v32, %v4775_v51  ;;  %v2020_v44 = vpop.xlane.xlu1 %2019 }
 0x514   : > { %v2018_v37 = vpop.xlane.xlu0 %2017  ;;  %v2235_v43 = vadd.f32 %v4977_v61, %v2196_v2  ;;  %3387 = vrsqrt.f32 %v2102_v34  ;;  %v2072_v35 = vmul.f32 0.03125, %v2020_v44 }
 0x515   : > { %v2071_v45 = vmul.f32 0.03125, %v2018_v37  ;;  %v2270_v46 = vmax.f32 %v2238_v60, 0.0  ;;  %v2198_v55 = vmul.f32 %v4974_v47, %v2159_v16  ;;  %3389 = vrsqrt.f32 %v2101_v41 }
 0x516   : > { %v3380_v8 = vpop.eup %3379  ;;  %v2267_v56 = vmax.f32 %v2235_v43, 0.0  ;;  %v2104_v59 = vadd.f32 1e-05, %v2072_v35 }
 0x517   : > { %v2103_v52 = vadd.f32 1e-05, %v2071_v45  ;;  %v3382_v62 = vpop.eup %3381  ;;  %2302 = vst [vmem:[%s4467_s27 + $0x18] sm:$0xff] %v2270_v46  ;;  %v2237_v51 = vadd.f32 %v4977_v61, %v2198_v55  ;;  %v2162_v4 = vmul.f32 %v3380_v8, %v4787_v63  ;;  %v2024_v40 = vpop.xlane.xlu1 %2023 }
 0x518   : > { %v2022_v13 = vpop.xlane.xlu0 %2021  ;;  %2299 = vst [vmem:[%s4467_s27] sm:$0xff] %v2267_v56  ;;  %v2161_v1 = vmul.f32 %v3382_v62, %v4782_v36  ;;  %3391 = vrsqrt.f32 %v2104_v59  ;;  %v2074_v7 = vmul.f32 0.03125, %v2024_v40 }
 0x519   : > { %v2073_v15 = vmul.f32 0.03125, %v2022_v13  ;;  %v2269_v6 = vmax.f32 %v2237_v51, 0.0  ;;  %v2201_v22 = vmul.f32 %v4974_v47, %v2162_v4  ;;  %3393 = vrsqrt.f32 %v2103_v52 }
 0x51a   : > { %v3384_v23 = vpop.eup %3383  ;;  %v2200_v11 = vmul.f32 %v4974_v47, %v2161_v1  ;;  %v2106_v50 = vadd.f32 1e-05, %v2074_v7 }
 0x51b   : > { %v2105_v31 = vadd.f32 1e-05, %v2073_v15  ;;  %v3386_v28 = vpop.eup %3385  ;;  %2301 = vst [vmem:[%s4467_s27 + $0x10] sm:$0xff] %v2269_v6  ;;  %v2240_v63 = vadd.f32 %v4977_v61, %v2201_v22  ;;  %v2164_v21 = vmul.f32 %v3384_v23, %v4801_v20  ;;  %v2028_v36 = vpop.xlane.xlu1 %2027 }
 0x51c   : > { %v2026_v30 = vpop.xlane.xlu0 %2025  ;;  %v2239_v32 = vadd.f32 %v4977_v61, %v2200_v11  ;;  %v2163_v2 = vmul.f32 %v3386_v28, %v4796_v48  ;;  %3395 = vrsqrt.f32 %v2106_v50  ;;  %v2076_v34 = vmul.f32 0.03125, %v2028_v36 }
 0x51d   : > { %v2272_v41 = vmax.f32 %v2240_v63, 0.0  ;;  %v2203_v60 = vmul.f32 %v4974_v47, %v2164_v21  ;;  %3397 = vrsqrt.f32 %v2105_v31  ;;  %v2075_v16 = vmul.f32 0.03125, %v2026_v30 }
 0x51e   : > { %v3388_v44 = vpop.eup %3387  ;;  %v2271_v37 = vmax.f32 %v2239_v32, 0.0  ;;  %v2202_v43 = vmul.f32 %v4974_v47, %v2163_v2  ;;  %v2108_v20 = vadd.f32 1e-05, %v2076_v34 }
 0x51f   : > { %v3390_v35 = vpop.eup %3389  ;;  %2304 = vst [vmem:[%s4467_s27 + $0x28] sm:$0xff] %v2272_v41  ;;  %v2242_v45 = vadd.f32 %v4977_v61, %v2203_v60  ;;  %v2166_v46 = vmul.f32 %v3388_v44, %v4815_v39  ;;  %v2107_v48 = vadd.f32 1e-05, %v2075_v16  ;;  %v2032_v55 = vpop.xlane.xlu1 %2031 }
 0x520   : > { %v2030_v8 = vpop.xlane.xlu0 %2029  ;;  %2303 = vst [vmem:[%s4467_s27 + $0x20] sm:$0xff] %v2271_v37  ;;  %v2241_v56 = vadd.f32 %v4977_v61, %v2202_v43  ;;  %v2165_v59 = vmul.f32 %v3390_v35, %v4810_v58  ;;  %3399 = vrsqrt.f32 %v2108_v20  ;;  %v2078_v52 = vmul.f32 0.03125, %v2032_v55 }
 0x521   : > { %v2274_v62 = vmax.f32 %v2242_v45, 0.0  ;;  %v2205_v51 = vmul.f32 %v4974_v47, %v2166_v46  ;;  %3401 = vrsqrt.f32 %v2107_v48  ;;  %v2077_v4 = vmul.f32 0.03125, %v2030_v8 }
 0x522   : > { %v3392_v40 = vpop.eup %3391  ;;  %v2273_v13 = vmax.f32 %v2241_v56, 0.0  ;;  %v2204_v39 = vmul.f32 %v4974_v47, %v2165_v59  ;;  %v2110_v1 = vadd.f32 1e-05, %v2078_v52 }
 0x523   : > { %v3394_v7 = vpop.eup %3393  ;;  %2306 = vst [vmem:[%s4467_s27 + $0x38] sm:$0xff] %v2274_v62  ;;  %v2244_v15 = vadd.f32 %v4977_v61, %v2205_v51  ;;  %v2168_v6 = vmul.f32 %v3392_v40, %v4829_v53  ;;  %v2109_v58 = vadd.f32 1e-05, %v2077_v4  ;;  %v2036_v22 = vpop.xlane.xlu1 %2035 }
 0x524   : > { %v2034_v23 = vpop.xlane.xlu0 %2033  ;;  %2305 = vst [vmem:[%s4467_s27 + $0x30] sm:$0xff] %v2273_v13  ;;  %v2243_v11 = vadd.f32 %v4977_v61, %v2204_v39  ;;  %v2167_v50 = vmul.f32 %v3394_v7, %v4824_v5  ;;  %3403 = vrsqrt.f32 %v2110_v1  ;;  %v2080_v31 = vmul.f32 0.03125, %v2036_v22 }
 0x525   : > { %v2276_v28 = vmax.f32 %v2244_v15, 0.0  ;;  %v2207_v63 = vmul.f32 %v4974_v47, %v2168_v6  ;;  %3405 = vrsqrt.f32 %v2109_v58  ;;  %v2079_v21 = vmul.f32 0.03125, %v2034_v23 }
 0x526   : > { %v3396_v36 = vpop.eup %3395  ;;  %v2275_v30 = vmax.f32 %v2243_v11, 0.0  ;;  %v2206_v53 = vmul.f32 %v4974_v47, %v2167_v50  ;;  %v2112_v32 = vadd.f32 1e-05, %v2080_v31 }
 0x527   : > { %v3398_v2 = vpop.eup %3397  ;;  %2308 = vst [vmem:[%s4467_s27 + $0x48] sm:$0xff] %v2276_v28  ;;  %v2246_v34 = vadd.f32 %v4977_v61, %v2207_v63  ;;  %v2170_v41 = vmul.f32 %v3396_v36, %v4843_v9  ;;  %v2111_v5 = vadd.f32 1e-05, %v2079_v21  ;;  %v2040_v60 = vpop.xlane.xlu1 %2039 }
 0x528   : > { %v2038_v16 = vpop.xlane.xlu0 %2037  ;;  %2307 = vst [vmem:[%s4467_s27 + $0x40] sm:$0xff] %v2275_v30  ;;  %v2245_v44 = vadd.f32 %v4977_v61, %v2206_v53  ;;  %v2169_v37 = vmul.f32 %v3398_v2, %v4838_v17  ;;  %3407 = vrsqrt.f32 %v2112_v32  ;;  %v2082_v43 = vmul.f32 0.03125, %v2040_v60 }
 0x529   : > { %v2278_v20 = vmax.f32 %v2246_v34, 0.0  ;;  %v2209_v35 = vmul.f32 %v4974_v47, %v2170_v41  ;;  %3409 = vrsqrt.f32 %v2111_v5  ;;  %v2081_v45 = vmul.f32 0.03125, %v2038_v16 }
 0x52a   : > { %v3400_v46 = vpop.eup %3399  ;;  %v2277_v48 = vmax.f32 %v2245_v44, 0.0  ;;  %v2208_v9 = vmul.f32 %v4974_v47, %v2169_v37  ;;  %v2114_v55 = vadd.f32 1e-05, %v2082_v43 }
 0x52b   : > { %v3402_v8 = vpop.eup %3401  ;;  %2310 = vst [vmem:[%s4467_s27 + $0x58] sm:$0xff] %v2278_v20  ;;  %v2248_v56 = vadd.f32 %v4977_v61, %v2209_v35  ;;  %v2172_v59 = vmul.f32 %v3400_v46, %v4857_v24  ;;  %v2113_v17 = vadd.f32 1e-05, %v2081_v45  ;;  %v2044_v52 = vpop.xlane.xlu1 %2043 }
 0x52c   : > { %v2042_v62 = vpop.xlane.xlu0 %2041  ;;  %2309 = vst [vmem:[%s4467_s27 + $0x50] sm:$0xff] %v2277_v48  ;;  %v2247_v51 = vadd.f32 %v4977_v61, %v2208_v9  ;;  %v2171_v4 = vmul.f32 %v3402_v8, %v4852_v29  ;;  %3411 = vrsqrt.f32 %v2114_v55  ;;  %v2084_v40 = vmul.f32 0.03125, %v2044_v52 }
 0x52d   : > { %v2280_v13 = vmax.f32 %v2248_v56, 0.0  ;;  %v2211_v39 = vmul.f32 %v4974_v47, %v2172_v59  ;;  %3413 = vrsqrt.f32 %v2113_v17  ;;  %v2083_v1 = vmul.f32 0.03125, %v2042_v62 }
 0x52e   : > { %v3404_v7 = vpop.eup %3403  ;;  %v2279_v15 = vmax.f32 %v2247_v51, 0.0  ;;  %v2210_v24 = vmul.f32 %v4974_v47, %v2171_v4  ;;  %v2116_v6 = vadd.f32 1e-05, %v2084_v40 }
 0x52f   : > { %v3406_v58 = vpop.eup %3405  ;;  %2312 = vst [vmem:[%s4467_s27 + $0x68] sm:$0xff] %v2280_v13  ;;  %v2250_v22 = vadd.f32 %v4977_v61, %v2211_v39  ;;  %v2174_v23 = vmul.f32 %v3404_v7, %v4871_v25  ;;  %v2115_v29 = vadd.f32 1e-05, %v2083_v1  ;;  %v2048_v11 = vpop.xlane.xlu1 %2047 }
 0x530   : > { %v2046_v50 = vpop.xlane.xlu0 %2045  ;;  %2311 = vst [vmem:[%s4467_s27 + $0x60] sm:$0xff] %v2279_v15  ;;  %v2249_v31 = vadd.f32 %v4977_v61, %v2210_v24  ;;  %v2173_v28 = vmul.f32 %v3406_v58, %v4866_v42  ;;  %3415 = vrsqrt.f32 %v2116_v6  ;;  %v2086_v63 = vmul.f32 0.03125, %v2048_v11 }
 0x531   : > { %v2282_v21 = vmax.f32 %v2250_v22, 0.0  ;;  %v2213_v36 = vmul.f32 %v4974_v47, %v2174_v23  ;;  %3417 = vrsqrt.f32 %v2115_v29  ;;  %v2085_v30 = vmul.f32 0.03125, %v2046_v50 }
 0x532   : > { %v3408_v53 = vpop.eup %3407  ;;  %v2281_v32 = vmax.f32 %v2249_v31, 0.0  ;;  %v2212_v25 = vmul.f32 %v4974_v47, %v2173_v28  ;;  %v2118_v2 = vadd.f32 1e-05, %v2086_v63 }
 0x533   : > { %v3410_v34 = vpop.eup %3409  ;;  %2314 = vst [vmem:[%s4467_s27 + $0x78] sm:$0xff] %v2282_v21  ;;  %v2252_v41 = vadd.f32 %v4977_v61, %v2213_v36  ;;  %v2176_v5 = vmul.f32 %v3408_v53, %v4885_v57  ;;  %v2117_v42 = vadd.f32 1e-05, %v2085_v30  ;;  %v2052_v60 = vpop.xlane.xlu1 %2051 }
 0x534   : > { %v2050_v16 = vpop.xlane.xlu0 %2049  ;;  %2313 = vst [vmem:[%s4467_s27 + $0x70] sm:$0xff] %v2281_v32  ;;  %v2251_v44 = vadd.f32 %v4977_v61, %v2212_v25  ;;  %v2175_v37 = vmul.f32 %v3410_v34, %v4880_v54  ;;  %3419 = vrsqrt.f32 %v2118_v2  ;;  %v2088_v43 = vmul.f32 0.03125, %v2052_v60 }
 0x535   : > { %v2284_v20 = vmax.f32 %v2252_v41, 0.0  ;;  %v2215_v35 = vmul.f32 %v4974_v47, %v2176_v5  ;;  %3421 = vrsqrt.f32 %v2117_v42  ;;  %v2087_v45 = vmul.f32 0.03125, %v2050_v16 }
 0x536   : > { %v3412_v46 = vpop.eup %3411  ;;  %v2283_v48 = vmax.f32 %v2251_v44, 0.0  ;;  %v2214_v57 = vmul.f32 %v4974_v47, %v2175_v37  ;;  %v2120_v9 = vadd.f32 1e-05, %v2088_v43 }
 0x537   : > { %v3414_v55 = vpop.eup %3413  ;;  %2316 = vst [vmem:[%s4467_s27 + $0x88] sm:$0xff] %v2284_v20  ;;  %v2254_v8 = vadd.f32 %v4977_v61, %v2215_v35  ;;  %v2178_v56 = vmul.f32 %v3412_v46, %v4899_v12  ;;  %v2119_v54 = vadd.f32 1e-05, %v2087_v45  ;;  %v2056_v59 = vpop.xlane.xlu1 %2055 }
 0x538   : > { %v2054_v17 = vpop.xlane.xlu0 %2053  ;;  %2315 = vst [vmem:[%s4467_s27 + $0x80] sm:$0xff] %v2283_v48  ;;  %v2253_v52 = vadd.f32 %v4977_v61, %v2214_v57  ;;  %v2177_v62 = vmul.f32 %v3414_v55, %v4894_v3  ;;  %3423 = vrsqrt.f32 %v2120_v9  ;;  %v2090_v51 = vmul.f32 0.03125, %v2056_v59 }
 0x539   : > { %v2286_v4 = vmax.f32 %v2254_v8, 0.0  ;;  %v2217_v40 = vmul.f32 %v4974_v47, %v2178_v56  ;;  %3425 = vrsqrt.f32 %v2119_v54  ;;  %v2089_v13 = vmul.f32 0.03125, %v2054_v17 }
 0x53a   : > { %v3416_v39 = vpop.eup %3415  ;;  %v2285_v1 = vmax.f32 %v2253_v52, 0.0  ;;  %v2216_v12 = vmul.f32 %v4974_v47, %v2177_v62  ;;  %v2122_v7 = vadd.f32 1e-05, %v2090_v51 }
 0x53b   : > { %v3418_v15 = vpop.eup %3417  ;;  %2318 = vst [vmem:[%s4467_s27 + $0x98] sm:$0xff] %v2286_v4  ;;  %v2256_v24 = vadd.f32 %v4977_v61, %v2217_v40  ;;  %v2180_v6 = vmul.f32 %v3416_v39, %v4913_v27  ;;  %v2121_v3 = vadd.f32 1e-05, %v2089_v13  ;;  %v2060_v58 = vpop.xlane.xlu1 %2059 }
 0x53c   : > { %v2058_v22 = vpop.xlane.xlu0 %2057  ;;  %2317 = vst [vmem:[%s4467_s27 + $0x90] sm:$0xff] %v2285_v1  ;;  %v2255_v23 = vadd.f32 %v4977_v61, %v2216_v12  ;;  %v2179_v29 = vmul.f32 %v3418_v15, %v4908_v18  ;;  %3427 = vrsqrt.f32 %v2122_v7  ;;  %v2092_v11 = vmul.f32 0.03125, %v2060_v58 }
 0x53d   : > { %v2288_v50 = vmax.f32 %v2256_v24, 0.0  ;;  %v2219_v31 = vmul.f32 %v4974_v47, %v2180_v6  ;;  %3429 = vrsqrt.f32 %v2121_v3  ;;  %v2091_v28 = vmul.f32 0.03125, %v2058_v22 }
 0x53e   : > { %v3420_v63 = vpop.eup %3419  ;;  %v2287_v21 = vmax.f32 %v2255_v23, 0.0  ;;  %v2218_v27 = vmul.f32 %v4974_v47, %v2179_v29  ;;  %v2124_v36 = vadd.f32 1e-05, %v2092_v11 }
 0x53f   : > { %v3422_v30 = vpop.eup %3421  ;;  %2320 = vst [vmem:[%s4467_s27 + $0xa8] sm:$0xff] %v2288_v50  ;;  %v2258_v53 = vadd.f32 %v4977_v61, %v2219_v31  ;;  %v2182_v18 = vmul.f32 %v3420_v63, %v4927_v26  ;;  %v2123_v32 = vadd.f32 1e-05, %v2091_v28 }
 0x540   : > { %2319 = vst [vmem:[%s4467_s27 + $0xa0] sm:$0xff] %v2287_v21  ;;  %v2257_v25 = vadd.f32 %v4977_v61, %v2218_v27  ;;  %v2181_v2 = vmul.f32 %v3422_v30, %v4922_v33  ;;  %3431 = vrsqrt.f32 %v2124_v36 }
 0x541   : > { %v2290_v34 = vmax.f32 %v2258_v53, 0.0  ;;  %v2221_v41 = vmul.f32 %v4974_v47, %v2182_v18  ;;  %3433 = vrsqrt.f32 %v2123_v32 }
 0x542   : > { %v3424_v5 = vpop.eup %3423  ;;  %v2289_v42 = vmax.f32 %v2257_v25, 0.0  ;;  %v2220_v60 = vmul.f32 %v4974_v47, %v2181_v2 }
 0x543   : > { %v3426_v16 = vpop.eup %3425  ;;  %2322 = vst [vmem:[%s4467_s27 + $0xb8] sm:$0xff] %v2290_v34  ;;  %v2260_v26 = vadd.f32 %v4977_v61, %v2221_v41  ;;  %v2184_v44 = vmul.f32 %v3424_v5, %v4941_v38 }
 0x544   : > { %2321 = vst [vmem:[%s4467_s27 + $0xb0] sm:$0xff] %v2289_v42  ;;  %v2259_v33 = vadd.f32 %v4977_v61, %v2220_v60  ;;  %v2183_v37 = vmul.f32 %v3426_v16, %v4936_v49 }
 0x545   : > { %v2292_v43 = vmax.f32 %v2260_v26, 0.0  ;;  %v2223_v20 = vmul.f32 %v4974_v47, %v2184_v44 }
 0x546   : > { %v3428_v35 = vpop.eup %3427  ;;  %v2291_v45 = vmax.f32 %v2259_v33, 0.0  ;;  %v2222_v46 = vmul.f32 %v4974_v47, %v2183_v37 }
 0x547   : > { %v3430_v48 = vpop.eup %3429  ;;  %2324 = vst [vmem:[%s4467_s27 + $0xc8] sm:$0xff] %v2292_v43  ;;  %v2262_v57 = vadd.f32 %v4977_v61, %v2223_v20  ;;  %v2186_v38 = vmul.f32 %v3428_v35, %v4955_v19 }
 0x548   : > { %2323 = vst [vmem:[%s4467_s27 + $0xc0] sm:$0xff] %v2291_v45  ;;  %v2261_v9 = vadd.f32 %v4977_v61, %v2222_v46  ;;  %v2185_v49 = vmul.f32 %v3430_v48, %v4950_v0 }
 0x549   : > { %v2294_v55 = vmax.f32 %v2262_v57, 0.0  ;;  %v2225_v8 = vmul.f32 %v4974_v47, %v2186_v38 }
 0x54a   : > { %v3432_v56 = vpop.eup %3431  ;;  %v2293_v54 = vmax.f32 %v2261_v9, 0.0  ;;  %v2224_v59 = vmul.f32 %v4974_v47, %v2185_v49 }
 0x54b   : > { %v3434_v17 = vpop.eup %3433  ;;  %2326 = vst [vmem:[%s4467_s27 + $0xd8] sm:$0xff] %v2294_v55  ;;  %v2264_v52 = vadd.f32 %v4977_v61, %v2225_v8  ;;  %v2188_v19 = vmul.f32 %v3432_v56, %v4968_v10 }
 0x54c   : > { %2325 = vst [vmem:[%s4467_s27 + $0xd0] sm:$0xff] %v2293_v54  ;;  %v2263_v0 = vadd.f32 %v4977_v61, %v2224_v59  ;;  %v2187_v62 = vmul.f32 %v3434_v17, %v4964_v14 }
 0x54d   : > { %v2296_v51 = vmax.f32 %v2264_v52, 0.0  ;;  %v2227_v4 = vmul.f32 %v4974_v47, %v2188_v19 }
 0x54e   : > { %v2295_v40 = vmax.f32 %v2263_v0, 0.0  ;;  %v2226_v13 = vmul.f32 %v4974_v47, %v2187_v62 }
 0x54f   : > { %2328 = vst [vmem:[%s4467_s27 + $0xe8] sm:$0xff] %v2296_v51  ;;  %v2266_v39 = vadd.f32 %v4977_v61, %v2227_v4 }
 0x550   : > { %2327 = vst [vmem:[%s4467_s27 + $0xe0] sm:$0xff] %v2295_v40  ;;  %v2265_v1 = vadd.f32 %v4977_v61, %v2226_v13 }
 0x551   : > { %v2298_v12 = vmax.f32 %v2266_v39, 0.0 }
 0x552   : > { %v2297_v7 = vmax.f32 %v2265_v1, 0.0 }
 0x553   : > { %2330 = vst [vmem:[%s4467_s27 + $0xf8] sm:$0xff] %v2298_v12 }
 0x554   : > { %2329 = vst [vmem:[%s4467_s27 + $0xf0] sm:$0xff] %v2297_v7 }
 0x555 PF: > { %s5320_s14 = sld [smem:[#allocation39_spill]]  ;;  %s5322_s12 = sld [smem:[#allocation55_spill]] }
 0x556   : > { %s2345_s22 = sshll.u32 %s4467_s27, 4  ;;  %s5117_s20 = scalar_lea.sflag [#allocation8], %s476_s13  ;;  %s5113_s22 = int_to_ptr.vmem [resolvable:$true] %s2345_s22 }
 0x557   : > { %s3685_s28 = scalar_lea.vmem %s5113_s22, 4096  ;;  %p5323_p2 = scmp.ne.s32.totalorder %s5296_s0, 0 }
 0x558   : > { %p3686_p10 = scmp.ne.s32.totalorder %s5113_s22, %s3685_s28  ;;  %s3871_s6 = smov [#allocation20]  }
 0x559   : > { %s3689_s5 = sshll.u32 %s3871_s6, 4  ;;  %s3690_s5 = int_to_ptr.vmem [resolvable:$false] %s3689_s5 }
 0x55a   : > { %p3687_p4 = pnand %p3686_p10, %p5323_p2  ;;  %s3691_s21 = scalar_lea.vmem %s3690_s5, 8192 }
 0x55b   : > { %s2620_s30 = sshll.u32 %s5320_s14, 12  ;;  %p3692_p1 = scmp.lt.s32.totalorder %s5113_s22, %s3690_s5 }
 0x55c   : > { %s5110_s17 = scalar_lea.hbm %s5322_s12, %s2620_s30  ;;  %p3688_p11 = pneg %p3687_p4 }
 0x55d   : > { %p3693_p8 = scmp.lt.s32.totalorder %s3691_s21, %s3685_s28 }
 0x55f   : > { %p3694_p9 = por %p3693_p8, %p3692_p1 }
 0x561   : > { %p3695_p13 = pnand %p3694_p9, %p3688_p11 }
 0x563   : > { %3698 = shalt.err (!%p3695_p13)
}
 0x564   : > { %s3699_s13 = scalar_lea.hbm %s5110_s17, 4096  ;;  %s3703_s15 = scalar_lea.hbm %s5322_s12, 12288 }
 0x565   : > { %p3700_p6 = scmp.ne.s32.totalorder %s5110_s17, %s3699_s13  ;;  %p3704_p0 = scmp.lt.u32.totalorder %s5110_s17, %s5322_s12 }
 0x566   : > { %p3705_p7 = scmp.lt.u32.totalorder %s3703_s15, %s3699_s13  ;;  %p3707_p10 = scmp.lt.u32.totalorder %s3699_s13, %s5110_s17 }
 0x567   : > { %p3701_p3 = pnand %p3700_p6, %p5323_p2 }
 0x568   : > { %p3706_p5 = por %p3705_p7, %p3704_p0 }
 0x569   : > { %p3702_p12 = pneg %p3701_p3 }
 0x56a   : > { %p3708_p4 = por %p3707_p10, %p3706_p5 }
 0x56c   : > { %p3709_p11 = pnand %p3708_p4, %p3702_p12 }
 0x56e   : > { %3712 = shalt.err (!%p3709_p11)
}
 0x56f   : > { %s3872_s10 = smov 128   ;;  %s3873_s14 = smov 8  }
 0x570   : > { %3132 = dma.vmem_to_hbm [thread:$0]  (%p5323_p2), %s5113_s22, 4096, %s5110_s17, %s5117_s20, %s3872_s10, %s3872_s10, %s3873_s14  }
 0x571 PF: > { %s5324_s25 = sld [smem:[#allocation33_spill]]  ;;  %p3179_p1 = scmp.ge.s32.totalorder %s3853_s24, 2 }
 0x572   : > { %p5325_p8 = scmp.ne.s32.totalorder %s5298_s29, 0 }
 0x574   : > { %p3165_p9 = pnand %p3179_p1, %p5325_p8 }
 0x577   : > { %s2360_s30 = sand.u32 1, %s5324_s25  }
 0x578   : > { %s2361_s8 = scalar_lea.sflag [#allocation8], %s2360_s30 }
 0x579   : > { %3796 = dma.done.wait (!%p3165_p9), %s2361_s8, 4096  }
 0x57a   : > { %3798 = vsyncadd (!%p3165_p9), %s2361_s8, 4294963200  ;;  %s38_s24 = sadd.s32 1, %s3853_s24   ;;  %s5327_s0 = sld [smem:[#allocation34_spill]] }
 0x57b   : > { %p5146_p13 = scmp.ge.s32.totalorder %s38_s24, 11   ;;  %s5328_s13 = sld [smem:[#allocation35_spill]] }
 0x57c   : > { %s5329_s15 = sld [smem:[#allocation36_spill]]  ;;  %s5330_s17 = sld [smem:[#allocation46_spill]] }
 0x57d   : > { %s5331_s20 = sld [smem:[#allocation40_spill]]  ;;  %s5332_s22 = sld [smem:[#allocation43_spill]] }
 0x57e   : > { %s5333_s29 = sld [smem:[#allocation44_spill]]  ;;  %s5334_s14 = smov %s4355_s1 }
 0x57f   : > { %s5335_s1 = smov %s3821_s16  ;;  %s5340_s21 = smov %s3849_s23 }
 0x580   :  { %37 = sbr.rel (!%p5146_p13) target bundleno = 38 (0x26), region = 153 }
 0x582   : > { %s5336_s16 = smov %s5330_s17  ;;  %s5337_s17 = smov %s3829_s18 }
 0x583   : > { %s5338_s18 = smov %s3833_s19  ;;  %s5339_s19 = smov %s4275_s2 }
 0x584   : > { %s5341_s23 = smov %s5333_s29 }
 0x587   :  { %2366 = vsyncpa [#allocation7], 1 }
 0x588   :  { %2368 = vsyncpa [#allocation7 + $0x1], 1 }
 0x589   :  { %2369 = vsyncpa [#allocation10], 1 }
 0x58a   :  { %2371 = vsyncpa [#allocation10 + $0x1], 1 }
 0x58b   :  { %2372 = vsyncpa [#allocation13], 1 }
 0x58c   :  { %2373 = vsyncpa [#allocation16], 1 }
 0x58d   :  { %2374 = vsyncpa [#allocation19], 1 }
 0x58e   :  { %2375 = vsyncpa [#allocation8], 1 }
 0x58f   :  { %2377 = vsyncpa [#allocation8 + $0x1], 1 }

</bundles_post_ra>
